<compile_context>
chip_gen: v5e
topology: v5e:2x2
jax: 0.10.0
libtpu: 0.0.40
codegen_flags: <defaults>
</compile_context>

<pallas_src>
import functools

import jax
import jax.numpy as jnp
from jax.experimental import pallas as pl
from jax.experimental.pallas import tpu as pltpu

HIDDEN = 128
INPUT = 7
INPUT_PAD = 8        # pad feature dim 7 -> 8
NLAYER = 2


# ---------------- Fused whole-model kernel ----------------
def fused_regressor_kernel(x_ref,        # (S*B, INPUT_PAD)
                           wih0_ref,     # (INPUT_PAD, 4H)
                           whh0_ref,     # (H, 4H)
                           b0_ref,       # (1, 4H)
                           wih1_ref,     # (H, 4H)
                           whh1_ref,     # (H, 4H)
                           b1_ref,       # (1, 4H)
                           wout_ref,     # (H, 1)
                           bout_ref,     # (1, 1)
                           out_ref,      # (S*B, 1)
                           gx_scr,       # VMEM (S*B, 4H) f32 : hoisted gate pre-activations
                           hall_scr,     # VMEM (S*B, H)  f32 : per-layer hidden history
                           *, seq_len, batch):
    S, B = seq_len, batch
    H = whh0_ref.shape[0]

    def recurrence(whh_ref):
        # Serial scan over time; h/c stay in vregs (static full unroll, S is small).
        h = jnp.zeros((B, H), jnp.float32)
        c = jnp.zeros((B, H), jnp.float32)
        for t in range(S):
            gates = (gx_scr[t * B:(t + 1) * B, :]
                     + jnp.dot(h, whh_ref[...], preferred_element_type=jnp.float32))
            i_g = jax.nn.sigmoid(gates[:, 0 * H:1 * H])
            f_g = jax.nn.sigmoid(gates[:, 1 * H:2 * H])
            g_g = jnp.tanh(gates[:, 2 * H:3 * H])
            o_g = jax.nn.sigmoid(gates[:, 3 * H:4 * H])
            c = f_g * c + i_g * g_g
            h = o_g * jnp.tanh(c)
            hall_scr[t * B:(t + 1) * B, :] = h

    # ---- layer 0: hoisted input projection (one batched matmul), then recurrence ----
    gx_scr[...] = (jnp.dot(x_ref[...], wih0_ref[...], preferred_element_type=jnp.float32)
                   + b0_ref[...])
    recurrence(whh0_ref)

    # ---- layer 1: hoisted projection over the full layer-0 output, then recurrence ----
    gx_scr[...] = (jnp.dot(hall_scr[...], wih1_ref[...], preferred_element_type=jnp.float32)
                   + b1_ref[...])
    recurrence(whh1_ref)

    # ---- fused final Linear(H -> 1): one batched matmul over all S*B rows ----
    out_ref[...] = (jnp.dot(hall_scr[...], wout_ref[...], preferred_element_type=jnp.float32)
                    + bout_ref[...])


# ---------------- Wrapper ----------------
def regressor_forward(x, params):
    """x: (seq, batch, INPUT) float32 -> (seq, batch, 1), matching the PyTorch module."""
    S, B, I = x.shape
    H = HIDDEN
    p0, p1, po = params["lstm0"], params["lstm1"], params["out"]

    # Flatten time*batch and zero-pad the feature dim 7 -> 8 (layout hygiene; no effect
    # on results since the matching W_ih rows are zero).
    x2d = jnp.pad(x.reshape(S * B, I).astype(jnp.float32), ((0, 0), (0, INPUT_PAD - I)))
    wih0 = jnp.pad(p0["w_ih_t"], ((0, INPUT_PAD - I), (0, 0)))

    kernel = functools.partial(fused_regressor_kernel, seq_len=S, batch=B)
    vmem = pl.BlockSpec(memory_space=pltpu.MemorySpace.VMEM)   # whole array, VMEM-resident

    out2d = pl.pallas_call(
        kernel,
        out_shape=jax.ShapeDtypeStruct((S * B, 1), jnp.float32),
        in_specs=[vmem] * 9,
        out_specs=vmem,
        scratch_shapes=[
            pltpu.VMEM((S * B, 4 * H), jnp.float32),   # hoisted gate pre-activations
            pltpu.VMEM((S * B, H), jnp.float32),       # hidden-state history (reused per layer)
        ],
    )(x2d, wih0, p0["w_hh_t"], p0["b"],
      p1["w_ih_t"], p1["w_hh_t"], p1["b"],
      po["w_t"], po["b"])

    return out2d.reshape(S, B, 1)


# -------- Deterministic parameter init (mimics PyTorch uniform(-1/sqrt(H), 1/sqrt(H))) --------
def init_params(key):
    k = 1.0 / jnp.sqrt(HIDDEN)
    params = {}
    keys = jax.random.split(key, 4 * NLAYER + 2)
    for l in range(NLAYER):
        in_l = INPUT if l == 0 else HIDDEN
        kw = keys[4 * l:4 * l + 4]
        w_ih = jax.random.uniform(kw[0], (4 * HIDDEN, in_l), jnp.float32, -k, k)
        w_hh = jax.random.uniform(kw[1], (4 * HIDDEN, HIDDEN), jnp.float32, -k, k)
        b_ih = jax.random.uniform(kw[2], (4 * HIDDEN,), jnp.float32, -k, k)
        b_hh = jax.random.uniform(kw[3], (4 * HIDDEN,), jnp.float32, -k, k)
        params[f"lstm{l}"] = {
            "w_ih_t": w_ih.T,                       # (in, 4H)
            "w_hh_t": w_hh.T,                       # (H, 4H)
            "b": (b_ih + b_hh)[None, :],            # (1, 4H)
        }
    w_out = jax.random.uniform(keys[-2], (1, HIDDEN), jnp.float32, -k, k)
    b_out = jax.random.uniform(keys[-1], (1,), jnp.float32, -k, k)
    params["out"] = {"w_t": w_out.T, "b": b_out[None, :]}   # (H,1), (1,1)
    return params


# ---------------- Pure-JAX reference (for verification) ----------------
def reference_forward(x, params):
    h = x
    for l in range(NLAYER):
        p = params[f"lstm{l}"]
        B = x.shape[1]
        H = HIDDEN

        def step(carry, x_t):
            hp, cp = carry
            gates = x_t @ p["w_ih_t"] + hp @ p["w_hh_t"] + p["b"]
            i_g = jax.nn.sigmoid(gates[:, 0 * H:1 * H])
            f_g = jax.nn.sigmoid(gates[:, 1 * H:2 * H])
            g_g = jnp.tanh(gates[:, 2 * H:3 * H])
            o_g = jax.nn.sigmoid(gates[:, 3 * H:4 * H])
            cn = f_g * cp + i_g * g_g
            hn = o_g * jnp.tanh(cn)
            return (hn, cn), hn

        init = (jnp.zeros((B, H), jnp.float32), jnp.zeros((B, H), jnp.float32))
        _, h = jax.lax.scan(step, init, h)
    S, B, H = h.shape
    out = h.reshape(S * B, H) @ params["out"]["w_t"] + params["out"]["b"]
    return out.reshape(S, B, 1)


if __name__ == "__main__":
    key = jax.random.PRNGKey(0)
    kp, kx = jax.random.split(key)
    params = init_params(kp)

    SEQ, BATCH = 8, 8
    x = jax.random.normal(kx, (SEQ, BATCH, INPUT), jnp.float32)

    out = regressor_forward(x, params)
    out = jax.block_until_ready(out)

    ref = reference_forward(x, params)
    assert out.shape == (SEQ, BATCH, 1)
    assert jnp.allclose(out, ref, rtol=1e-3, atol=1e-3), float(jnp.max(jnp.abs(out - ref)))

    print("KERNEL_OK")
</pallas_src>

<mosaic_0001>
module attributes {stable_mosaic.version = 11 : i64} {
  func.func @fused_regressor_kernel(%arg0: memref<64x8xf32, #tpu.memory_space<vmem>>, %arg1: memref<8x512xf32, #tpu.memory_space<vmem>>, %arg2: memref<128x512xf32, #tpu.memory_space<vmem>>, %arg3: memref<1x512xf32, #tpu.memory_space<vmem>>, %arg4: memref<128x512xf32, #tpu.memory_space<vmem>>, %arg5: memref<128x512xf32, #tpu.memory_space<vmem>>, %arg6: memref<1x512xf32, #tpu.memory_space<vmem>>, %arg7: memref<128x1xf32, #tpu.memory_space<vmem>>, %arg8: memref<1x1xf32, #tpu.memory_space<vmem>>, %arg9: memref<64x1xf32, #tpu.memory_space<vmem>>, %arg10: memref<64x512xf32, #tpu.memory_space<vmem>>, %arg11: memref<64x128xf32, #tpu.memory_space<vmem>>) attributes {dimension_semantics = [], scalar_prefetch = 0 : i64, scratch_operands = 2 : i64, tpu.core_type = #tpu.core_type<tc>} {
    %c0 = arith.constant 0 : index
    %c0_0 = arith.constant 0 : index
    %0 = vector.load %arg0[%c0, %c0_0] : memref<64x8xf32, #tpu.memory_space<vmem>>, vector<64x8xf32>
    %c0_1 = arith.constant 0 : index
    %c0_2 = arith.constant 0 : index
    %1 = vector.load %arg1[%c0_1, %c0_2] : memref<8x512xf32, #tpu.memory_space<vmem>>, vector<8x512xf32>
    %cst = arith.constant dense<0.000000e+00> : vector<64x512xf32>
    %2 = tpu.matmul %0, %1, %cst {dimension_numbers = #tpu.dot_dimension_numbers<[1], [0], [0], [1], [0, 0, 1, 1], [], []>} : vector<64x8xf32>, vector<8x512xf32>, vector<64x512xf32> -> vector<64x512xf32>
    %c0_3 = arith.constant 0 : index
    %c0_4 = arith.constant 0 : index
    %3 = vector.load %arg3[%c0_3, %c0_4] : memref<1x512xf32, #tpu.memory_space<vmem>>, vector<1x512xf32>
    %4 = vector.broadcast %3 : vector<1x512xf32> to vector<64x512xf32>
    %5 = arith.addf %2, %4 : vector<64x512xf32>
    %c0_5 = arith.constant 0 : index
    %c0_6 = arith.constant 0 : index
    %6 = vector.load %arg10[%c0_5, %c0_6] : memref<64x512xf32, #tpu.memory_space<vmem>>, vector<64x512xf32>
    tpu.vector_store %arg10[%c0_5, %c0_6], %5 {strides = array<i32>} : memref<64x512xf32, #tpu.memory_space<vmem>>, vector<64x512xf32>,
    %cst_7 = arith.constant 0.000000e+00 : f32
    %7 = vector.broadcast %cst_7 : f32 to vector<8x128xf32>
    %cst_8 = arith.constant 0.000000e+00 : f32
    %8 = vector.broadcast %cst_8 : f32 to vector<8x128xf32>
    %c0_9 = arith.constant 0 : index
    %c0_10 = arith.constant 0 : index
    %9 = vector.load %arg10[%c0_9, %c0_10] : memref<64x512xf32, #tpu.memory_space<vmem>>, vector<8x512xf32>
    %c0_11 = arith.constant 0 : index
    %c0_12 = arith.constant 0 : index
    %10 = vector.load %arg2[%c0_11, %c0_12] : memref<128x512xf32, #tpu.memory_space<vmem>>, vector<128x512xf32>
    %cst_13 = arith.constant dense<0.000000e+00> : vector<8x512xf32>
    %11 = tpu.matmul %7, %10, %cst_13 {dimension_numbers = #tpu.dot_dimension_numbers<[1], [0], [0], [1], [0, 0, 1, 1], [], []>} : vector<8x128xf32>, vector<128x512xf32>, vector<8x512xf32> -> vector<8x512xf32>
    %12 = arith.addf %9, %11 : vector<8x512xf32>
    %13 = vector.extract_strided_slice %12 {offsets = [0, 0], sizes = [8, 128], strides = [1, 1]} : vector<8x512xf32> to vector<8x128xf32>
    %14 = arith.negf %13 : vector<8x128xf32>
    %15 = math.exp %14 : vector<8x128xf32>
    %cst_14 = arith.constant 1.000000e+00 : f32
    %16 = vector.broadcast %cst_14 : f32 to vector<8x128xf32>
    %17 = arith.addf %16, %15 : vector<8x128xf32>
    %18 = arith.divf %16, %17 : vector<8x128xf32>
    %19 = vector.extract_strided_slice %12 {offsets = [0, 128], sizes = [8, 128], strides = [1, 1]} : vector<8x512xf32> to vector<8x128xf32>
    %20 = arith.negf %19 : vector<8x128xf32>
    %21 = math.exp %20 : vector<8x128xf32>
    %cst_15 = arith.constant 1.000000e+00 : f32
    %22 = vector.broadcast %cst_15 : f32 to vector<8x128xf32>
    %23 = arith.addf %22, %21 : vector<8x128xf32>
    %24 = arith.divf %22, %23 : vector<8x128xf32>
    %25 = vector.extract_strided_slice %12 {offsets = [0, 256], sizes = [8, 128], strides = [1, 1]} : vector<8x512xf32> to vector<8x128xf32>
    %26 = math.tanh %25 : vector<8x128xf32>
    %27 = vector.extract_strided_slice %12 {offsets = [0, 384], sizes = [8, 128], strides = [1, 1]} : vector<8x512xf32> to vector<8x128xf32>
    %28 = arith.negf %27 : vector<8x128xf32>
    %29 = math.exp %28 : vector<8x128xf32>
    %cst_16 = arith.constant 1.000000e+00 : f32
    %30 = vector.broadcast %cst_16 : f32 to vector<8x128xf32>
    %31 = arith.addf %30, %29 : vector<8x128xf32>
    %32 = arith.divf %30, %31 : vector<8x128xf32>
    %33 = arith.mulf %24, %8 : vector<8x128xf32>
    %34 = arith.mulf %18, %26 : vector<8x128xf32>
    %35 = arith.addf %33, %34 : vector<8x128xf32>
    %36 = math.tanh %35 : vector<8x128xf32>
    %37 = arith.mulf %32, %36 : vector<8x128xf32>
    %c0_17 = arith.constant 0 : index
    %c0_18 = arith.constant 0 : index
    %38 = vector.load %arg11[%c0_17, %c0_18] : memref<64x128xf32, #tpu.memory_space<vmem>>, vector<8x128xf32>
    tpu.vector_store %arg11[%c0_17, %c0_18], %37 {strides = array<i32>} : memref<64x128xf32, #tpu.memory_space<vmem>>, vector<8x128xf32>,
    %c8 = arith.constant 8 : index
    %c0_19 = arith.constant 0 : index
    %39 = vector.load %arg10[%c8, %c0_19] : memref<64x512xf32, #tpu.memory_space<vmem>>, vector<8x512xf32>
    %c0_20 = arith.constant 0 : index
    %c0_21 = arith.constant 0 : index
    %40 = vector.load %arg2[%c0_20, %c0_21] : memref<128x512xf32, #tpu.memory_space<vmem>>, vector<128x512xf32>
    %cst_22 = arith.constant dense<0.000000e+00> : vector<8x512xf32>
    %41 = tpu.matmul %37, %40, %cst_22 {dimension_numbers = #tpu.dot_dimension_numbers<[1], [0], [0], [1], [0, 0, 1, 1], [], []>} : vector<8x128xf32>, vector<128x512xf32>, vector<8x512xf32> -> vector<8x512xf32>
    %42 = arith.addf %39, %41 : vector<8x512xf32>
    %43 = vector.extract_strided_slice %42 {offsets = [0, 0], sizes = [8, 128], strides = [1, 1]} : vector<8x512xf32> to vector<8x128xf32>
    %44 = arith.negf %43 : vector<8x128xf32>
    %45 = math.exp %44 : vector<8x128xf32>
    %cst_23 = arith.constant 1.000000e+00 : f32
    %46 = vector.broadcast %cst_23 : f32 to vector<8x128xf32>
    %47 = arith.addf %46, %45 : vector<8x128xf32>
    %48 = arith.divf %46, %47 : vector<8x128xf32>
    %49 = vector.extract_strided_slice %42 {offsets = [0, 128], sizes = [8, 128], strides = [1, 1]} : vector<8x512xf32> to vector<8x128xf32>
    %50 = arith.negf %49 : vector<8x128xf32>
    %51 = math.exp %50 : vector<8x128xf32>
    %cst_24 = arith.constant 1.000000e+00 : f32
    %52 = vector.broadcast %cst_24 : f32 to vector<8x128xf32>
    %53 = arith.addf %52, %51 : vector<8x128xf32>
    %54 = arith.divf %52, %53 : vector<8x128xf32>
    %55 = vector.extract_strided_slice %42 {offsets = [0, 256], sizes = [8, 128], strides = [1, 1]} : vector<8x512xf32> to vector<8x128xf32>
    %56 = math.tanh %55 : vector<8x128xf32>
    %57 = vector.extract_strided_slice %42 {offsets = [0, 384], sizes = [8, 128], strides = [1, 1]} : vector<8x512xf32> to vector<8x128xf32>
    %58 = arith.negf %57 : vector<8x128xf32>
    %59 = math.exp %58 : vector<8x128xf32>
    %cst_25 = arith.constant 1.000000e+00 : f32
    %60 = vector.broadcast %cst_25 : f32 to vector<8x128xf32>
    %61 = arith.addf %60, %59 : vector<8x128xf32>
    %62 = arith.divf %60, %61 : vector<8x128xf32>
    %63 = arith.mulf %54, %35 : vector<8x128xf32>
    %64 = arith.mulf %48, %56 : vector<8x128xf32>
    %65 = arith.addf %63, %64 : vector<8x128xf32>
    %66 = math.tanh %65 : vector<8x128xf32>
    %67 = arith.mulf %62, %66 : vector<8x128xf32>
    %c8_26 = arith.constant 8 : index
    %c0_27 = arith.constant 0 : index
    %68 = vector.load %arg11[%c8_26, %c0_27] : memref<64x128xf32, #tpu.memory_space<vmem>>, vector<8x128xf32>
    tpu.vector_store %arg11[%c8_26, %c0_27], %67 {strides = array<i32>} : memref<64x128xf32, #tpu.memory_space<vmem>>, vector<8x128xf32>,
    %c16 = arith.constant 16 : index
    %c0_28 = arith.constant 0 : index
    %69 = vector.load %arg10[%c16, %c0_28] : memref<64x512xf32, #tpu.memory_space<vmem>>, vector<8x512xf32>
    %c0_29 = arith.constant 0 : index
    %c0_30 = arith.constant 0 : index
    %70 = vector.load %arg2[%c0_29, %c0_30] : memref<128x512xf32, #tpu.memory_space<vmem>>, vector<128x512xf32>
    %cst_31 = arith.constant dense<0.000000e+00> : vector<8x512xf32>
    %71 = tpu.matmul %67, %70, %cst_31 {dimension_numbers = #tpu.dot_dimension_numbers<[1], [0], [0], [1], [0, 0, 1, 1], [], []>} : vector<8x128xf32>, vector<128x512xf32>, vector<8x512xf32> -> vector<8x512xf32>
    %72 = arith.addf %69, %71 : vector<8x512xf32>
    %73 = vector.extract_strided_slice %72 {offsets = [0, 0], sizes = [8, 128], strides = [1, 1]} : vector<8x512xf32> to vector<8x128xf32>
    %74 = arith.negf %73 : vector<8x128xf32>
    %75 = math.exp %74 : vector<8x128xf32>
    %cst_32 = arith.constant 1.000000e+00 : f32
    %76 = vector.broadcast %cst_32 : f32 to vector<8x128xf32>
    %77 = arith.addf %76, %75 : vector<8x128xf32>
    %78 = arith.divf %76, %77 : vector<8x128xf32>
    %79 = vector.extract_strided_slice %72 {offsets = [0, 128], sizes = [8, 128], strides = [1, 1]} : vector<8x512xf32> to vector<8x128xf32>
    %80 = arith.negf %79 : vector<8x128xf32>
    %81 = math.exp %80 : vector<8x128xf32>
    %cst_33 = arith.constant 1.000000e+00 : f32
    %82 = vector.broadcast %cst_33 : f32 to vector<8x128xf32>
    %83 = arith.addf %82, %81 : vector<8x128xf32>
    %84 = arith.divf %82, %83 : vector<8x128xf32>
    %85 = vector.extract_strided_slice %72 {offsets = [0, 256], sizes = [8, 128], strides = [1, 1]} : vector<8x512xf32> to vector<8x128xf32>
    %86 = math.tanh %85 : vector<8x128xf32>
    %87 = vector.extract_strided_slice %72 {offsets = [0, 384], sizes = [8, 128], strides = [1, 1]} : vector<8x512xf32> to vector<8x128xf32>
    %88 = arith.negf %87 : vector<8x128xf32>
    %89 = math.exp %88 : vector<8x128xf32>
    %cst_34 = arith.constant 1.000000e+00 : f32
    %90 = vector.broadcast %cst_34 : f32 to vector<8x128xf32>
    %91 = arith.addf %90, %89 : vector<8x128xf32>
    %92 = arith.divf %90, %91 : vector<8x128xf32>
    %93 = arith.mulf %84, %65 : vector<8x128xf32>
    %94 = arith.mulf %78, %86 : vector<8x128xf32>
    %95 = arith.addf %93, %94 : vector<8x128xf32>
    %96 = math.tanh %95 : vector<8x128xf32>
    %97 = arith.mulf %92, %96 : vector<8x128xf32>
    %c16_35 = arith.constant 16 : index
    %c0_36 = arith.constant 0 : index
    %98 = vector.load %arg11[%c16_35, %c0_36] : memref<64x128xf32, #tpu.memory_space<vmem>>, vector<8x128xf32>
    tpu.vector_store %arg11[%c16_35, %c0_36], %97 {strides = array<i32>} : memref<64x128xf32, #tpu.memory_space<vmem>>, vector<8x128xf32>,
    %c24 = arith.constant 24 : index
    %c0_37 = arith.constant 0 : index
    %99 = vector.load %arg10[%c24, %c0_37] : memref<64x512xf32, #tpu.memory_space<vmem>>, vector<8x512xf32>
    %c0_38 = arith.constant 0 : index
    %c0_39 = arith.constant 0 : index
    %100 = vector.load %arg2[%c0_38, %c0_39] : memref<128x512xf32, #tpu.memory_space<vmem>>, vector<128x512xf32>
    %cst_40 = arith.constant dense<0.000000e+00> : vector<8x512xf32>
    %101 = tpu.matmul %97, %100, %cst_40 {dimension_numbers = #tpu.dot_dimension_numbers<[1], [0], [0], [1], [0, 0, 1, 1], [], []>} : vector<8x128xf32>, vector<128x512xf32>, vector<8x512xf32> -> vector<8x512xf32>
    %102 = arith.addf %99, %101 : vector<8x512xf32>
    %103 = vector.extract_strided_slice %102 {offsets = [0, 0], sizes = [8, 128], strides = [1, 1]} : vector<8x512xf32> to vector<8x128xf32>
    %104 = arith.negf %103 : vector<8x128xf32>
    %105 = math.exp %104 : vector<8x128xf32>
    %cst_41 = arith.constant 1.000000e+00 : f32
    %106 = vector.broadcast %cst_41 : f32 to vector<8x128xf32>
    %107 = arith.addf %106, %105 : vector<8x128xf32>
    %108 = arith.divf %106, %107 : vector<8x128xf32>
    %109 = vector.extract_strided_slice %102 {offsets = [0, 128], sizes = [8, 128], strides = [1, 1]} : vector<8x512xf32> to vector<8x128xf32>
    %110 = arith.negf %109 : vector<8x128xf32>
    %111 = math.exp %110 : vector<8x128xf32>
    %cst_42 = arith.constant 1.000000e+00 : f32
    %112 = vector.broadcast %cst_42 : f32 to vector<8x128xf32>
    %113 = arith.addf %112, %111 : vector<8x128xf32>
    %114 = arith.divf %112, %113 : vector<8x128xf32>
    %115 = vector.extract_strided_slice %102 {offsets = [0, 256], sizes = [8, 128], strides = [1, 1]} : vector<8x512xf32> to vector<8x128xf32>
    %116 = math.tanh %115 : vector<8x128xf32>
    %117 = vector.extract_strided_slice %102 {offsets = [0, 384], sizes = [8, 128], strides = [1, 1]} : vector<8x512xf32> to vector<8x128xf32>
    %118 = arith.negf %117 : vector<8x128xf32>
    %119 = math.exp %118 : vector<8x128xf32>
    %cst_43 = arith.constant 1.000000e+00 : f32
    %120 = vector.broadcast %cst_43 : f32 to vector<8x128xf32>
    %121 = arith.addf %120, %119 : vector<8x128xf32>
    %122 = arith.divf %120, %121 : vector<8x128xf32>
    %123 = arith.mulf %114, %95 : vector<8x128xf32>
    %124 = arith.mulf %108, %116 : vector<8x128xf32>
    %125 = arith.addf %123, %124 : vector<8x128xf32>
    %126 = math.tanh %125 : vector<8x128xf32>
    %127 = arith.mulf %122, %126 : vector<8x128xf32>
    %c24_44 = arith.constant 24 : index
    %c0_45 = arith.constant 0 : index
    %128 = vector.load %arg11[%c24_44, %c0_45] : memref<64x128xf32, #tpu.memory_space<vmem>>, vector<8x128xf32>
    tpu.vector_store %arg11[%c24_44, %c0_45], %127 {strides = array<i32>} : memref<64x128xf32, #tpu.memory_space<vmem>>, vector<8x128xf32>,
    %c32 = arith.constant 32 : index
    %c0_46 = arith.constant 0 : index
    %129 = vector.load %arg10[%c32, %c0_46] : memref<64x512xf32, #tpu.memory_space<vmem>>, vector<8x512xf32>
    %c0_47 = arith.constant 0 : index
    %c0_48 = arith.constant 0 : index
    %130 = vector.load %arg2[%c0_47, %c0_48] : memref<128x512xf32, #tpu.memory_space<vmem>>, vector<128x512xf32>
    %cst_49 = arith.constant dense<0.000000e+00> : vector<8x512xf32>
    %131 = tpu.matmul %127, %130, %cst_49 {dimension_numbers = #tpu.dot_dimension_numbers<[1], [0], [0], [1], [0, 0, 1, 1], [], []>} : vector<8x128xf32>, vector<128x512xf32>, vector<8x512xf32> -> vector<8x512xf32>
    %132 = arith.addf %129, %131 : vector<8x512xf32>
    %133 = vector.extract_strided_slice %132 {offsets = [0, 0], sizes = [8, 128], strides = [1, 1]} : vector<8x512xf32> to vector<8x128xf32>
    %134 = arith.negf %133 : vector<8x128xf32>
    %135 = math.exp %134 : vector<8x128xf32>
    %cst_50 = arith.constant 1.000000e+00 : f32
    %136 = vector.broadcast %cst_50 : f32 to vector<8x128xf32>
    %137 = arith.addf %136, %135 : vector<8x128xf32>
    %138 = arith.divf %136, %137 : vector<8x128xf32>
    %139 = vector.extract_strided_slice %132 {offsets = [0, 128], sizes = [8, 128], strides = [1, 1]} : vector<8x512xf32> to vector<8x128xf32>
    %140 = arith.negf %139 : vector<8x128xf32>
    %141 = math.exp %140 : vector<8x128xf32>
    %cst_51 = arith.constant 1.000000e+00 : f32
    %142 = vector.broadcast %cst_51 : f32 to vector<8x128xf32>
    %143 = arith.addf %142, %141 : vector<8x128xf32>
    %144 = arith.divf %142, %143 : vector<8x128xf32>
    %145 = vector.extract_strided_slice %132 {offsets = [0, 256], sizes = [8, 128], strides = [1, 1]} : vector<8x512xf32> to vector<8x128xf32>
    %146 = math.tanh %145 : vector<8x128xf32>
    %147 = vector.extract_strided_slice %132 {offsets = [0, 384], sizes = [8, 128], strides = [1, 1]} : vector<8x512xf32> to vector<8x128xf32>
    %148 = arith.negf %147 : vector<8x128xf32>
    %149 = math.exp %148 : vector<8x128xf32>
    %cst_52 = arith.constant 1.000000e+00 : f32
    %150 = vector.broadcast %cst_52 : f32 to vector<8x128xf32>
    %151 = arith.addf %150, %149 : vector<8x128xf32>
    %152 = arith.divf %150, %151 : vector<8x128xf32>
    %153 = arith.mulf %144, %125 : vector<8x128xf32>
    %154 = arith.mulf %138, %146 : vector<8x128xf32>
    %155 = arith.addf %153, %154 : vector<8x128xf32>
    %156 = math.tanh %155 : vector<8x128xf32>
    %157 = arith.mulf %152, %156 : vector<8x128xf32>
    %c32_53 = arith.constant 32 : index
    %c0_54 = arith.constant 0 : index
    %158 = vector.load %arg11[%c32_53, %c0_54] : memref<64x128xf32, #tpu.memory_space<vmem>>, vector<8x128xf32>
    tpu.vector_store %arg11[%c32_53, %c0_54], %157 {strides = array<i32>} : memref<64x128xf32, #tpu.memory_space<vmem>>, vector<8x128xf32>,
    %c40 = arith.constant 40 : index
    %c0_55 = arith.constant 0 : index
    %159 = vector.load %arg10[%c40, %c0_55] : memref<64x512xf32, #tpu.memory_space<vmem>>, vector<8x512xf32>
    %c0_56 = arith.constant 0 : index
    %c0_57 = arith.constant 0 : index
    %160 = vector.load %arg2[%c0_56, %c0_57] : memref<128x512xf32, #tpu.memory_space<vmem>>, vector<128x512xf32>
    %cst_58 = arith.constant dense<0.000000e+00> : vector<8x512xf32>
    %161 = tpu.matmul %157, %160, %cst_58 {dimension_numbers = #tpu.dot_dimension_numbers<[1], [0], [0], [1], [0, 0, 1, 1], [], []>} : vector<8x128xf32>, vector<128x512xf32>, vector<8x512xf32> -> vector<8x512xf32>
    %162 = arith.addf %159, %161 : vector<8x512xf32>
    %163 = vector.extract_strided_slice %162 {offsets = [0, 0], sizes = [8, 128], strides = [1, 1]} : vector<8x512xf32> to vector<8x128xf32>
    %164 = arith.negf %163 : vector<8x128xf32>
    %165 = math.exp %164 : vector<8x128xf32>
    %cst_59 = arith.constant 1.000000e+00 : f32
    %166 = vector.broadcast %cst_59 : f32 to vector<8x128xf32>
    %167 = arith.addf %166, %165 : vector<8x128xf32>
    %168 = arith.divf %166, %167 : vector<8x128xf32>
    %169 = vector.extract_strided_slice %162 {offsets = [0, 128], sizes = [8, 128], strides = [1, 1]} : vector<8x512xf32> to vector<8x128xf32>
    %170 = arith.negf %169 : vector<8x128xf32>
    %171 = math.exp %170 : vector<8x128xf32>
    %cst_60 = arith.constant 1.000000e+00 : f32
    %172 = vector.broadcast %cst_60 : f32 to vector<8x128xf32>
    %173 = arith.addf %172, %171 : vector<8x128xf32>
    %174 = arith.divf %172, %173 : vector<8x128xf32>
    %175 = vector.extract_strided_slice %162 {offsets = [0, 256], sizes = [8, 128], strides = [1, 1]} : vector<8x512xf32> to vector<8x128xf32>
    %176 = math.tanh %175 : vector<8x128xf32>
    %177 = vector.extract_strided_slice %162 {offsets = [0, 384], sizes = [8, 128], strides = [1, 1]} : vector<8x512xf32> to vector<8x128xf32>
    %178 = arith.negf %177 : vector<8x128xf32>
    %179 = math.exp %178 : vector<8x128xf32>
    %cst_61 = arith.constant 1.000000e+00 : f32
    %180 = vector.broadcast %cst_61 : f32 to vector<8x128xf32>
    %181 = arith.addf %180, %179 : vector<8x128xf32>
    %182 = arith.divf %180, %181 : vector<8x128xf32>
    %183 = arith.mulf %174, %155 : vector<8x128xf32>
    %184 = arith.mulf %168, %176 : vector<8x128xf32>
    %185 = arith.addf %183, %184 : vector<8x128xf32>
    %186 = math.tanh %185 : vector<8x128xf32>
    %187 = arith.mulf %182, %186 : vector<8x128xf32>
    %c40_62 = arith.constant 40 : index
    %c0_63 = arith.constant 0 : index
    %188 = vector.load %arg11[%c40_62, %c0_63] : memref<64x128xf32, #tpu.memory_space<vmem>>, vector<8x128xf32>
    tpu.vector_store %arg11[%c40_62, %c0_63], %187 {strides = array<i32>} : memref<64x128xf32, #tpu.memory_space<vmem>>, vector<8x128xf32>,
    %c48 = arith.constant 48 : index
    %c0_64 = arith.constant 0 : index
    %189 = vector.load %arg10[%c48, %c0_64] : memref<64x512xf32, #tpu.memory_space<vmem>>, vector<8x512xf32>
    %c0_65 = arith.constant 0 : index
    %c0_66 = arith.constant 0 : index
    %190 = vector.load %arg2[%c0_65, %c0_66] : memref<128x512xf32, #tpu.memory_space<vmem>>, vector<128x512xf32>
    %cst_67 = arith.constant dense<0.000000e+00> : vector<8x512xf32>
    %191 = tpu.matmul %187, %190, %cst_67 {dimension_numbers = #tpu.dot_dimension_numbers<[1], [0], [0], [1], [0, 0, 1, 1], [], []>} : vector<8x128xf32>, vector<128x512xf32>, vector<8x512xf32> -> vector<8x512xf32>
    %192 = arith.addf %189, %191 : vector<8x512xf32>
    %193 = vector.extract_strided_slice %192 {offsets = [0, 0], sizes = [8, 128], strides = [1, 1]} : vector<8x512xf32> to vector<8x128xf32>
    %194 = arith.negf %193 : vector<8x128xf32>
    %195 = math.exp %194 : vector<8x128xf32>
    %cst_68 = arith.constant 1.000000e+00 : f32
    %196 = vector.broadcast %cst_68 : f32 to vector<8x128xf32>
    %197 = arith.addf %196, %195 : vector<8x128xf32>
    %198 = arith.divf %196, %197 : vector<8x128xf32>
    %199 = vector.extract_strided_slice %192 {offsets = [0, 128], sizes = [8, 128], strides = [1, 1]} : vector<8x512xf32> to vector<8x128xf32>
    %200 = arith.negf %199 : vector<8x128xf32>
    %201 = math.exp %200 : vector<8x128xf32>
    %cst_69 = arith.constant 1.000000e+00 : f32
    %202 = vector.broadcast %cst_69 : f32 to vector<8x128xf32>
    %203 = arith.addf %202, %201 : vector<8x128xf32>
    %204 = arith.divf %202, %203 : vector<8x128xf32>
    %205 = vector.extract_strided_slice %192 {offsets = [0, 256], sizes = [8, 128], strides = [1, 1]} : vector<8x512xf32> to vector<8x128xf32>
    %206 = math.tanh %205 : vector<8x128xf32>
    %207 = vector.extract_strided_slice %192 {offsets = [0, 384], sizes = [8, 128], strides = [1, 1]} : vector<8x512xf32> to vector<8x128xf32>
    %208 = arith.negf %207 : vector<8x128xf32>
    %209 = math.exp %208 : vector<8x128xf32>
    %cst_70 = arith.constant 1.000000e+00 : f32
    %210 = vector.broadcast %cst_70 : f32 to vector<8x128xf32>
    %211 = arith.addf %210, %209 : vector<8x128xf32>
    %212 = arith.divf %210, %211 : vector<8x128xf32>
    %213 = arith.mulf %204, %185 : vector<8x128xf32>
    %214 = arith.mulf %198, %206 : vector<8x128xf32>
    %215 = arith.addf %213, %214 : vector<8x128xf32>
    %216 = math.tanh %215 : vector<8x128xf32>
    %217 = arith.mulf %212, %216 : vector<8x128xf32>
    %c48_71 = arith.constant 48 : index
    %c0_72 = arith.constant 0 : index
    %218 = vector.load %arg11[%c48_71, %c0_72] : memref<64x128xf32, #tpu.memory_space<vmem>>, vector<8x128xf32>
    tpu.vector_store %arg11[%c48_71, %c0_72], %217 {strides = array<i32>} : memref<64x128xf32, #tpu.memory_space<vmem>>, vector<8x128xf32>,
    %c56 = arith.constant 56 : index
    %c0_73 = arith.constant 0 : index
    %219 = vector.load %arg10[%c56, %c0_73] : memref<64x512xf32, #tpu.memory_space<vmem>>, vector<8x512xf32>
    %c0_74 = arith.constant 0 : index
    %c0_75 = arith.constant 0 : index
    %220 = vector.load %arg2[%c0_74, %c0_75] : memref<128x512xf32, #tpu.memory_space<vmem>>, vector<128x512xf32>
    %cst_76 = arith.constant dense<0.000000e+00> : vector<8x512xf32>
    %221 = tpu.matmul %217, %220, %cst_76 {dimension_numbers = #tpu.dot_dimension_numbers<[1], [0], [0], [1], [0, 0, 1, 1], [], []>} : vector<8x128xf32>, vector<128x512xf32>, vector<8x512xf32> -> vector<8x512xf32>
    %222 = arith.addf %219, %221 : vector<8x512xf32>
    %223 = vector.extract_strided_slice %222 {offsets = [0, 0], sizes = [8, 128], strides = [1, 1]} : vector<8x512xf32> to vector<8x128xf32>
    %224 = arith.negf %223 : vector<8x128xf32>
    %225 = math.exp %224 : vector<8x128xf32>
    %cst_77 = arith.constant 1.000000e+00 : f32
    %226 = vector.broadcast %cst_77 : f32 to vector<8x128xf32>
    %227 = arith.addf %226, %225 : vector<8x128xf32>
    %228 = arith.divf %226, %227 : vector<8x128xf32>
    %229 = vector.extract_strided_slice %222 {offsets = [0, 128], sizes = [8, 128], strides = [1, 1]} : vector<8x512xf32> to vector<8x128xf32>
    %230 = arith.negf %229 : vector<8x128xf32>
    %231 = math.exp %230 : vector<8x128xf32>
    %cst_78 = arith.constant 1.000000e+00 : f32
    %232 = vector.broadcast %cst_78 : f32 to vector<8x128xf32>
    %233 = arith.addf %232, %231 : vector<8x128xf32>
    %234 = arith.divf %232, %233 : vector<8x128xf32>
    %235 = vector.extract_strided_slice %222 {offsets = [0, 256], sizes = [8, 128], strides = [1, 1]} : vector<8x512xf32> to vector<8x128xf32>
    %236 = math.tanh %235 : vector<8x128xf32>
    %237 = vector.extract_strided_slice %222 {offsets = [0, 384], sizes = [8, 128], strides = [1, 1]} : vector<8x512xf32> to vector<8x128xf32>
    %238 = arith.negf %237 : vector<8x128xf32>
    %239 = math.exp %238 : vector<8x128xf32>
    %cst_79 = arith.constant 1.000000e+00 : f32
    %240 = vector.broadcast %cst_79 : f32 to vector<8x128xf32>
    %241 = arith.addf %240, %239 : vector<8x128xf32>
    %242 = arith.divf %240, %241 : vector<8x128xf32>
    %243 = arith.mulf %234, %215 : vector<8x128xf32>
    %244 = arith.mulf %228, %236 : vector<8x128xf32>
    %245 = arith.addf %243, %244 : vector<8x128xf32>
    %246 = math.tanh %245 : vector<8x128xf32>
    %247 = arith.mulf %242, %246 : vector<8x128xf32>
    %c56_80 = arith.constant 56 : index
    %c0_81 = arith.constant 0 : index
    %248 = vector.load %arg11[%c56_80, %c0_81] : memref<64x128xf32, #tpu.memory_space<vmem>>, vector<8x128xf32>
    tpu.vector_store %arg11[%c56_80, %c0_81], %247 {strides = array<i32>} : memref<64x128xf32, #tpu.memory_space<vmem>>, vector<8x128xf32>,
    %c0_82 = arith.constant 0 : index
    %c0_83 = arith.constant 0 : index
    %249 = vector.load %arg11[%c0_82, %c0_83] : memref<64x128xf32, #tpu.memory_space<vmem>>, vector<64x128xf32>
    %c0_84 = arith.constant 0 : index
    %c0_85 = arith.constant 0 : index
    %250 = vector.load %arg4[%c0_84, %c0_85] : memref<128x512xf32, #tpu.memory_space<vmem>>, vector<128x512xf32>
    %cst_86 = arith.constant dense<0.000000e+00> : vector<64x512xf32>
    %251 = tpu.matmul %249, %250, %cst_86 {dimension_numbers = #tpu.dot_dimension_numbers<[1], [0], [0], [1], [0, 0, 1, 1], [], []>} : vector<64x128xf32>, vector<128x512xf32>, vector<64x512xf32> -> vector<64x512xf32>
    %c0_87 = arith.constant 0 : index
    %c0_88 = arith.constant 0 : index
    %252 = vector.load %arg6[%c0_87, %c0_88] : memref<1x512xf32, #tpu.memory_space<vmem>>, vector<1x512xf32>
    %253 = vector.broadcast %252 : vector<1x512xf32> to vector<64x512xf32>
    %254 = arith.addf %251, %253 : vector<64x512xf32>
    %c0_89 = arith.constant 0 : index
    %c0_90 = arith.constant 0 : index
    %255 = vector.load %arg10[%c0_89, %c0_90] : memref<64x512xf32, #tpu.memory_space<vmem>>, vector<64x512xf32>
    tpu.vector_store %arg10[%c0_89, %c0_90], %254 {strides = array<i32>} : memref<64x512xf32, #tpu.memory_space<vmem>>, vector<64x512xf32>,
    %cst_91 = arith.constant 0.000000e+00 : f32
    %256 = vector.broadcast %cst_91 : f32 to vector<8x128xf32>
    %cst_92 = arith.constant 0.000000e+00 : f32
    %257 = vector.broadcast %cst_92 : f32 to vector<8x128xf32>
    %c0_93 = arith.constant 0 : index
    %c0_94 = arith.constant 0 : index
    %258 = vector.load %arg10[%c0_93, %c0_94] : memref<64x512xf32, #tpu.memory_space<vmem>>, vector<8x512xf32>
    %c0_95 = arith.constant 0 : index
    %c0_96 = arith.constant 0 : index
    %259 = vector.load %arg5[%c0_95, %c0_96] : memref<128x512xf32, #tpu.memory_space<vmem>>, vector<128x512xf32>
    %cst_97 = arith.constant dense<0.000000e+00> : vector<8x512xf32>
    %260 = tpu.matmul %256, %259, %cst_97 {dimension_numbers = #tpu.dot_dimension_numbers<[1], [0], [0], [1], [0, 0, 1, 1], [], []>} : vector<8x128xf32>, vector<128x512xf32>, vector<8x512xf32> -> vector<8x512xf32>
    %261 = arith.addf %258, %260 : vector<8x512xf32>
    %262 = vector.extract_strided_slice %261 {offsets = [0, 0], sizes = [8, 128], strides = [1, 1]} : vector<8x512xf32> to vector<8x128xf32>
    %263 = arith.negf %262 : vector<8x128xf32>
    %264 = math.exp %263 : vector<8x128xf32>
    %cst_98 = arith.constant 1.000000e+00 : f32
    %265 = vector.broadcast %cst_98 : f32 to vector<8x128xf32>
    %266 = arith.addf %265, %264 : vector<8x128xf32>
    %267 = arith.divf %265, %266 : vector<8x128xf32>
    %268 = vector.extract_strided_slice %261 {offsets = [0, 128], sizes = [8, 128], strides = [1, 1]} : vector<8x512xf32> to vector<8x128xf32>
    %269 = arith.negf %268 : vector<8x128xf32>
    %270 = math.exp %269 : vector<8x128xf32>
    %cst_99 = arith.constant 1.000000e+00 : f32
    %271 = vector.broadcast %cst_99 : f32 to vector<8x128xf32>
    %272 = arith.addf %271, %270 : vector<8x128xf32>
    %273 = arith.divf %271, %272 : vector<8x128xf32>
    %274 = vector.extract_strided_slice %261 {offsets = [0, 256], sizes = [8, 128], strides = [1, 1]} : vector<8x512xf32> to vector<8x128xf32>
    %275 = math.tanh %274 : vector<8x128xf32>
    %276 = vector.extract_strided_slice %261 {offsets = [0, 384], sizes = [8, 128], strides = [1, 1]} : vector<8x512xf32> to vector<8x128xf32>
    %277 = arith.negf %276 : vector<8x128xf32>
    %278 = math.exp %277 : vector<8x128xf32>
    %cst_100 = arith.constant 1.000000e+00 : f32
    %279 = vector.broadcast %cst_100 : f32 to vector<8x128xf32>
    %280 = arith.addf %279, %278 : vector<8x128xf32>
    %281 = arith.divf %279, %280 : vector<8x128xf32>
    %282 = arith.mulf %273, %257 : vector<8x128xf32>
    %283 = arith.mulf %267, %275 : vector<8x128xf32>
    %284 = arith.addf %282, %283 : vector<8x128xf32>
    %285 = math.tanh %284 : vector<8x128xf32>
    %286 = arith.mulf %281, %285 : vector<8x128xf32>
    %c0_101 = arith.constant 0 : index
    %c0_102 = arith.constant 0 : index
    %287 = vector.load %arg11[%c0_101, %c0_102] : memref<64x128xf32, #tpu.memory_space<vmem>>, vector<8x128xf32>
    tpu.vector_store %arg11[%c0_101, %c0_102], %286 {strides = array<i32>} : memref<64x128xf32, #tpu.memory_space<vmem>>, vector<8x128xf32>,
    %c8_103 = arith.constant 8 : index
    %c0_104 = arith.constant 0 : index
    %288 = vector.load %arg10[%c8_103, %c0_104] : memref<64x512xf32, #tpu.memory_space<vmem>>, vector<8x512xf32>
    %c0_105 = arith.constant 0 : index
    %c0_106 = arith.constant 0 : index
    %289 = vector.load %arg5[%c0_105, %c0_106] : memref<128x512xf32, #tpu.memory_space<vmem>>, vector<128x512xf32>
    %cst_107 = arith.constant dense<0.000000e+00> : vector<8x512xf32>
    %290 = tpu.matmul %286, %289, %cst_107 {dimension_numbers = #tpu.dot_dimension_numbers<[1], [0], [0], [1], [0, 0, 1, 1], [], []>} : vector<8x128xf32>, vector<128x512xf32>, vector<8x512xf32> -> vector<8x512xf32>
    %291 = arith.addf %288, %290 : vector<8x512xf32>
    %292 = vector.extract_strided_slice %291 {offsets = [0, 0], sizes = [8, 128], strides = [1, 1]} : vector<8x512xf32> to vector<8x128xf32>
    %293 = arith.negf %292 : vector<8x128xf32>
    %294 = math.exp %293 : vector<8x128xf32>
    %cst_108 = arith.constant 1.000000e+00 : f32
    %295 = vector.broadcast %cst_108 : f32 to vector<8x128xf32>
    %296 = arith.addf %295, %294 : vector<8x128xf32>
    %297 = arith.divf %295, %296 : vector<8x128xf32>
    %298 = vector.extract_strided_slice %291 {offsets = [0, 128], sizes = [8, 128], strides = [1, 1]} : vector<8x512xf32> to vector<8x128xf32>
    %299 = arith.negf %298 : vector<8x128xf32>
    %300 = math.exp %299 : vector<8x128xf32>
    %cst_109 = arith.constant 1.000000e+00 : f32
    %301 = vector.broadcast %cst_109 : f32 to vector<8x128xf32>
    %302 = arith.addf %301, %300 : vector<8x128xf32>
    %303 = arith.divf %301, %302 : vector<8x128xf32>
    %304 = vector.extract_strided_slice %291 {offsets = [0, 256], sizes = [8, 128], strides = [1, 1]} : vector<8x512xf32> to vector<8x128xf32>
    %305 = math.tanh %304 : vector<8x128xf32>
    %306 = vector.extract_strided_slice %291 {offsets = [0, 384], sizes = [8, 128], strides = [1, 1]} : vector<8x512xf32> to vector<8x128xf32>
    %307 = arith.negf %306 : vector<8x128xf32>
    %308 = math.exp %307 : vector<8x128xf32>
    %cst_110 = arith.constant 1.000000e+00 : f32
    %309 = vector.broadcast %cst_110 : f32 to vector<8x128xf32>
    %310 = arith.addf %309, %308 : vector<8x128xf32>
    %311 = arith.divf %309, %310 : vector<8x128xf32>
    %312 = arith.mulf %303, %284 : vector<8x128xf32>
    %313 = arith.mulf %297, %305 : vector<8x128xf32>
    %314 = arith.addf %312, %313 : vector<8x128xf32>
    %315 = math.tanh %314 : vector<8x128xf32>
    %316 = arith.mulf %311, %315 : vector<8x128xf32>
    %c8_111 = arith.constant 8 : index
    %c0_112 = arith.constant 0 : index
    %317 = vector.load %arg11[%c8_111, %c0_112] : memref<64x128xf32, #tpu.memory_space<vmem>>, vector<8x128xf32>
    tpu.vector_store %arg11[%c8_111, %c0_112], %316 {strides = array<i32>} : memref<64x128xf32, #tpu.memory_space<vmem>>, vector<8x128xf32>,
    %c16_113 = arith.constant 16 : index
    %c0_114 = arith.constant 0 : index
    %318 = vector.load %arg10[%c16_113, %c0_114] : memref<64x512xf32, #tpu.memory_space<vmem>>, vector<8x512xf32>
    %c0_115 = arith.constant 0 : index
    %c0_116 = arith.constant 0 : index
    %319 = vector.load %arg5[%c0_115, %c0_116] : memref<128x512xf32, #tpu.memory_space<vmem>>, vector<128x512xf32>
    %cst_117 = arith.constant dense<0.000000e+00> : vector<8x512xf32>
    %320 = tpu.matmul %316, %319, %cst_117 {dimension_numbers = #tpu.dot_dimension_numbers<[1], [0], [0], [1], [0, 0, 1, 1], [], []>} : vector<8x128xf32>, vector<128x512xf32>, vector<8x512xf32> -> vector<8x512xf32>
    %321 = arith.addf %318, %320 : vector<8x512xf32>
    %322 = vector.extract_strided_slice %321 {offsets = [0, 0], sizes = [8, 128], strides = [1, 1]} : vector<8x512xf32> to vector<8x128xf32>
    %323 = arith.negf %322 : vector<8x128xf32>
    %324 = math.exp %323 : vector<8x128xf32>
    %cst_118 = arith.constant 1.000000e+00 : f32
    %325 = vector.broadcast %cst_118 : f32 to vector<8x128xf32>
    %326 = arith.addf %325, %324 : vector<8x128xf32>
    %327 = arith.divf %325, %326 : vector<8x128xf32>
    %328 = vector.extract_strided_slice %321 {offsets = [0, 128], sizes = [8, 128], strides = [1, 1]} : vector<8x512xf32> to vector<8x128xf32>
    %329 = arith.negf %328 : vector<8x128xf32>
    %330 = math.exp %329 : vector<8x128xf32>
    %cst_119 = arith.constant 1.000000e+00 : f32
    %331 = vector.broadcast %cst_119 : f32 to vector<8x128xf32>
    %332 = arith.addf %331, %330 : vector<8x128xf32>
    %333 = arith.divf %331, %332 : vector<8x128xf32>
    %334 = vector.extract_strided_slice %321 {offsets = [0, 256], sizes = [8, 128], strides = [1, 1]} : vector<8x512xf32> to vector<8x128xf32>
    %335 = math.tanh %334 : vector<8x128xf32>
    %336 = vector.extract_strided_slice %321 {offsets = [0, 384], sizes = [8, 128], strides = [1, 1]} : vector<8x512xf32> to vector<8x128xf32>
    %337 = arith.negf %336 : vector<8x128xf32>
    %338 = math.exp %337 : vector<8x128xf32>
    %cst_120 = arith.constant 1.000000e+00 : f32
    %339 = vector.broadcast %cst_120 : f32 to vector<8x128xf32>
    %340 = arith.addf %339, %338 : vector<8x128xf32>
    %341 = arith.divf %339, %340 : vector<8x128xf32>
    %342 = arith.mulf %333, %314 : vector<8x128xf32>
    %343 = arith.mulf %327, %335 : vector<8x128xf32>
    %344 = arith.addf %342, %343 : vector<8x128xf32>
    %345 = math.tanh %344 : vector<8x128xf32>
    %346 = arith.mulf %341, %345 : vector<8x128xf32>
    %c16_121 = arith.constant 16 : index
    %c0_122 = arith.constant 0 : index
    %347 = vector.load %arg11[%c16_121, %c0_122] : memref<64x128xf32, #tpu.memory_space<vmem>>, vector<8x128xf32>
    tpu.vector_store %arg11[%c16_121, %c0_122], %346 {strides = array<i32>} : memref<64x128xf32, #tpu.memory_space<vmem>>, vector<8x128xf32>,
    %c24_123 = arith.constant 24 : index
    %c0_124 = arith.constant 0 : index
    %348 = vector.load %arg10[%c24_123, %c0_124] : memref<64x512xf32, #tpu.memory_space<vmem>>, vector<8x512xf32>
    %c0_125 = arith.constant 0 : index
    %c0_126 = arith.constant 0 : index
    %349 = vector.load %arg5[%c0_125, %c0_126] : memref<128x512xf32, #tpu.memory_space<vmem>>, vector<128x512xf32>
    %cst_127 = arith.constant dense<0.000000e+00> : vector<8x512xf32>
    %350 = tpu.matmul %346, %349, %cst_127 {dimension_numbers = #tpu.dot_dimension_numbers<[1], [0], [0], [1], [0, 0, 1, 1], [], []>} : vector<8x128xf32>, vector<128x512xf32>, vector<8x512xf32> -> vector<8x512xf32>
    %351 = arith.addf %348, %350 : vector<8x512xf32>
    %352 = vector.extract_strided_slice %351 {offsets = [0, 0], sizes = [8, 128], strides = [1, 1]} : vector<8x512xf32> to vector<8x128xf32>
    %353 = arith.negf %352 : vector<8x128xf32>
    %354 = math.exp %353 : vector<8x128xf32>
    %cst_128 = arith.constant 1.000000e+00 : f32
    %355 = vector.broadcast %cst_128 : f32 to vector<8x128xf32>
    %356 = arith.addf %355, %354 : vector<8x128xf32>
    %357 = arith.divf %355, %356 : vector<8x128xf32>
    %358 = vector.extract_strided_slice %351 {offsets = [0, 128], sizes = [8, 128], strides = [1, 1]} : vector<8x512xf32> to vector<8x128xf32>
    %359 = arith.negf %358 : vector<8x128xf32>
    %360 = math.exp %359 : vector<8x128xf32>
    %cst_129 = arith.constant 1.000000e+00 : f32
    %361 = vector.broadcast %cst_129 : f32 to vector<8x128xf32>
    %362 = arith.addf %361, %360 : vector<8x128xf32>
    %363 = arith.divf %361, %362 : vector<8x128xf32>
    %364 = vector.extract_strided_slice %351 {offsets = [0, 256], sizes = [8, 128], strides = [1, 1]} : vector<8x512xf32> to vector<8x128xf32>
    %365 = math.tanh %364 : vector<8x128xf32>
    %366 = vector.extract_strided_slice %351 {offsets = [0, 384], sizes = [8, 128], strides = [1, 1]} : vector<8x512xf32> to vector<8x128xf32>
    %367 = arith.negf %366 : vector<8x128xf32>
    %368 = math.exp %367 : vector<8x128xf32>
    %cst_130 = arith.constant 1.000000e+00 : f32
    %369 = vector.broadcast %cst_130 : f32 to vector<8x128xf32>
    %370 = arith.addf %369, %368 : vector<8x128xf32>
    %371 = arith.divf %369, %370 : vector<8x128xf32>
    %372 = arith.mulf %363, %344 : vector<8x128xf32>
    %373 = arith.mulf %357, %365 : vector<8x128xf32>
    %374 = arith.addf %372, %373 : vector<8x128xf32>
    %375 = math.tanh %374 : vector<8x128xf32>
    %376 = arith.mulf %371, %375 : vector<8x128xf32>
    %c24_131 = arith.constant 24 : index
    %c0_132 = arith.constant 0 : index
    %377 = vector.load %arg11[%c24_131, %c0_132] : memref<64x128xf32, #tpu.memory_space<vmem>>, vector<8x128xf32>
    tpu.vector_store %arg11[%c24_131, %c0_132], %376 {strides = array<i32>} : memref<64x128xf32, #tpu.memory_space<vmem>>, vector<8x128xf32>,
    %c32_133 = arith.constant 32 : index
    %c0_134 = arith.constant 0 : index
    %378 = vector.load %arg10[%c32_133, %c0_134] : memref<64x512xf32, #tpu.memory_space<vmem>>, vector<8x512xf32>
    %c0_135 = arith.constant 0 : index
    %c0_136 = arith.constant 0 : index
    %379 = vector.load %arg5[%c0_135, %c0_136] : memref<128x512xf32, #tpu.memory_space<vmem>>, vector<128x512xf32>
    %cst_137 = arith.constant dense<0.000000e+00> : vector<8x512xf32>
    %380 = tpu.matmul %376, %379, %cst_137 {dimension_numbers = #tpu.dot_dimension_numbers<[1], [0], [0], [1], [0, 0, 1, 1], [], []>} : vector<8x128xf32>, vector<128x512xf32>, vector<8x512xf32> -> vector<8x512xf32>
    %381 = arith.addf %378, %380 : vector<8x512xf32>
    %382 = vector.extract_strided_slice %381 {offsets = [0, 0], sizes = [8, 128], strides = [1, 1]} : vector<8x512xf32> to vector<8x128xf32>
    %383 = arith.negf %382 : vector<8x128xf32>
    %384 = math.exp %383 : vector<8x128xf32>
    %cst_138 = arith.constant 1.000000e+00 : f32
    %385 = vector.broadcast %cst_138 : f32 to vector<8x128xf32>
    %386 = arith.addf %385, %384 : vector<8x128xf32>
    %387 = arith.divf %385, %386 : vector<8x128xf32>
    %388 = vector.extract_strided_slice %381 {offsets = [0, 128], sizes = [8, 128], strides = [1, 1]} : vector<8x512xf32> to vector<8x128xf32>
    %389 = arith.negf %388 : vector<8x128xf32>
    %390 = math.exp %389 : vector<8x128xf32>
    %cst_139 = arith.constant 1.000000e+00 : f32
    %391 = vector.broadcast %cst_139 : f32 to vector<8x128xf32>
    %392 = arith.addf %391, %390 : vector<8x128xf32>
    %393 = arith.divf %391, %392 : vector<8x128xf32>
    %394 = vector.extract_strided_slice %381 {offsets = [0, 256], sizes = [8, 128], strides = [1, 1]} : vector<8x512xf32> to vector<8x128xf32>
    %395 = math.tanh %394 : vector<8x128xf32>
    %396 = vector.extract_strided_slice %381 {offsets = [0, 384], sizes = [8, 128], strides = [1, 1]} : vector<8x512xf32> to vector<8x128xf32>
    %397 = arith.negf %396 : vector<8x128xf32>
    %398 = math.exp %397 : vector<8x128xf32>
    %cst_140 = arith.constant 1.000000e+00 : f32
    %399 = vector.broadcast %cst_140 : f32 to vector<8x128xf32>
    %400 = arith.addf %399, %398 : vector<8x128xf32>
    %401 = arith.divf %399, %400 : vector<8x128xf32>
    %402 = arith.mulf %393, %374 : vector<8x128xf32>
    %403 = arith.mulf %387, %395 : vector<8x128xf32>
    %404 = arith.addf %402, %403 : vector<8x128xf32>
    %405 = math.tanh %404 : vector<8x128xf32>
    %406 = arith.mulf %401, %405 : vector<8x128xf32>
    %c32_141 = arith.constant 32 : index
    %c0_142 = arith.constant 0 : index
    %407 = vector.load %arg11[%c32_141, %c0_142] : memref<64x128xf32, #tpu.memory_space<vmem>>, vector<8x128xf32>
    tpu.vector_store %arg11[%c32_141, %c0_142], %406 {strides = array<i32>} : memref<64x128xf32, #tpu.memory_space<vmem>>, vector<8x128xf32>,
    %c40_143 = arith.constant 40 : index
    %c0_144 = arith.constant 0 : index
    %408 = vector.load %arg10[%c40_143, %c0_144] : memref<64x512xf32, #tpu.memory_space<vmem>>, vector<8x512xf32>
    %c0_145 = arith.constant 0 : index
    %c0_146 = arith.constant 0 : index
    %409 = vector.load %arg5[%c0_145, %c0_146] : memref<128x512xf32, #tpu.memory_space<vmem>>, vector<128x512xf32>
    %cst_147 = arith.constant dense<0.000000e+00> : vector<8x512xf32>
    %410 = tpu.matmul %406, %409, %cst_147 {dimension_numbers = #tpu.dot_dimension_numbers<[1], [0], [0], [1], [0, 0, 1, 1], [], []>} : vector<8x128xf32>, vector<128x512xf32>, vector<8x512xf32> -> vector<8x512xf32>
    %411 = arith.addf %408, %410 : vector<8x512xf32>
    %412 = vector.extract_strided_slice %411 {offsets = [0, 0], sizes = [8, 128], strides = [1, 1]} : vector<8x512xf32> to vector<8x128xf32>
    %413 = arith.negf %412 : vector<8x128xf32>
    %414 = math.exp %413 : vector<8x128xf32>
    %cst_148 = arith.constant 1.000000e+00 : f32
    %415 = vector.broadcast %cst_148 : f32 to vector<8x128xf32>
    %416 = arith.addf %415, %414 : vector<8x128xf32>
    %417 = arith.divf %415, %416 : vector<8x128xf32>
    %418 = vector.extract_strided_slice %411 {offsets = [0, 128], sizes = [8, 128], strides = [1, 1]} : vector<8x512xf32> to vector<8x128xf32>
    %419 = arith.negf %418 : vector<8x128xf32>
    %420 = math.exp %419 : vector<8x128xf32>
    %cst_149 = arith.constant 1.000000e+00 : f32
    %421 = vector.broadcast %cst_149 : f32 to vector<8x128xf32>
    %422 = arith.addf %421, %420 : vector<8x128xf32>
    %423 = arith.divf %421, %422 : vector<8x128xf32>
    %424 = vector.extract_strided_slice %411 {offsets = [0, 256], sizes = [8, 128], strides = [1, 1]} : vector<8x512xf32> to vector<8x128xf32>
    %425 = math.tanh %424 : vector<8x128xf32>
    %426 = vector.extract_strided_slice %411 {offsets = [0, 384], sizes = [8, 128], strides = [1, 1]} : vector<8x512xf32> to vector<8x128xf32>
    %427 = arith.negf %426 : vector<8x128xf32>
    %428 = math.exp %427 : vector<8x128xf32>
    %cst_150 = arith.constant 1.000000e+00 : f32
    %429 = vector.broadcast %cst_150 : f32 to vector<8x128xf32>
    %430 = arith.addf %429, %428 : vector<8x128xf32>
    %431 = arith.divf %429, %430 : vector<8x128xf32>
    %432 = arith.mulf %423, %404 : vector<8x128xf32>
    %433 = arith.mulf %417, %425 : vector<8x128xf32>
    %434 = arith.addf %432, %433 : vector<8x128xf32>
    %435 = math.tanh %434 : vector<8x128xf32>
    %436 = arith.mulf %431, %435 : vector<8x128xf32>
    %c40_151 = arith.constant 40 : index
    %c0_152 = arith.constant 0 : index
    %437 = vector.load %arg11[%c40_151, %c0_152] : memref<64x128xf32, #tpu.memory_space<vmem>>, vector<8x128xf32>
    tpu.vector_store %arg11[%c40_151, %c0_152], %436 {strides = array<i32>} : memref<64x128xf32, #tpu.memory_space<vmem>>, vector<8x128xf32>,
    %c48_153 = arith.constant 48 : index
    %c0_154 = arith.constant 0 : index
    %438 = vector.load %arg10[%c48_153, %c0_154] : memref<64x512xf32, #tpu.memory_space<vmem>>, vector<8x512xf32>
    %c0_155 = arith.constant 0 : index
    %c0_156 = arith.constant 0 : index
    %439 = vector.load %arg5[%c0_155, %c0_156] : memref<128x512xf32, #tpu.memory_space<vmem>>, vector<128x512xf32>
    %cst_157 = arith.constant dense<0.000000e+00> : vector<8x512xf32>
    %440 = tpu.matmul %436, %439, %cst_157 {dimension_numbers = #tpu.dot_dimension_numbers<[1], [0], [0], [1], [0, 0, 1, 1], [], []>} : vector<8x128xf32>, vector<128x512xf32>, vector<8x512xf32> -> vector<8x512xf32>
    %441 = arith.addf %438, %440 : vector<8x512xf32>
    %442 = vector.extract_strided_slice %441 {offsets = [0, 0], sizes = [8, 128], strides = [1, 1]} : vector<8x512xf32> to vector<8x128xf32>
    %443 = arith.negf %442 : vector<8x128xf32>
    %444 = math.exp %443 : vector<8x128xf32>
    %cst_158 = arith.constant 1.000000e+00 : f32
    %445 = vector.broadcast %cst_158 : f32 to vector<8x128xf32>
    %446 = arith.addf %445, %444 : vector<8x128xf32>
    %447 = arith.divf %445, %446 : vector<8x128xf32>
    %448 = vector.extract_strided_slice %441 {offsets = [0, 128], sizes = [8, 128], strides = [1, 1]} : vector<8x512xf32> to vector<8x128xf32>
    %449 = arith.negf %448 : vector<8x128xf32>
    %450 = math.exp %449 : vector<8x128xf32>
    %cst_159 = arith.constant 1.000000e+00 : f32
    %451 = vector.broadcast %cst_159 : f32 to vector<8x128xf32>
    %452 = arith.addf %451, %450 : vector<8x128xf32>
    %453 = arith.divf %451, %452 : vector<8x128xf32>
    %454 = vector.extract_strided_slice %441 {offsets = [0, 256], sizes = [8, 128], strides = [1, 1]} : vector<8x512xf32> to vector<8x128xf32>
    %455 = math.tanh %454 : vector<8x128xf32>
    %456 = vector.extract_strided_slice %441 {offsets = [0, 384], sizes = [8, 128], strides = [1, 1]} : vector<8x512xf32> to vector<8x128xf32>
    %457 = arith.negf %456 : vector<8x128xf32>
    %458 = math.exp %457 : vector<8x128xf32>
    %cst_160 = arith.constant 1.000000e+00 : f32
    %459 = vector.broadcast %cst_160 : f32 to vector<8x128xf32>
    %460 = arith.addf %459, %458 : vector<8x128xf32>
    %461 = arith.divf %459, %460 : vector<8x128xf32>
    %462 = arith.mulf %453, %434 : vector<8x128xf32>
    %463 = arith.mulf %447, %455 : vector<8x128xf32>
    %464 = arith.addf %462, %463 : vector<8x128xf32>
    %465 = math.tanh %464 : vector<8x128xf32>
    %466 = arith.mulf %461, %465 : vector<8x128xf32>
    %c48_161 = arith.constant 48 : index
    %c0_162 = arith.constant 0 : index
    %467 = vector.load %arg11[%c48_161, %c0_162] : memref<64x128xf32, #tpu.memory_space<vmem>>, vector<8x128xf32>
    tpu.vector_store %arg11[%c48_161, %c0_162], %466 {strides = array<i32>} : memref<64x128xf32, #tpu.memory_space<vmem>>, vector<8x128xf32>,
    %c56_163 = arith.constant 56 : index
    %c0_164 = arith.constant 0 : index
    %468 = vector.load %arg10[%c56_163, %c0_164] : memref<64x512xf32, #tpu.memory_space<vmem>>, vector<8x512xf32>
    %c0_165 = arith.constant 0 : index
    %c0_166 = arith.constant 0 : index
    %469 = vector.load %arg5[%c0_165, %c0_166] : memref<128x512xf32, #tpu.memory_space<vmem>>, vector<128x512xf32>
    %cst_167 = arith.constant dense<0.000000e+00> : vector<8x512xf32>
    %470 = tpu.matmul %466, %469, %cst_167 {dimension_numbers = #tpu.dot_dimension_numbers<[1], [0], [0], [1], [0, 0, 1, 1], [], []>} : vector<8x128xf32>, vector<128x512xf32>, vector<8x512xf32> -> vector<8x512xf32>
    %471 = arith.addf %468, %470 : vector<8x512xf32>
    %472 = vector.extract_strided_slice %471 {offsets = [0, 0], sizes = [8, 128], strides = [1, 1]} : vector<8x512xf32> to vector<8x128xf32>
    %473 = arith.negf %472 : vector<8x128xf32>
    %474 = math.exp %473 : vector<8x128xf32>
    %cst_168 = arith.constant 1.000000e+00 : f32
    %475 = vector.broadcast %cst_168 : f32 to vector<8x128xf32>
    %476 = arith.addf %475, %474 : vector<8x128xf32>
    %477 = arith.divf %475, %476 : vector<8x128xf32>
    %478 = vector.extract_strided_slice %471 {offsets = [0, 128], sizes = [8, 128], strides = [1, 1]} : vector<8x512xf32> to vector<8x128xf32>
    %479 = arith.negf %478 : vector<8x128xf32>
    %480 = math.exp %479 : vector<8x128xf32>
    %cst_169 = arith.constant 1.000000e+00 : f32
    %481 = vector.broadcast %cst_169 : f32 to vector<8x128xf32>
    %482 = arith.addf %481, %480 : vector<8x128xf32>
    %483 = arith.divf %481, %482 : vector<8x128xf32>
    %484 = vector.extract_strided_slice %471 {offsets = [0, 256], sizes = [8, 128], strides = [1, 1]} : vector<8x512xf32> to vector<8x128xf32>
    %485 = math.tanh %484 : vector<8x128xf32>
    %486 = vector.extract_strided_slice %471 {offsets = [0, 384], sizes = [8, 128], strides = [1, 1]} : vector<8x512xf32> to vector<8x128xf32>
    %487 = arith.negf %486 : vector<8x128xf32>
    %488 = math.exp %487 : vector<8x128xf32>
    %cst_170 = arith.constant 1.000000e+00 : f32
    %489 = vector.broadcast %cst_170 : f32 to vector<8x128xf32>
    %490 = arith.addf %489, %488 : vector<8x128xf32>
    %491 = arith.divf %489, %490 : vector<8x128xf32>
    %492 = arith.mulf %483, %464 : vector<8x128xf32>
    %493 = arith.mulf %477, %485 : vector<8x128xf32>
    %494 = arith.addf %492, %493 : vector<8x128xf32>
    %495 = math.tanh %494 : vector<8x128xf32>
    %496 = arith.mulf %491, %495 : vector<8x128xf32>
    %c56_171 = arith.constant 56 : index
    %c0_172 = arith.constant 0 : index
    %497 = vector.load %arg11[%c56_171, %c0_172] : memref<64x128xf32, #tpu.memory_space<vmem>>, vector<8x128xf32>
    tpu.vector_store %arg11[%c56_171, %c0_172], %496 {strides = array<i32>} : memref<64x128xf32, #tpu.memory_space<vmem>>, vector<8x128xf32>,
    %c0_173 = arith.constant 0 : index
    %c0_174 = arith.constant 0 : index
    %498 = vector.load %arg11[%c0_173, %c0_174] : memref<64x128xf32, #tpu.memory_space<vmem>>, vector<64x128xf32>
    %c0_175 = arith.constant 0 : index
    %c0_176 = arith.constant 0 : index
    %499 = vector.load %arg7[%c0_175, %c0_176] : memref<128x1xf32, #tpu.memory_space<vmem>>, vector<128x1xf32>
    %cst_177 = arith.constant dense<0.000000e+00> : vector<64x1xf32>
    %500 = tpu.matmul %498, %499, %cst_177 {dimension_numbers = #tpu.dot_dimension_numbers<[1], [0], [0], [1], [0, 0, 1, 1], [], []>} : vector<64x128xf32>, vector<128x1xf32>, vector<64x1xf32> -> vector<64x1xf32>
    %c0_178 = arith.constant 0 : index
    %c0_179 = arith.constant 0 : index
    %501 = vector.load %arg8[%c0_178, %c0_179] : memref<1x1xf32, #tpu.memory_space<vmem>>, vector<1x1xf32>
    %502 = vector.broadcast %501 : vector<1x1xf32> to vector<64x1xf32>
    %503 = arith.addf %500, %502 : vector<64x1xf32>
    %c0_180 = arith.constant 0 : index
    %c0_181 = arith.constant 0 : index
    %504 = vector.load %arg9[%c0_180, %c0_181] : memref<64x1xf32, #tpu.memory_space<vmem>>, vector<64x1xf32>
    tpu.vector_store %arg9[%c0_180, %c0_181], %503 {strides = array<i32>} : memref<64x1xf32, #tpu.memory_space<vmem>>, vector<64x1xf32>,
    return
  }
}

</mosaic_0001>

<bundles_post_ra>
// kernel: tpu_custom_call.1
= control target key start
LH: loop header
LB: loop body
LE: loop exit
PB: predicated region body
PF: predicated region fallthrough
CT: control target
= control target key end

     0   :  { %s7176_s0 = inlined_call_operand.vmem [shape: f32[64,8], index: 0, kind: input, shape index: {}]   ;;  %s7177_s1 = inlined_call_operand.vmem [shape: f32[8,512], index: 1, kind: input, shape index: {}]   ;;  %s7178_s2 = inlined_call_operand.hbm [shape: f32[128,512], index: 2, kind: input, shape index: {}]   ;;  %s7179_s3 = inlined_call_operand.vmem [shape: f32[1,512], index: 3, kind: input, shape index: {}]   ;;  %s7180_s4 = inlined_call_operand.hbm [shape: f32[128,512], index: 4, kind: input, shape index: {}]   ;;  %s7181_s5 = inlined_call_operand.hbm [shape: f32[128,512], index: 5, kind: input, shape index: {}]   ;;  %s7182_s6 = inlined_call_operand.vmem [shape: f32[1,512], index: 6, kind: input, shape index: {}]   ;;  %s7183_s7 = inlined_call_operand.vmem [shape: f32[128,1], index: 7, kind: input, shape index: {}]   ;;  %s7184_s8 = inlined_call_operand.<no memory space> [shape: f32[1,1], index: 8, kind: input, shape index: {}]   ;;  %s7185_s9 = inlined_call_operand.vmem [shape: f32[64,1], index: 9, kind: output, shape index: {}]  }
   0x1   :  { %v14_v0 = vstv %s7184_s8 }
   0x2   :  { %15 = vst [vmem:[#allocation4] sm:$0x1] %v14_v0 }
   0x3   :  { %16 = vsyncpa [#allocation6], 0 }
   0x4   :  { %17 = vsyncpa [#allocation8], 0  ;;  %s41_s13 = sshll.u32 %s7180_s4, 4  ;;  %s4563_s14 = smov [#allocation7]   ;;  %s42_s13 = int_to_ptr.hbm [resolvable:$true] %s41_s13 }
   0x5   :  { %s43_s15 = sshll.u32 %s4563_s14, 4  ;;  %s26_s18 = sshll.u32 %s7178_s2, 4  ;;  %s44_s15 = int_to_ptr.vmem [resolvable:$true] %s43_s15  ;;  %s27_s18 = int_to_ptr.hbm [resolvable:$true] %s26_s18 }
   0x6   :  { %s4564_s19 = smov 512   ;;  %s4565_s20 = smov 32  }
   0x7   :  { %49 = dma.hbm_to_vmem [thread:$0]  %s42_s13, 8192, %s44_s15, [#allocation8], %s4564_s19, %s4564_s19, %s4565_s20  }
   0x8   :  { %s4566_s8 = smov [#allocation5]   ;;  %s54_s24 = sshll.u32 %s7181_s5, 4  ;;  %s55_s24 = int_to_ptr.hbm [resolvable:$true] %s54_s24 }
   0x9   :  { %s28_s21 = sshll.u32 %s4566_s8, 4  ;;  %s4567_s4 = smov [#allocation9]   ;;  %s29_s21 = int_to_ptr.vmem [resolvable:$true] %s28_s21 }
   0xa   :  { %34 = dma.hbm_to_vmem [thread:$0]  %s27_s18, 8192, %s29_s21, [#allocation6], %s4564_s19, %s4564_s19, %s4565_s20  }
   0xb   :  { %s56_s25 = sshll.u32 %s4567_s4, 4  ;;  %s57_s25 = int_to_ptr.vmem [resolvable:$true] %s56_s25 }
   0xc   :  { %62 = dma.hbm_to_vmem [thread:$0]  %s55_s24, 8192, %s57_s25, [#allocation8], %s4564_s19, %s4564_s19, %s4565_s20  }
   0xd   :  { %4559 = dma.done.wait [#allocation6], 8192  }
   0xe   :  { %4560 = vsyncadd [#allocation6], 4294959104 }
   0xf   :  { %4561 = dma.done.wait [#allocation8], 16384  }
  0x10   :  { %4562 = vsyncadd [#allocation8], 4294950912  ;;  %vm103_vm0 = vcmask 64512   ;;  %v89_v1 = vld [vmem:[%s7177_s1] sm:$0xff]  ;;  %v91_v2 = vld [vmem:[%s7177_s1 + $0x10] sm:$0xff] }
  0x11   :  { %v4640_v3 = vld [vmem:[%s7176_s0 + $0x20] sm:$0xff]  ;;  %4222 = vmatpush.msra.mxu1 %v89_v1  ;;  %4223 = vmatpush.msra.mxu3 %v89_v1  ;;  %v4645_v4 = vld [vmem:[%s7176_s0 + $0x28] sm:$0xff]  ;;  %v92_v6 = vld [vmem:[%s7177_s1 + $0x18] sm:$0xff] }
  0x12   :  { %v4650_v5 = vld [vmem:[%s7176_s0] sm:$0xff]  ;;  %225 = vmatpush.msra.mxu2 %v91_v2  ;;  %4146 = vmatmul.msk.f32.vlgmr.msra.gmra.mxu1 %vm103_vm0, %v4640_v3  ;;  %v90_v7 = vld [vmem:[%s7177_s1 + $0x8] sm:$0xff]  ;;  %v4685_v14 = vld [vmem:[%s7176_s0 + $0x30] sm:$0xff] }
  0x13   :  { %4147 = vmatmul.msk.f32.vlgmr.msra.gmra.mxu3 %vm103_vm0, %v4645_v4  ;;  %4158 = vmatmul.msk.f32.vlgmr.msra.gmra.mxu2 %vm103_vm0, %v4650_v5  ;;  %v4664_v8 = vld [vmem:[#allocation5 + $0x1e0] sm:$0xff]  ;;  %v4669_v10 = vld [vmem:[#allocation5 + $0x1e8] sm:$0xff]  ;;  %v4679_v13 = vld [vmem:[#allocation5 + $0x1f8] sm:$0xff] }
  0x14   :  { %266 = vmatpush.msrb.mxu3 %v92_v6  ;;  %184 = vmatpush.msrb.mxu1 %v90_v7  ;;  %v4666_v9 = vld [vmem:[#allocation5 + $0x1c0] sm:$0xff]  ;;  %v4674_v12 = vld [vmem:[#allocation5 + $0x1c8] sm:$0xff]  ;;  %v4694_v16 = vld [vmem:[#allocation5 + $0x1d8] sm:$0xff] }
  0x15   :  { %392 = vmatpush.msrb.mxu2 %v4664_v8  ;;  %143 = vmatpush.msra.mxu0 %v89_v1  ;;  %v4671_v11 = vld [vmem:[#allocation5 + $0x1a0] sm:$0xff]  ;;  %v4699_v18 = vld [vmem:[#allocation5 + $0x1a8] sm:$0xff]  ;;  %v4705_v19 = vld [vmem:[#allocation5 + $0x1b8] sm:$0xff] }
  0x16   :  { %412 = vmatpush.msra.mxu1 %v4669_v10  ;;  %4142 = vmatmul.msk.f32.vlgmr.msra.gmra.mxu0 %vm103_vm0, %v4650_v5  ;;  %v4690_v15 = vld [vmem:[%s7176_s0 + $0x8] sm:$0xff]  ;;  %v4715_v22 = vld [vmem:[#allocation5 + $0x198] sm:$0xff]  ;;  %v4734_v28 = vld [vmem:[%s7176_s0 + $0x10] sm:$0xff] }
  0x17   :  { %393 = vmatpush.msrb.mxu2 %v4666_v9  ;;  %608 = vmatpush.msrb.mxu0 %v4664_v8  ;;  %v4697_v17 = vld [vmem:[#allocation5 + $0x180] sm:$0xff]  ;;  %v4711_v21 = vld [vmem:[#allocation5 + $0x188] sm:$0xff]  ;;  %v4722_v25 = vld [vmem:[#allocation5 + $0x178] sm:$0xff] }
  0x18   :  { %413 = vmatpush.msra.mxu1 %v4674_v12  ;;  %452 = vmatpush.msra.mxu3 %v4679_v13  ;;  %v372_v20 = vld [vmem:[#allocation5 + $0x160] sm:$0xff]  ;;  %v4718_v24 = vld [vmem:[#allocation5 + $0x168] sm:$0xff]  ;;  %v4729_v27 = vld [vmem:[%s7176_s0 + $0x38] sm:$0xff] }
  0x19   :  { %394 = vmatpush.msrb.mxu2 %v4671_v11  ;;  %609 = vmatpush.msrb.mxu0 %v4666_v9  ;;  %v368_v23 = vld [vmem:[#allocation5 + $0x140] sm:$0xff]  ;;  %v4737_v30 = vld [vmem:[#allocation5 + $0x148] sm:$0xff]  ;;  %v4744_v31 = vld [vmem:[#allocation5 + $0x158] sm:$0xff] }
  0x1a   :  { %4150 = vmatmul.msk.f32.vlgmr.msrb.gmra.mxu1 %vm103_vm0, %v4650_v5  ;;  %453 = vmatpush.msra.mxu3 %v4694_v16  ;;  %v364_v26 = vld [vmem:[#allocation5 + $0x120] sm:$0xff]  ;;  %v4750_v33 = vld [vmem:[#allocation5 + $0x128] sm:$0xff]  ;;  %v4753_v34 = vld [vmem:[#allocation5 + $0x138] sm:$0xff] }
  0x1b   :  { %4148 = vmatmul.msk.f32.gmra.mxu3 %vm103_vm0, %v4685_v14  ;;  %4159 = vmatmul.msk.f32.gmra.mxu2 %vm103_vm0, %v4690_v15  ;;  %v360_v29 = vld [vmem:[#allocation5 + $0x100] sm:$0xff]  ;;  %v4756_v36 = vld [vmem:[#allocation5 + $0x108] sm:$0xff]  ;;  %v4759_v37 = vld [vmem:[#allocation5 + $0x118] sm:$0xff] }
  0x1c   :  { %395 = vmatpush.msrb.mxu2 %v4697_v17  ;;  %414 = vmatpush.msra.mxu1 %v4699_v18  ;;  %v356_v32 = vld [vmem:[#allocation5 + $0xe0] sm:$0xff]  ;;  %v4765_v39 = vld [vmem:[%s7176_s0 + $0x18] sm:$0xff]  ;;  %v4768_v41 = vld [vmem:[#allocation5 + $0xe8] sm:$0xff] }
  0x1d   :  { %454 = vmatpush.msra.mxu3 %v4705_v19  ;;  %610 = vmatpush.msrb.mxu0 %v4671_v11  ;;  %v352_v35 = vld [vmem:[#allocation5 + $0xc0] sm:$0xff]  ;;  %v4777_v43 = vld [vmem:[#allocation5 + $0xc8] sm:$0xff]  ;;  %v4779_v44 = vld [vmem:[#allocation5 + $0xf8] sm:$0xff] }
  0x1e   :  { %396 = vmatpush.msrb.mxu2 %v372_v20  ;;  %415 = vmatpush.msra.mxu1 %v4711_v21  ;;  %v348_v38 = vld [vmem:[#allocation5 + $0xa0] sm:$0xff]  ;;  %v4782_v45 = vld [vmem:[#allocation5 + $0xd8] sm:$0xff]  ;;  %v4785_v47 = vld [vmem:[#allocation5 + $0xa8] sm:$0xff] }
  0x1f   :  { %455 = vmatpush.msra.mxu3 %v4715_v22  ;;  %611 = vmatpush.msrb.mxu0 %v4697_v17  ;;  %v344_v40 = vld [vmem:[#allocation5 + $0x80] sm:$0xff]  ;;  %v4796_v50 = vld [vmem:[#allocation5 + $0x88] sm:$0xff]  ;;  %v4801_v51 = vld [vmem:[#allocation5 + $0x1f0] sm:$0xff] }
  0x20   :  { %397 = vmatpush.msrb.mxu2 %v368_v23  ;;  %416 = vmatpush.msra.mxu1 %v4718_v24  ;;  %v340_v42 = vld [vmem:[#allocation5 + $0x60] sm:$0xff]  ;;  %v4807_v52 = vld [vmem:[#allocation5 + $0xb8] sm:$0xff]  ;;  %v4809_v53 = vld [vmem:[#allocation5 + $0x68] sm:$0xff] }
  0x21   :  { %456 = vmatpush.msra.mxu3 %v4722_v25  ;;  %4143 = vmatmul.msk.f32.gmra.mxu0 %vm103_vm0, %v4690_v15  ;;  %v336_v46 = vld [vmem:[#allocation5 + $0x40] sm:$0xff]  ;;  %v4812_v54 = vld [vmem:[#allocation5 + $0x1d0] sm:$0xff]  ;;  %v4815_v55 = vld [vmem:[#allocation5 + $0x98] sm:$0xff] }
  0x22   :  { %4151 = vmatmul.msk.f32.gmra.mxu1 %vm103_vm0, %v4690_v15  ;;  %398 = vmatpush.msrb.mxu2 %v364_v26  ;;  %v4788_v48 = vld [vmem:[#allocation5 + $0x20] sm:$0xff]  ;;  %v4819_v56 = vld [vmem:[#allocation5 + $0x48] sm:$0xff]  ;;  %v4821_v57 = vld [vmem:[#allocation5 + $0x1b0] sm:$0xff] }
  0x23   :  { %4149 = vmatmul.msk.f32.gmra.mxu3 %vm103_vm0, %v4729_v27  ;;  %4160 = vmatmul.msk.f32.gmra.mxu2 %vm103_vm0, %v4734_v28  ;;  %v4794_v49 = vld [vmem:[#allocation5] sm:$0xff]  ;;  %v4828_v58 = vld [vmem:[#allocation5 + $0x190] sm:$0xff]  ;;  %v4830_v59 = vld [vmem:[#allocation5 + $0x28] sm:$0xff] }
  0x24   :  { %399 = vmatpush.msrb.mxu2 %v360_v29  ;;  %417 = vmatpush.msra.mxu1 %v4737_v30  ;;  %v4840_v60 = vld [vmem:[#allocation5 + $0x170] sm:$0xff]  ;;  %v4842_v61 = vld [vmem:[#allocation5 + $0x8] sm:$0xff]  ;;  %v4844_v62 = vld [vmem:[#allocation5 + $0x78] sm:$0xff] }
  0x25   :  { %457 = vmatpush.msra.mxu3 %v4744_v31  ;;  %612 = vmatpush.msrb.mxu0 %v372_v20  ;;  %v4848_v63 = vld [vmem:[#allocation5 + $0x58] sm:$0xff]  ;;  %v4850_v0 = vld [vmem:[#allocation5 + $0x150] sm:$0xff] }
  0x26   :  { %400 = vmatpush.msrb.mxu2 %v356_v32  ;;  %418 = vmatpush.msra.mxu1 %v4750_v33  ;;  %v4855_v1 = vld [vmem:[#allocation5 + $0x130] sm:$0xff]  ;;  %v4872_v6 = vld [vmem:[#allocation5 + $0x38] sm:$0xff] }
  0x27   :  { %458 = vmatpush.msra.mxu3 %v4753_v34  ;;  %613 = vmatpush.msrb.mxu0 %v368_v23  ;;  %v4860_v2 = vld [vmem:[#allocation5 + $0x110] sm:$0xff]  ;;  %v4874_v7 = vld [vmem:[#allocation5 + $0x18] sm:$0xff] }
  0x28   :  { %401 = vmatpush.msrb.mxu2 %v352_v35  ;;  %419 = vmatpush.msra.mxu1 %v4756_v36  ;;  %v4884_v20 = vld [vmem:[#allocation5 + $0xb0] sm:$0xff] }
  0x29   :  { %459 = vmatpush.msra.mxu3 %v4759_v37  ;;  %614 = vmatpush.msrb.mxu0 %v364_v26  ;;  %v4890_v23 = vld [vmem:[#allocation5 + $0x90] sm:$0xff] }
  0x2a   :  { %4152 = vmatmul.msk.f32.gmra.mxu1 %vm103_vm0, %v4734_v28  ;;  %402 = vmatpush.msrb.mxu2 %v348_v38  ;;  %v4901_v26 = vld [vmem:[#allocation5 + $0x70] sm:$0xff] }
  0x2b   :  { %4161 = vmatmul.msk.f32.gmra.mxu2 %vm103_vm0, %v4765_v39  ;;  %4166 = vmatmul.msk.f32.vlgmr.msrb.gmra.mxu3 %vm103_vm0, %v4650_v5  ;;  %v4870_v5 = vld [vmem:[#allocation5 + $0xf0] sm:$0xff] }
  0x2c   :  { %403 = vmatpush.msrb.mxu2 %v344_v40  ;;  %420 = vmatpush.msra.mxu1 %v4768_v41 }
  0x2d   :  { %460 = vmatpush.msra.mxu3 %v4779_v44  ;;  %615 = vmatpush.msrb.mxu0 %v360_v29  ;;  %v4911_v29 = vld [vmem:[#allocation5 + $0x30] sm:$0xff] }
  0x2e   :  { %404 = vmatpush.msrb.mxu2 %v340_v42  ;;  %421 = vmatpush.msra.mxu1 %v4777_v43 }
  0x2f   :  { %461 = vmatpush.msra.mxu3 %v4782_v45  ;;  %4144 = vmatmul.msk.f32.gmra.mxu0 %vm103_vm0, %v4734_v28 }
  0x30   :  { %405 = vmatpush.msrb.mxu2 %v336_v46  ;;  %422 = vmatpush.msra.mxu1 %v4785_v47 }
  0x31   :  { %616 = vmatpush.msrb.mxu0 %v356_v32  ;;  %462 = vmatpush.msra.mxu3 %v4807_v52 }
  0x32   :  { %4153 = vmatmul.msk.f32.gmra.mxu1 %vm103_vm0, %v4765_v39  ;;  %406 = vmatpush.msrb.mxu2 %v4788_v48 }
  0x33   :  { %4162 = vmatmul.msk.f32.gmra.mxu2 %vm103_vm0, %v4640_v3  ;;  %4167 = vmatmul.msk.f32.gmra.mxu3 %vm103_vm0, %v4690_v15  ;;  %v4878_v15 = vld [vmem:[#allocation5 + $0xd0] sm:$0xff] }
  0x34   :  { %407 = vmatpush.msrb.mxu2 %v4794_v49  ;;  %423 = vmatpush.msra.mxu1 %v4796_v50 }
  0x35   :  { %617 = vmatpush.msrb.mxu0 %v352_v35  ;;  %463 = vmatpush.msra.mxu3 %v4815_v55 }
  0x36   :  { %432 = vmatpush.msra.mxu2 %v4801_v51  ;;  %424 = vmatpush.msra.mxu1 %v4809_v53 }
  0x37   :  { %618 = vmatpush.msrb.mxu0 %v348_v38  ;;  %464 = vmatpush.msra.mxu3 %v4844_v62 }
  0x38   :  { %433 = vmatpush.msra.mxu2 %v4812_v54  ;;  %425 = vmatpush.msra.mxu1 %v4819_v56 }
  0x39   :  { %4145 = vmatmul.msk.f32.gmra.mxu0 %vm103_vm0, %v4765_v39  ;;  %465 = vmatpush.msra.mxu3 %v4848_v63 }
  0x3a   :  { %434 = vmatpush.msra.mxu2 %v4821_v57  ;;  %4154 = vmatmul.msk.f32.gmra.mxu1 %vm103_vm0, %v4640_v3 }
  0x3b   :  { %619 = vmatpush.msrb.mxu0 %v344_v40  ;;  %4163 = vmatmul.msk.f32.gmra.mxu2 %vm103_vm0, %v4645_v4 }
  0x3c   :  { %4168 = vmatmul.msk.f32.gmra.mxu3 %vm103_vm0, %v4734_v28  ;;  %435 = vmatpush.msra.mxu2 %v4828_v58  ;;  %v4905_v28 = vld [vmem:[#allocation5 + $0x50] sm:$0xff] }
  0x3d   :  { %426 = vmatpush.msra.mxu1 %v4830_v59  ;;  %620 = vmatpush.msrb.mxu0 %v340_v42 }
  0x3e   :  { %436 = vmatpush.msra.mxu2 %v4840_v60  ;;  %466 = vmatpush.msra.mxu3 %v4872_v6 }
  0x3f   :  { %427 = vmatpush.msra.mxu1 %v4842_v61  ;;  %621 = vmatpush.msrb.mxu0 %v336_v46 }
  0x40   :  { %437 = vmatpush.msra.mxu2 %v4850_v0  ;;  %467 = vmatpush.msra.mxu3 %v4874_v7 }
  0x41   :  { %628 = vmatpush.msrb.mxu1 %v4669_v10  ;;  %622 = vmatpush.msrb.mxu0 %v4788_v48 }
  0x42   :  { %4155 = vmatmul.msk.f32.gmra.mxu1 %vm103_vm0, %v4645_v4  ;;  %438 = vmatpush.msra.mxu2 %v4855_v1 }
  0x43   :  { %629 = vmatpush.msrb.mxu1 %v4674_v12  ;;  %4164 = vmatmul.msk.f32.gmra.mxu2 %vm103_vm0, %v4685_v14 }
  0x44   :  { %4169 = vmatmul.msk.f32.gmra.mxu3 %vm103_vm0, %v4765_v39  ;;  %439 = vmatpush.msra.mxu2 %v4860_v2 }
  0x45   :  { %630 = vmatpush.msrb.mxu1 %v4699_v18  ;;  %668 = vmatpush.msrb.mxu3 %v4679_v13 }
  0x46   :  { %440 = vmatpush.msra.mxu2 %v4870_v5  ;;  %623 = vmatpush.msrb.mxu0 %v4794_v49 }
  0x47   :  { %631 = vmatpush.msrb.mxu1 %v4711_v21  ;;  %669 = vmatpush.msrb.mxu3 %v4694_v16 }
  0x48   :  { %441 = vmatpush.msra.mxu2 %v4878_v15  ;;  %824 = vmatpush.msra.mxu0 %v4664_v8  ;;  %v7186_v8 = vmov 0.0  }
  0x49   :  { %632 = vmatpush.msrb.mxu1 %v4718_v24  ;;  %670 = vmatpush.msrb.mxu3 %v4705_v19 }
  0x4a   :  { %4156 = vmatmul.msk.f32.gmra.mxu1 %vm103_vm0, %v4685_v14  ;;  %442 = vmatpush.msra.mxu2 %v4884_v20 }
  0x4b   :  { %4165 = vmatmul.msk.f32.gmra.mxu2 %vm103_vm0, %v4729_v27  ;;  %633 = vmatpush.msrb.mxu1 %v4737_v30 }
  0x4c   :  { %4170 = vmatmul.msk.f32.gmra.mxu3 %vm103_vm0, %v4640_v3  ;;  %443 = vmatpush.msra.mxu2 %v4890_v23  ;;  %v4917_v3 = vld [vmem:[#allocation5 + $0x10] sm:$0xff] }
  0x4d   :  { %671 = vmatpush.msrb.mxu3 %v4715_v22  ;;  %634 = vmatpush.msrb.mxu1 %v4750_v33 }
  0x4e   :  { %444 = vmatpush.msra.mxu2 %v4901_v26  ;;  %825 = vmatpush.msra.mxu0 %v4666_v9 }
  0x4f   :  { %672 = vmatpush.msrb.mxu3 %v4722_v25  ;;  %635 = vmatpush.msrb.mxu1 %v4756_v36 }
  0x50   :  { %445 = vmatpush.msra.mxu2 %v4905_v28  ;;  %826 = vmatpush.msra.mxu0 %v4671_v11 }
  0x51   :  { %673 = vmatpush.msrb.mxu3 %v4744_v31  ;;  %636 = vmatpush.msrb.mxu1 %v4768_v41 }
  0x52   :  { %4157 = vmatmul.msk.f32.gmra.mxu1 %vm103_vm0, %v4729_v27  ;;  %446 = vmatpush.msra.mxu2 %v4911_v29 }
  0x53   :  { %408 = vmatmul.f32.vlgmr.msrb.gmra.mxu2 %v7186_v8  ;;  %674 = vmatpush.msrb.mxu3 %v4753_v34 }
  0x54   :  { %4171 = vmatmul.msk.f32.gmra.mxu3 %vm103_vm0, %v4645_v4  ;;  %447 = vmatpush.msra.mxu2 %v4917_v3 }
  0x55   :  { %827 = vmatpush.msra.mxu0 %v4697_v17  ;;  %637 = vmatpush.msrb.mxu1 %v4777_v43 }
  0x56   :  { %648 = vmatpush.msrb.mxu2 %v4801_v51  ;;  %675 = vmatpush.msrb.mxu3 %v4759_v37 }
  0x57   :  { %638 = vmatpush.msrb.mxu1 %v4785_v47 }
  0x58   :  { %649 = vmatpush.msrb.mxu2 %v4812_v54  ;;  %676 = vmatpush.msrb.mxu3 %v4779_v44 }
  0x59   :  { %639 = vmatpush.msrb.mxu1 %v4796_v50 }
  0x5a   :  { %650 = vmatpush.msrb.mxu2 %v4821_v57  ;;  %428 = vmatmul.f32.vlgmr.msra.gmra.mxu1 %v7186_v8 }
  0x5b   :  { %448 = vmatmul.f32.vlgmr.msra.gmra.mxu2 %v7186_v8  ;;  %677 = vmatpush.msrb.mxu3 %v4782_v45 }
  0x5c   :  { %4172 = vmatmul.msk.f32.gmra.mxu3 %vm103_vm0, %v4685_v14  ;;  %651 = vmatpush.msrb.mxu2 %v4828_v58 }
  0x5d   :  { %678 = vmatpush.msrb.mxu3 %v4807_v52  ;;  %640 = vmatpush.msrb.mxu1 %v4809_v53 }
  0x5e   :  { %652 = vmatpush.msrb.mxu2 %v4840_v60 }
  0x5f   :  { %679 = vmatpush.msrb.mxu3 %v4815_v55  ;;  %641 = vmatpush.msrb.mxu1 %v4819_v56 }
  0x60   :  { %653 = vmatpush.msrb.mxu2 %v4850_v0 }
  0x61   :  { %680 = vmatpush.msrb.mxu3 %v4844_v62  ;;  %642 = vmatpush.msrb.mxu1 %v4830_v59 }
  0x62   :  { %654 = vmatpush.msrb.mxu2 %v4855_v1 }
  0x63   :  { %681 = vmatpush.msrb.mxu3 %v4848_v63  ;;  %643 = vmatpush.msrb.mxu1 %v4842_v61 }
  0x64   :  { %4173 = vmatmul.msk.f32.gmra.mxu3 %vm103_vm0, %v4729_v27  ;;  %655 = vmatpush.msrb.mxu2 %v4860_v2 }
  0x65   :  { %682 = vmatpush.msrb.mxu3 %v4872_v6  ;;  %844 = vmatpush.msra.mxu1 %v4669_v10 }
  0x66   :  { %656 = vmatpush.msrb.mxu2 %v4870_v5 }
  0x67   :  { %683 = vmatpush.msrb.mxu3 %v4874_v7  ;;  %845 = vmatpush.msra.mxu1 %v4674_v12 }
  0x68   :  { %657 = vmatpush.msrb.mxu2 %v4878_v15 }
  0x69   :  { %846 = vmatpush.msra.mxu1 %v4699_v18 }
  0x6a   :  { %658 = vmatpush.msrb.mxu2 %v4884_v20 }
  0x6b   :  { %847 = vmatpush.msra.mxu1 %v4711_v21 }
  0x6c   :  { %468 = vmatmul.f32.vlgmr.msra.gmra.mxu3 %v7186_v8  ;;  %659 = vmatpush.msrb.mxu2 %v4890_v23 }
  0x6d   :  { %884 = vmatpush.msra.mxu3 %v4679_v13  ;;  %848 = vmatpush.msra.mxu1 %v4718_v24 }
  0x6e   :  { %660 = vmatpush.msrb.mxu2 %v4901_v26 }
  0x6f   :  { %885 = vmatpush.msra.mxu3 %v4694_v16  ;;  %849 = vmatpush.msra.mxu1 %v4737_v30 }
  0x70   :  { %661 = vmatpush.msrb.mxu2 %v4905_v28 }
  0x71   :  { %886 = vmatpush.msra.mxu3 %v4705_v19  ;;  %850 = vmatpush.msra.mxu1 %v4750_v33 }
  0x72   :  { %662 = vmatpush.msrb.mxu2 %v4911_v29 }
  0x73   :  { %887 = vmatpush.msra.mxu3 %v4715_v22  ;;  %851 = vmatpush.msra.mxu1 %v4756_v36  ;;  %v93_v36 = vld [vmem:[%s7179_s3] sm:$0xf] }
  0x74   :  { %663 = vmatpush.msrb.mxu2 %v4917_v3  ;;  %v5068_v42 = vperm.slane %v93_v36, 1 }
  0x75   :  { %888 = vmatpush.msra.mxu3 %v4722_v25  ;;  %852 = vmatpush.msra.mxu1 %v4768_v41  ;;  %v5066_v41 = vperm.slane %v93_v36, 0 }
  0x76   :  { %864 = vmatpush.msra.mxu2 %v4801_v51  ;;  %7333 = vst [vmem:[#allocation29_spill] sm:$0xff] %v5068_v42 }
  0x77   :  { %889 = vmatpush.msra.mxu3 %v4744_v31  ;;  %853 = vmatpush.msra.mxu1 %v4777_v43  ;;  %7332 = vst [vmem:[#allocation28_spill] sm:$0xff] %v5066_v41 }
  0x78   :  { %865 = vmatpush.msra.mxu2 %v4812_v54 }
  0x79   :  { %890 = vmatpush.msra.mxu3 %v4753_v34  ;;  %854 = vmatpush.msra.mxu1 %v4785_v47 }
  0x7a   :  { %866 = vmatpush.msra.mxu2 %v4821_v57 }
  0x7b   :  { %891 = vmatpush.msra.mxu3 %v4759_v37  ;;  %855 = vmatpush.msra.mxu1 %v4796_v50 }
  0x7c   :  { %867 = vmatpush.msra.mxu2 %v4828_v58  ;;  %v5078_v58 = vperm.slane %v93_v36, 3 }
  0x7d   :  { %892 = vmatpush.msra.mxu3 %v4779_v44  ;;  %856 = vmatpush.msra.mxu1 %v4809_v53 }
  0x7e   :  { %868 = vmatpush.msra.mxu2 %v4840_v60  ;;  %7337 = vst [vmem:[#allocation33_spill] sm:$0xff] %v5078_v58 }
  0x7f   :  { %893 = vmatpush.msra.mxu3 %v4782_v45  ;;  %857 = vmatpush.msra.mxu1 %v4819_v56 }
  0x80   :  { %869 = vmatpush.msra.mxu2 %v4850_v0 }
  0x81   :  { %894 = vmatpush.msra.mxu3 %v4807_v52  ;;  %858 = vmatpush.msra.mxu1 %v4830_v59 }
  0x82   :  { %870 = vmatpush.msra.mxu2 %v4855_v1 }
  0x83   :  { %895 = vmatpush.msra.mxu3 %v4815_v55  ;;  %859 = vmatpush.msra.mxu1 %v4842_v61 }
  0x84   :  { %871 = vmatpush.msra.mxu2 %v4860_v2 }
  0x85   :  { %896 = vmatpush.msra.mxu3 %v4844_v62 }
  0x86   :  { %872 = vmatpush.msra.mxu2 %v4870_v5  ;;  %v5081_v5 = vperm.slane %v93_v36, 2  ;;  %v5115_v36 = vld [vmem:[#allocation5 + $0xe0] sm:$0xff] }
  0x87   :  { %897 = vmatpush.msra.mxu3 %v4848_v63 }
  0x88   :  { %873 = vmatpush.msra.mxu2 %v4878_v15  ;;  %7338 = vst [vmem:[#allocation34_spill] sm:$0xff] %v5081_v5 }
  0x89   :  { %898 = vmatpush.msra.mxu3 %v4872_v6 }
  0x8a   :  { %874 = vmatpush.msra.mxu2 %v4884_v20 }
  0x8b   :  { %899 = vmatpush.msra.mxu3 %v4874_v7 }
  0x8c   :  { %875 = vmatpush.msra.mxu2 %v4890_v23 }
  0x8e   :  { %876 = vmatpush.msra.mxu2 %v4901_v26 }
  0x8f   :  { %v5016_v4 = vpop.f32.mrf.mxu1 }
  0x90   :  { %7316 = vst [vmem:[#allocation12_spill] sm:$0xff] %v5016_v4  ;;  %877 = vmatpush.msra.mxu2 %v4905_v28 }
  0x92   :  { %878 = vmatpush.msra.mxu2 %v4911_v29 }
  0x93   :  { %v145_v40 = vpop.f32.mrf.mxu0 }
  0x94   :  { %879 = vmatpush.msra.mxu2 %v4917_v3  ;;  %v146_v43 = vadd.f32 %v145_v40, %v5066_v41 }
  0x96   :  { %v5021_v9 = vpop.f32.mrf.mxu3  ;;  %v227_v10 = vpop.f32.mrf.mxu2 }
  0x97   :  { %7317 = vst [vmem:[#allocation13_spill] sm:$0xff] %v5021_v9  ;;  %v186_v11 = vpop.f32.mrf.mxu1  ;;  %v228_v26 = vadd.f32 %v227_v10, %v5081_v5 }
  0x98   :  { %v187_v44 = vadd.f32 %v186_v11, %v5068_v42 }
  0x9e   :  { %v5023_v12 = vpop.f32.mrf.mxu3  ;;  %v5025_v13 = vpop.f32.mrf.mxu2 }
  0x9f   :  { %7318 = vst [vmem:[#allocation14_spill] sm:$0xff] %v5023_v12  ;;  %v5027_v14 = vpop.f32.mrf.mxu1  ;;  %v5248_v12 = vld [vmem:[#allocation5 + $0xf8] sm:$0xff] }
  0xa6   :  { %v5029_v16 = vpop.f32.mrf.mxu3  ;;  %v5031_v17 = vpop.f32.mrf.mxu2 }
  0xa7   :  { %7319 = vst [vmem:[#allocation15_spill] sm:$0xff] %v5029_v16  ;;  %v5033_v18 = vpop.f32.mrf.mxu1  ;;  %v5228_v16 = vld [vmem:[#allocation5 + $0x138] sm:$0xff] }
  0xa8   :  { %7353 = vst [vmem:[#allocation47_spill] sm:$0xff] %v5228_v16 }
  0xae   :  { %v5035_v19 = vpop.f32.mrf.mxu2  ;;  %v268_v21 = vpop.f32.mrf.mxu3 }
  0xaf   :  { %7320 = vst [vmem:[#allocation16_spill] sm:$0xff] %v5035_v19  ;;  %v5037_v22 = vpop.f32.mrf.mxu1  ;;  %v269_v63 = vadd.f32 %v268_v21, %v5078_v58  ;;  %v5270_v19 = vld [vmem:[#allocation5 + $0xb0] sm:$0xff] }
  0xb0   :  { %7321 = vst [vmem:[#allocation17_spill] sm:$0xff] %v5037_v22  ;;  %v5294_v22 = vld [vmem:[#allocation5 + $0x78] sm:$0xff] }
  0xb1   :  { %7357 = vst [vmem:[#allocation51_spill] sm:$0xff] %v5294_v22 }
  0xb6   :  { %v5039_v24 = vpop.f32.mrf.mxu2  ;;  %v5041_v25 = vpop.f32.mrf.mxu3 }
  0xb7   :  { %7322 = vst [vmem:[#allocation18_spill] sm:$0xff] %v5039_v24  ;;  %v5043_v27 = vpop.f32.mrf.mxu1  ;;  %v5258_v24 = vld [vmem:[#allocation5 + $0xc8] sm:$0xff] }
  0xb8   :  { %7323 = vst [vmem:[#allocation19_spill] sm:$0xff] %v5043_v27  ;;  %v5262_v27 = vld [vmem:[#allocation5 + $0xd8] sm:$0xff] }
  0xbe   :  { %v5045_v30 = vpop.f32.mrf.mxu2 }
  0xbf   :  { %7324 = vst [vmem:[#allocation20_spill] sm:$0xff] %v5045_v30  ;;  %v5047_v31 = vpop.f32.mrf.mxu3  ;;  %v5049_v32 = vpop.f32.mrf.mxu1  ;;  %v193_v30 = vadd.f32 %v5033_v18, %v5068_v42 }
  0xc0   :  { %7325 = vst [vmem:[#allocation21_spill] sm:$0xff] %v5049_v32 }
  0xc6   :  { %v5051_v33 = vpop.f32.mrf.mxu2 }
  0xc7   :  { %7326 = vst [vmem:[#allocation22_spill] sm:$0xff] %v5051_v33  ;;  %v5053_v34 = vpop.f32.mrf.mxu3  ;;  %v5055_v35 = vpop.f32.mrf.mxu1  ;;  %v5238_v33 = vld [vmem:[#allocation5 + $0x118] sm:$0xff] }
  0xc8   :  { %7327 = vst [vmem:[#allocation23_spill] sm:$0xff] %v5053_v34  ;;  %v5272_v34 = vld [vmem:[#allocation5 + $0xb8] sm:$0xff] }
  0xc9   :  { %7328 = vst [vmem:[#allocation24_spill] sm:$0xff] %v5055_v35  ;;  %v5246_v35 = vld [vmem:[#allocation5 + $0xf0] sm:$0xff] }
  0xce   :  { %v5060_v37 = vpop.f32.mrf.mxu2 }
  0xcf   :  { %7329 = vst [vmem:[#allocation25_spill] sm:$0xff] %v5060_v37  ;;  %v5062_v38 = vpop.f32.mrf.mxu3  ;;  %v5064_v39 = vpop.f32.mrf.mxu1 }
  0xd0   :  { %7330 = vst [vmem:[#allocation26_spill] sm:$0xff] %v5062_v38  ;;  %v5260_v38 = vld [vmem:[#allocation5 + $0xd0] sm:$0xff] }
  0xd1   :  { %7331 = vst [vmem:[#allocation27_spill] sm:$0xff] %v5064_v39 }
  0xd6   :  { %v409_v46 = vpop.f32.mrf.mxu2 }
  0xd7   :  { %v5072_v45 = vpop.f32.mrf.mxu3  ;;  %v472_v47 = vadd.f32 %v409_v46, %v146_v43  ;;  %v429_v48 = vpop.f32.mrf.mxu1 }
  0xd8   :  { %7334 = vst [vmem:[#allocation30_spill] sm:$0xff] %v5072_v45  ;;  %v473_v49 = vadd.f32 %v429_v48, %v187_v44 }
  0xd9   :  { %v4174_v50 = vmul.f32 -1.442695, %v472_v47 }
  0xda   :  { %v4175_v51 = vmul.f32 -1.442695, %v473_v49 }
  0xdb   :  { %4231 = vpow2.f32 %v4174_v50 }
  0xdc   :  { %4233 = vpow2.f32 %v4175_v51 }
  0xde   :  { %v449_v20 = vpop.f32.mrf.mxu2 }
  0xdf   :  { %v5074_v52 = vpop.f32.mrf.mxu3  ;;  %v474_v3 = vadd.f32 %v449_v20, %v228_v26 }
  0xe0   :  { %7335 = vst [vmem:[#allocation31_spill] sm:$0xff] %v5074_v52  ;;  %v5244_v52 = vld [vmem:[#allocation5 + $0xe8] sm:$0xff] }
  0xe1   :  { %v4232_v53 = vpop.eup %4231 }
  0xe2   :  { %v4234_v54 = vpop.eup %4233  ;;  %v479_v55 = vadd.f32 1.0, %v4232_v53 }
  0xe3   :  { %v498_v56 = vadd.f32 1.0, %v4234_v54 }
  0xe4   :  { %4235 = vrcp.f32 %v479_v55  ;;  %vm485_vm1 = vweird.f32 %v479_v55  ;;  %v491_v11 = vand.u32 2147483648, %v479_v55  ;;  %v489_v40 = vand.u32 2147483647, %v479_v55 }
  0xe5   :  { %4237 = vrcp.f32 %v498_v56  ;;  %v510_v29 = vand.u32 2147483648, %v498_v56  ;;  %vm504_vm4 = vweird.f32 %v498_v56  ;;  %v508_v43 = vand.u32 2147483647, %v498_v56 }
  0xe6   :  { %v492_v47 = vor.u32 1.1754944e-38, %v491_v11  ;;  %vm490_vm7 = vcmp.eq.f32.partialorder %v489_v40, 8.507059e+37  ;;  %v5109_v11 = vld [vmem:[#allocation5 + $0x120] sm:$0xff]  ;;  %v190_v40 = vadd.f32 %v5027_v14, %v5068_v42  ;;  %v272_v14 = vadd.f32 %v5041_v25, %v5078_v58 }
  0xe7   :  { %v5076_v57 = vpop.f32.mrf.mxu3  ;;  %v511_v10 = vor.u32 1.1754944e-38, %v510_v29  ;;  %vm509_vm8 = vcmp.eq.f32.partialorder %v508_v43, 8.507059e+37  ;;  %v5103_v29 = vld [vmem:[#allocation5 + $0x160] sm:$0xff] }
  0xe8   :  { %7336 = vst [vmem:[#allocation32_spill] sm:$0xff] %v5076_v57  ;;  %828 = vmatpush.msra.mxu0 %v5103_v29 }
  0xea   :  { %v4236_v59 = vpop.eup %4235 }
  0xeb   :  { %v4238_v60 = vpop.eup %4237  ;;  %v481_v61 = vmul.f32 %v4236_v59, %v479_v55  ;;  %vm486_vm2 = vweird.f32 %v4236_v59 }
  0xec   :  { %v500_v62 = vmul.f32 %v4238_v60, %v498_v56  ;;  %vm505_vm3 = vweird.f32 %v4238_v60  ;;  %vm5084_vm5 = vmor %vm485_vm1, %vm486_vm2 }
  0xed   :  { %v482_v0 = vsub.f32 1.0, %v481_v61  ;;  %vm506_vm6 = vmor %vm504_vm4, %vm505_vm3 }
  0xee   :  { %v501_v1 = vsub.f32 1.0, %v500_v62 }
  0xef   :  { %v469_v2 = vpop.f32.mrf.mxu3  ;;  %v483_v23 = vmul.f32 %v4236_v59, %v482_v0 }
  0xf0   :  { %v475_v6 = vadd.f32 %v469_v2, %v269_v63  ;;  %v502_v7 = vmul.f32 %v4238_v60, %v501_v1 }
  0xf1   :  { %v484_v21 = vadd.f32 %v4236_v59, %v483_v23  ;;  %v148_v23 = vpop.f32.mrf.mxu0 }
  0xf2   :  { %v4176_v15 = vmul.f32 -1.442695, %v475_v6  ;;  %v503_v28 = vadd.f32 %v4238_v60, %v502_v7  ;;  %v149_v43 = vadd.f32 %v148_v23, %v5066_v41 }
  0xf3   :  { %v488_v48 = vsel %vm5084_vm5, %v4236_v59, %v484_v21  ;;  %v5112_v21 = vld [vmem:[#allocation5 + $0x100] sm:$0xff] }
  0xf4   :  { %4239 = vpow2.f32 %v4176_v15  ;;  %v507_v44 = vsel %vm506_vm6, %v4238_v60, %v503_v28  ;;  %v493_v51 = vsel %vm490_vm7, %v492_v47, %v488_v48 }
  0xf5   :  { %4241 = vtanh.f32 %v474_v3  ;;  %v512_v50 = vsel %vm509_vm8, %v511_v10, %v507_v44  ;;  %v5106_v3 = vld [vmem:[#allocation5 + $0x140] sm:$0xff] }
  0xf6   :  { %v534_v53 = vmul.f32 0.0, %v512_v50  ;;  %829 = vmatpush.msra.mxu0 %v5106_v3  ;;  %v5121_v10 = vld [vmem:[#allocation5 + $0xc0] sm:$0xff] }
  0xf8   :  { %830 = vmatpush.msra.mxu0 %v5109_v11 }
  0xf9   :  { %v5099_v26 = vpop.f32.mrf.mxu0 }
  0xfa   :  { %v4240_v46 = vpop.eup %4239  ;;  %831 = vmatpush.msra.mxu0 %v5112_v21  ;;  %v152_v45 = vadd.f32 %v5099_v26, %v5066_v41  ;;  %v5268_v26 = vld [vmem:[#allocation5 + $0xa8] sm:$0xff] }
  0xfb   :  { %v518_v49 = vadd.f32 1.0, %v4240_v46  ;;  %v4242_v54 = vpop.eup %4241 }
  0xfc   :  { %v535_v61 = vmul.f32 %v4242_v54, %v493_v51  ;;  %832 = vmatpush.msra.mxu0 %v5115_v36  ;;  %v5132_v54 = vld [vmem:[#allocation5 + $0x60] sm:$0xff] }
  0xfd   :  { %4243 = vrcp.f32 %v518_v49  ;;  %v530_v63 = vand.u32 2147483648, %v518_v49  ;;  %v528_v59 = vand.u32 2147483647, %v518_v49  ;;  %vm524_vm10 = vweird.f32 %v518_v49 }
  0xfe   :  { %v5090_v56 = vadd.f32 %v535_v61, %v534_v53  ;;  %833 = vmatpush.msra.mxu0 %v5121_v10  ;;  %v5127_v53 = vld [vmem:[#allocation5 + $0x80] sm:$0xff] }
  0xff   :  { %v531_v2 = vor.u32 1.1754944e-38, %v530_v63  ;;  %vm529_vm12 = vcmp.eq.f32.partialorder %v528_v59, 8.507059e+37  ;;  %v5138_v63 = vld [vmem:[#allocation5 + $0x20] sm:$0xff] }
 0x100   :  { %4245 = vtanh.f32 %v5090_v56  ;;  %v5141_v59 = vld [vmem:[#allocation5] sm:$0xff] }
 0x101   :  { %v5101_v28 = vpop.f32.mrf.mxu0 }
 0x102   :  { %7342 = vst [vmem:[#allocation36_spill] sm:$0xff] %v5101_v28 }
 0x103   :  { %v4244_v55 = vpop.eup %4243 }
 0x104   :  { %v520_v60 = vmul.f32 %v4244_v55, %v518_v49  ;;  %vm525_vm9 = vweird.f32 %v4244_v55  ;;  %v5124_v49 = vld [vmem:[#allocation5 + $0xa0] sm:$0xff] }
 0x105   :  { %vm526_vm11 = vmor %vm524_vm10, %vm525_vm9  ;;  %834 = vmatpush.msra.mxu0 %v5124_v49 }
 0x106   :  { %v521_v62 = vsub.f32 1.0, %v520_v60  ;;  %v4246_v7 = vpop.eup %4245  ;;  %v5135_v60 = vld [vmem:[#allocation5 + $0x40] sm:$0xff] }
 0x107   :  { %835 = vmatpush.msra.mxu0 %v5127_v53  ;;  %7343 = vst [vmem:[#allocation37_spill] sm:$0xff] %v5135_v60 }
 0x108   :  { %v522_v0 = vmul.f32 %v4244_v55, %v521_v62 }
 0x109   :  { %836 = vmatpush.msra.mxu0 %v5132_v54 }
 0x10a   :  { %v523_v1 = vadd.f32 %v4244_v55, %v522_v0 }
 0x10b   :  { %837 = vmatpush.msra.mxu0 %v5135_v60 }
 0x10c   :  { %v527_v6 = vsel %vm526_vm11, %v4244_v55, %v523_v1 }
 0x10d   :  { %v532_v15 = vsel %vm529_vm12, %v531_v2, %v527_v6  ;;  %838 = vmatpush.msra.mxu0 %v5138_v63 }
 0x10e   :  { %v5093_v20 = vmul.f32 %v4246_v7, %v532_v15  ;;  %v231_v15 = vadd.f32 %v5025_v13, %v5081_v5 }
 0x10f   :  { %839 = vmatpush.msra.mxu0 %v5141_v59 }
 0x110   :  { %7341 = vst [vmem:[#allocation35_spill] sm:$0xff] %v5093_v20  ;;  %624 = vmatmul.f32.vlgmr.msrb.gmra.mxu0 %v5093_v20  ;;  %644 = vmatmul.f32.vlgmr.msrb.gmra.mxu1 %v5093_v20 }
 0x111   :  { %664 = vmatmul.f32.vlgmr.msrb.gmra.mxu2 %v5093_v20  ;;  %684 = vmatmul.f32.vlgmr.msrb.gmra.mxu3 %v5093_v20  ;;  %v5236_v20 = vld [vmem:[#allocation5 + $0x110] sm:$0xff] }
 0x18d   :  { %v625_v44 = vpop.f32.mrf.mxu0  ;;  %v645_v46 = vpop.f32.mrf.mxu1 }
 0x18e   :  { %v688_v47 = vadd.f32 %v625_v44, %v149_v43  ;;  %v689_v48 = vadd.f32 %v645_v46, %v190_v40 }
 0x190   :  { %v4177_v50 = vmul.f32 -1.442695, %v688_v47  ;;  %v4178_v51 = vmul.f32 -1.442695, %v689_v48 }
 0x192   :  { %4247 = vpow2.f32 %v4177_v50 }
 0x193   :  { %4249 = vpow2.f32 %v4178_v51 }
 0x194   :  { %v685_v61 = vpop.f32.mrf.mxu3  ;;  %v665_v6 = vpop.f32.mrf.mxu2 }
 0x195   :  { %v691_v55 = vadd.f32 %v685_v61, %v272_v14  ;;  %v690_v43 = vadd.f32 %v665_v6, %v231_v15 }
 0x197   :  { %v4179_v62 = vmul.f32 -1.442695, %v691_v55 }
 0x198   :  { %v4248_v0 = vpop.eup %4247 }
 0x199   :  { %v4250_v25 = vpop.eup %4249  ;;  %v695_v1 = vadd.f32 1.0, %v4248_v0  ;;  %4251 = vpow2.f32 %v4179_v62 }
 0x19a   :  { %v714_v2 = vadd.f32 1.0, %v4250_v25 }
 0x19b   :  { %4253 = vrcp.f32 %v695_v1  ;;  %v707_v51 = vand.u32 2147483648, %v695_v1  ;;  %v705_v55 = vand.u32 2147483647, %v695_v1  ;;  %vm701_vm15 = vweird.f32 %v695_v1 }
 0x19c   :  { %4255 = vrcp.f32 %v714_v2  ;;  %v726_v14 = vand.u32 2147483648, %v714_v2  ;;  %v724_v0 = vand.u32 2147483647, %v714_v2  ;;  %vm720_vm0 = vweird.f32 %v714_v2 }
 0x19d   :  { %v708_v6 = vor.u32 1.1754944e-38, %v707_v51  ;;  %vm706_vm3 = vcmp.eq.f32.partialorder %v705_v55, 8.507059e+37 }
 0x19e   :  { %vm725_vm4 = vcmp.eq.f32.partialorder %v724_v0, 8.507059e+37 }
 0x19f   :  { %v4252_v7 = vpop.eup %4251 }
 0x1a0   :  { %v734_v23 = vadd.f32 1.0, %v4252_v7 }
 0x1a1   :  { %v4254_v40 = vpop.eup %4253 }
 0x1a2   :  { %v4256_v44 = vpop.eup %4255  ;;  %v697_v46 = vmul.f32 %v4254_v40, %v695_v1  ;;  %4257 = vrcp.f32 %v734_v23  ;;  %vm702_vm13 = vweird.f32 %v4254_v40  ;;  %v746_v51 = vand.u32 2147483648, %v734_v23 }
 0x1a3   :  { %v716_v47 = vmul.f32 %v4256_v44, %v714_v2  ;;  %4259 = vtanh.f32 %v690_v43  ;;  %vm721_vm14 = vweird.f32 %v4256_v44  ;;  %vm703_vm1 = vmor %vm701_vm15, %vm702_vm13  ;;  %vm740_vm6 = vweird.f32 %v734_v23 }
 0x1a4   :  { %v698_v48 = vsub.f32 1.0, %v697_v46  ;;  %vm722_vm2 = vmor %vm720_vm0, %vm721_vm14  ;;  %v727_v46 = vor.u32 1.1754944e-38, %v726_v14  ;;  %v747_v55 = vor.u32 1.1754944e-38, %v746_v51  ;;  %v5208_v51 = vld [vmem:[#allocation5 + $0x178] sm:$0xff] }
 0x1a5   :  { %v717_v50 = vsub.f32 1.0, %v716_v47 }
 0x1a6   :  { %v699_v61 = vmul.f32 %v4254_v40, %v698_v48 }
 0x1a7   :  { %v718_v62 = vmul.f32 %v4256_v44, %v717_v50 }
 0x1a8   :  { %v4258_v25 = vpop.eup %4257  ;;  %v700_v13 = vadd.f32 %v4254_v40, %v699_v61 }
 0x1a9   :  { %v719_v7 = vadd.f32 %v4256_v44, %v718_v62  ;;  %v736_v15 = vmul.f32 %v4258_v25, %v734_v23  ;;  %v4260_v43 = vpop.eup %4259  ;;  %vm741_vm5 = vweird.f32 %v4258_v25 }
 0x1aa   :  { %v704_v47 = vsel %vm703_vm1, %v4254_v40, %v700_v13  ;;  %v744_v40 = vand.u32 2147483647, %v734_v23  ;;  %vm742_vm7 = vmor %vm740_vm6, %vm741_vm5  ;;  %v5170_v23 = vld [vmem:[#allocation5 + $0x1c8] sm:$0xff]  ;;  %v5176_v13 = vld [vmem:[#allocation5 + $0x1d8] sm:$0xff] }
 0x1ab   :  { %v709_v8 = vsel %vm706_vm3, %v708_v6, %v704_v47  ;;  %v723_v48 = vsel %vm722_vm2, %v4256_v44, %v719_v7  ;;  %v737_v37 = vsub.f32 1.0, %v736_v15  ;;  %7349 = vst [vmem:[#allocation43_spill] sm:$0xff] %v5170_v23  ;;  %v5180_v6 = vld [vmem:[#allocation5 + $0x1a0] sm:$0xff]  ;;  %v5182_v7 = vld [vmem:[#allocation5 + $0x1a8] sm:$0xff]  ;;  %v5184_v15 = vld [vmem:[#allocation5 + $0x1b0] sm:$0xff] }
 0x1ac   :  { %v728_v50 = vsel %vm725_vm4, %v727_v46, %v723_v48  ;;  %v751_v57 = vmul.f32 %v4260_v43, %v709_v8  ;;  %vm745_vm8 = vcmp.eq.f32.partialorder %v744_v40, 8.507059e+37  ;;  %v5156_v8 = vld [vmem:[#allocation5 + $0x1e0] sm:$0xff]  ;;  %v5188_v46 = vld [vmem:[#allocation5 + $0x1b8] sm:$0xff]  ;;  %v5194_v43 = vld [vmem:[#allocation5 + $0x188] sm:$0xff] }
 0x1ad   :  { %v750_v39 = vmul.f32 %v728_v50, %v5090_v56  ;;  %v738_v61 = vmul.f32 %v4258_v25, %v737_v37  ;;  %7345 = vst [vmem:[#allocation39_spill] sm:$0xff] %v5156_v8  ;;  %v5158_v37 = vld [vmem:[#allocation5 + $0x1e8] sm:$0xff]  ;;  %1040 = vmatpush.msrb.mxu0 %v5156_v8  ;;  %v5168_v56 = vld [vmem:[#allocation5 + $0x1c0] sm:$0xff]  ;;  %v5196_v48 = vld [vmem:[#allocation5 + $0x190] sm:$0xff] }
 0x1ae   :  { %1060 = vmatpush.msrb.mxu1 %v5158_v37  ;;  %7348 = vst [vmem:[#allocation42_spill] sm:$0xff] %v5168_v56  ;;  %v5192_v47 = vld [vmem:[#allocation5 + $0x180] sm:$0xff]  ;;  %v5200_v50 = vld [vmem:[#allocation5 + $0x198] sm:$0xff]  ;;  %v5214_v40 = vld [vmem:[#allocation5 + $0x148] sm:$0xff] }
 0x1af   :  { %v5147_v1 = vadd.f32 %v751_v57, %v750_v39  ;;  %v739_v2 = vadd.f32 %v4258_v25, %v738_v61  ;;  %v5160_v39 = vld [vmem:[#allocation5 + $0x1f0] sm:$0xff]  ;;  %v5164_v57 = vld [vmem:[#allocation5 + $0x1f8] sm:$0xff]  ;;  %1041 = vmatpush.msrb.mxu0 %v5168_v56  ;;  %7350 = vst [vmem:[#allocation44_spill] sm:$0xff] %v5194_v43  ;;  %v5204_v61 = vld [vmem:[#allocation5 + $0x168] sm:$0xff] }
 0x1b0   :  { %7346 = vst [vmem:[#allocation40_spill] sm:$0xff] %v5160_v39  ;;  %1080 = vmatpush.msrb.mxu2 %v5160_v39  ;;  %1100 = vmatpush.msrb.mxu3 %v5164_v57 }
 0x1b1   :  { %4261 = vtanh.f32 %v5147_v1  ;;  %v743_v14 = vsel %vm742_vm7, %v4258_v25, %v739_v2  ;;  %7347 = vst [vmem:[#allocation41_spill] sm:$0xff] %v5164_v57  ;;  %v5172_v25 = vld [vmem:[#allocation5 + $0x1d0] sm:$0xff]  ;;  %1061 = vmatpush.msrb.mxu1 %v5170_v23  ;;  %1042 = vmatpush.msrb.mxu0 %v5180_v6 }
 0x1b2   :  { %v748_v62 = vsel %vm745_vm8, %v747_v55, %v743_v14  ;;  %1081 = vmatpush.msrb.mxu2 %v5172_v25  ;;  %1101 = vmatpush.msrb.mxu3 %v5176_v13  ;;  %7351 = vst [vmem:[#allocation45_spill] sm:$0xff] %v5196_v48  ;;  %v5206_v2 = vld [vmem:[#allocation5 + $0x170] sm:$0xff]  ;;  %v5218_v55 = vld [vmem:[#allocation5 + $0x158] sm:$0xff] }
 0x1b3   :  { %1062 = vmatpush.msrb.mxu1 %v5182_v7  ;;  %1043 = vmatpush.msrb.mxu0 %v5192_v47  ;;  %v5216_v14 = vld [vmem:[#allocation5 + $0x150] sm:$0xff] }
 0x1b4   :  { %1082 = vmatpush.msrb.mxu2 %v5184_v15  ;;  %1102 = vmatpush.msrb.mxu3 %v5188_v46 }
 0x1b5   :  { %1063 = vmatpush.msrb.mxu1 %v5194_v43  ;;  %1044 = vmatpush.msrb.mxu0 %v5103_v29 }
 0x1b6   :  { %1083 = vmatpush.msrb.mxu2 %v5196_v48  ;;  %1103 = vmatpush.msrb.mxu3 %v5200_v50 }
 0x1b7   :  { %v4262_v44 = vpop.eup %4261  ;;  %1064 = vmatpush.msrb.mxu1 %v5204_v61  ;;  %1045 = vmatpush.msrb.mxu0 %v5106_v3 }
 0x1b8   :  { %v5150_v0 = vmul.f32 %v4262_v44, %v748_v62  ;;  %1084 = vmatpush.msrb.mxu2 %v5206_v2  ;;  %1104 = vmatpush.msrb.mxu3 %v5208_v51  ;;  %v5224_v44 = vld [vmem:[#allocation5 + $0x128] sm:$0xff]  ;;  %v5226_v62 = vld [vmem:[#allocation5 + $0x130] sm:$0xff] }
 0x1b9   :  { %1065 = vmatpush.msrb.mxu1 %v5214_v40  ;;  %7352 = vst [vmem:[#allocation46_spill] sm:$0xff] %v5226_v62  ;;  %1046 = vmatpush.msrb.mxu0 %v5109_v11 }
 0x1ba   :  { %7344 = vst [vmem:[#allocation38_spill] sm:$0xff] %v5150_v0  ;;  %840 = vmatmul.f32.vlgmr.msra.gmra.mxu0 %v5150_v0  ;;  %860 = vmatmul.f32.vlgmr.msra.gmra.mxu1 %v5150_v0 }
 0x1bb   :  { %880 = vmatmul.f32.vlgmr.msra.gmra.mxu2 %v5150_v0  ;;  %900 = vmatmul.f32.vlgmr.msra.gmra.mxu3 %v5150_v0  ;;  %v5234_v0 = vld [vmem:[#allocation5 + $0x108] sm:$0xff] }
 0x1bc   :  { %1085 = vmatpush.msrb.mxu2 %v5216_v14  ;;  %1105 = vmatpush.msrb.mxu3 %v5218_v55 }
 0x1bd   :  { %1066 = vmatpush.msrb.mxu1 %v5224_v44  ;;  %1047 = vmatpush.msrb.mxu0 %v5112_v21 }
 0x1be   :  { %1086 = vmatpush.msrb.mxu2 %v5226_v62  ;;  %1106 = vmatpush.msrb.mxu3 %v5228_v16 }
 0x1bf   :  { %1067 = vmatpush.msrb.mxu1 %v5234_v0  ;;  %1048 = vmatpush.msrb.mxu0 %v5115_v36 }
 0x1c0   :  { %1087 = vmatpush.msrb.mxu2 %v5236_v20  ;;  %1107 = vmatpush.msrb.mxu3 %v5238_v33 }
 0x1c1   :  { %1068 = vmatpush.msrb.mxu1 %v5244_v52  ;;  %1049 = vmatpush.msrb.mxu0 %v5121_v10 }
 0x1c2   :  { %1088 = vmatpush.msrb.mxu2 %v5246_v35  ;;  %1108 = vmatpush.msrb.mxu3 %v5248_v12 }
 0x1c3   :  { %1069 = vmatpush.msrb.mxu1 %v5258_v24  ;;  %1050 = vmatpush.msrb.mxu0 %v5124_v49 }
 0x1c4   :  { %1089 = vmatpush.msrb.mxu2 %v5260_v38  ;;  %1109 = vmatpush.msrb.mxu3 %v5262_v27 }
 0x1c5   :  { %1070 = vmatpush.msrb.mxu1 %v5268_v26  ;;  %1051 = vmatpush.msrb.mxu0 %v5127_v53 }
 0x1c6   :  { %1090 = vmatpush.msrb.mxu2 %v5270_v19  ;;  %1110 = vmatpush.msrb.mxu3 %v5272_v34 }
 0x1c7   :  { %1052 = vmatpush.msrb.mxu0 %v5132_v54 }
 0x1c9   :  { %1053 = vmatpush.msrb.mxu0 %v5135_v60  ;;  %v5320_v60 = vld [vmem:[#allocation5 + $0x10] sm:$0xff] }
 0x1cb   :  { %1054 = vmatpush.msrb.mxu0 %v5138_v63 }
 0x1cd   :  { %1055 = vmatpush.msrb.mxu0 %v5141_v59 }
 0x1cf   :  { %1256 = vmatpush.msra.mxu0 %v5156_v8 }
 0x1d1   :  { %1257 = vmatpush.msra.mxu0 %v5168_v56 }
 0x1d3   :  { %1258 = vmatpush.msra.mxu0 %v5180_v6 }
 0x1d5   :  { %1259 = vmatpush.msra.mxu0 %v5192_v47 }
 0x1d7   :  { %1260 = vmatpush.msra.mxu0 %v5103_v29 }
 0x1d9   :  { %1261 = vmatpush.msra.mxu0 %v5106_v3 }
 0x1db   :  { %1262 = vmatpush.msra.mxu0 %v5109_v11 }
 0x1dd   :  { %1263 = vmatpush.msra.mxu0 %v5112_v21 }
 0x1df   :  { %1264 = vmatpush.msra.mxu0 %v5115_v36 }
 0x1e1   :  { %1265 = vmatpush.msra.mxu0 %v5121_v10 }
 0x1e3   :  { %1266 = vmatpush.msra.mxu0 %v5124_v49 }
 0x1e5   :  { %1267 = vmatpush.msra.mxu0 %v5127_v53  ;;  %v7365_v53 = vld [vmem:[#allocation37_spill] sm:$0xff] }
 0x1e7   :  { %1268 = vmatpush.msra.mxu0 %v5132_v54  ;;  %v7370_v54 = vld [vmem:[#allocation39_spill] sm:$0xff] }
 0x1e9   :  { %1269 = vmatpush.msra.mxu0 %v7365_v53 }
 0x1eb   :  { %1270 = vmatpush.msra.mxu0 %v5138_v63  ;;  %v7371_v63 = vld [vmem:[#allocation40_spill] sm:$0xff] }
 0x1ed   :  { %1271 = vmatpush.msra.mxu0 %v5141_v59  ;;  %v7375_v59 = vld [vmem:[#allocation44_spill] sm:$0xff] }
 0x237   :  { %v841_v32 = vpop.f32.mrf.mxu0  ;;  %v861_v9 = vpop.f32.mrf.mxu1 }
 0x238   :  { %v904_v18 = vadd.f32 %v841_v32, %v152_v45  ;;  %v905_v4 = vadd.f32 %v861_v9, %v193_v30  ;;  %v5278_v9 = vld [vmem:[#allocation5 + $0x88] sm:$0xff]  ;;  %v5280_v30 = vld [vmem:[#allocation5 + $0x90] sm:$0xff]  ;;  %v5282_v32 = vld [vmem:[#allocation5 + $0x98] sm:$0xff] }
 0x239   :  { %7354 = vst [vmem:[#allocation48_spill] sm:$0xff] %v5282_v32  ;;  %1071 = vmatpush.msrb.mxu1 %v5278_v9  ;;  %1091 = vmatpush.msrb.mxu2 %v5280_v30  ;;  %v5290_v45 = vld [vmem:[#allocation5 + $0x68] sm:$0xff] }
 0x23a   :  { %v4180_v28 = vmul.f32 -1.442695, %v904_v18  ;;  %v4181_v41 = vmul.f32 -1.442695, %v905_v4  ;;  %v275_v4 = vadd.f32 %v5047_v31, %v5078_v58  ;;  %1111 = vmatpush.msrb.mxu3 %v5282_v32  ;;  %7355 = vst [vmem:[#allocation49_spill] sm:$0xff] %v5290_v45  ;;  %v5292_v18 = vld [vmem:[#allocation5 + $0x70] sm:$0xff] }
 0x23b   :  { %7356 = vst [vmem:[#allocation50_spill] sm:$0xff] %v5292_v18  ;;  %1072 = vmatpush.msrb.mxu1 %v5290_v45  ;;  %1092 = vmatpush.msrb.mxu2 %v5292_v18  ;;  %v5300_v31 = vld [vmem:[#allocation5 + $0x48] sm:$0xff]  ;;  %v5304_v58 = vld [vmem:[#allocation5 + $0x58] sm:$0xff] }
 0x23c   :  { %4263 = vpow2.f32 %v4180_v28  ;;  %1112 = vmatpush.msrb.mxu3 %v5294_v22  ;;  %7358 = vst [vmem:[#allocation52_spill] sm:$0xff] %v5300_v31  ;;  %v5314_v22 = vld [vmem:[#allocation5 + $0x38] sm:$0xff]  ;;  %v5318_v45 = vld [vmem:[#allocation5 + $0x8] sm:$0xff] }
 0x23d   :  { %4265 = vpow2.f32 %v4181_v41  ;;  %v5302_v41 = vld [vmem:[#allocation5 + $0x50] sm:$0xff]  ;;  %7360 = vst [vmem:[#allocation54_spill] sm:$0xff] %v5304_v58  ;;  %1073 = vmatpush.msrb.mxu1 %v5300_v31 }
 0x23e   :  { %v901_v42 = vpop.f32.mrf.mxu3  ;;  %7359 = vst [vmem:[#allocation53_spill] sm:$0xff] %v5302_v41  ;;  %1093 = vmatpush.msrb.mxu2 %v5302_v41  ;;  %1113 = vmatpush.msrb.mxu3 %v5304_v58 }
 0x23f   :  { %v907_v28 = vadd.f32 %v901_v42, %v275_v4  ;;  %v5310_v42 = vld [vmem:[#allocation5 + $0x28] sm:$0xff]  ;;  %v5312_v4 = vld [vmem:[#allocation5 + $0x30] sm:$0xff] }
 0x240   :  { %1074 = vmatpush.msrb.mxu1 %v5310_v42  ;;  %1094 = vmatpush.msrb.mxu2 %v5312_v4  ;;  %v7361_v49 = vld [vmem:[#allocation48_spill] sm:$0xff] }
 0x241   :  { %v4182_v32 = vmul.f32 -1.442695, %v907_v28  ;;  %v5322_v28 = vld [vmem:[#allocation5 + $0x18] sm:$0xff]  ;;  %1114 = vmatpush.msrb.mxu3 %v5314_v22 }
 0x242   :  { %v4264_v18 = vpop.eup %4263  ;;  %1075 = vmatpush.msrb.mxu1 %v5318_v45  ;;  %1095 = vmatpush.msrb.mxu2 %v5320_v60 }
 0x243   :  { %v4266_v41 = vpop.eup %4265  ;;  %v5324_v31 = vadd.f32 1.0, %v4264_v18  ;;  %4267 = vpow2.f32 %v4182_v32  ;;  %1115 = vmatpush.msrb.mxu3 %v5322_v28  ;;  %v881_v32 = vpop.f32.mrf.mxu2 }
 0x244   :  { %v5328_v58 = vadd.f32 1.0, %v4266_v41  ;;  %1276 = vmatpush.msra.mxu1 %v5158_v37  ;;  %1296 = vmatpush.msra.mxu2 %v5160_v39  ;;  %v234_v41 = vadd.f32 %v5031_v17, %v5081_v5 }
 0x245   :  { %4269 = vrcp.f32 %v5324_v31  ;;  %1316 = vmatpush.msra.mxu3 %v5164_v57  ;;  %vm917_vm11 = vweird.f32 %v5324_v31 }
 0x246   :  { %4271 = vrcp.f32 %v5328_v58  ;;  %1277 = vmatpush.msra.mxu1 %v5170_v23  ;;  %1297 = vmatpush.msra.mxu2 %v5172_v25  ;;  %v906_v39 = vadd.f32 %v881_v32, %v234_v41  ;;  %v923_v41 = vand.u32 2147483648, %v5324_v31  ;;  %v942_v5 = vand.u32 2147483648, %v5328_v58 }
 0x247   :  { %1317 = vmatpush.msra.mxu3 %v5176_v13  ;;  %vm936_vm12 = vweird.f32 %v5328_v58 }
 0x248   :  { %1278 = vmatpush.msra.mxu1 %v5182_v7  ;;  %1298 = vmatpush.msra.mxu2 %v5184_v15  ;;  %v924_v3 = vor.u32 1.1754944e-38, %v923_v41 }
 0x249   :  { %v4268_v18 = vpop.eup %4267  ;;  %1318 = vmatpush.msra.mxu3 %v5188_v46 }
 0x24a   :  { %v5346_v8 = vadd.f32 1.0, %v4268_v18  ;;  %1279 = vmatpush.msra.mxu1 %v5194_v43  ;;  %1299 = vmatpush.msra.mxu2 %v5196_v48  ;;  %v921_v48 = vand.u32 2147483647, %v5324_v31 }
 0x24b   :  { %v4270_v57 = vpop.eup %4269  ;;  %1319 = vmatpush.msra.mxu3 %v5200_v50 }
 0x24c   :  { %v4272_v23 = vpop.eup %4271  ;;  %v913_v56 = vmul.f32 %v4270_v57, %v5324_v31  ;;  %4273 = vrcp.f32 %v5346_v8  ;;  %1280 = vmatpush.msra.mxu1 %v5204_v61  ;;  %1300 = vmatpush.msra.mxu2 %v5206_v2  ;;  %vm918_vm9 = vweird.f32 %v4270_v57  ;;  %vm922_vm15 = vcmp.eq.f32.partialorder %v921_v48, 8.507059e+37 }
 0x24d   :  { %v932_v17 = vmul.f32 %v4272_v23, %v5328_v58  ;;  %4275 = vtanh.f32 %v906_v39  ;;  %1320 = vmatpush.msra.mxu3 %v5208_v51  ;;  %vm937_vm10 = vweird.f32 %v4272_v23  ;;  %vm919_vm13 = vmor %vm917_vm11, %vm918_vm9  ;;  %v962_v10 = vand.u32 2147483648, %v5346_v8 }
 0x24e   :  { %v914_v32 = vsub.f32 1.0, %v913_v56  ;;  %1281 = vmatpush.msra.mxu1 %v5214_v40  ;;  %v940_v56 = vand.u32 2147483647, %v5328_v58  ;;  %1301 = vmatpush.msra.mxu2 %v5216_v14  ;;  %vm938_vm14 = vmor %vm936_vm12, %vm937_vm10  ;;  %vm956_vm2 = vweird.f32 %v5346_v8 }
 0x24f   :  { %v933_v18 = vsub.f32 1.0, %v932_v17  ;;  %1321 = vmatpush.msra.mxu3 %v5218_v55  ;;  %v963_v48 = vor.u32 1.1754944e-38, %v962_v10 }
 0x250   :  { %v915_v43 = vmul.f32 %v4270_v57, %v914_v32  ;;  %1282 = vmatpush.msra.mxu1 %v5224_v44  ;;  %1302 = vmatpush.msra.mxu2 %v5226_v62  ;;  %vm941_vm0 = vcmp.eq.f32.partialorder %v940_v56, 8.507059e+37  ;;  %v7364_v56 = vld [vmem:[#allocation51_spill] sm:$0xff] }
 0x251   :  { %v934_v29 = vmul.f32 %v4272_v23, %v933_v18  ;;  %1322 = vmatpush.msra.mxu3 %v5228_v16 }
 0x252   :  { %v5371_v39 = vpop.eup %4273  ;;  %v916_v17 = vadd.f32 %v4270_v57, %v915_v43  ;;  %v943_v43 = vor.u32 1.1754944e-38, %v942_v5  ;;  %1283 = vmatpush.msra.mxu1 %v5234_v0  ;;  %1303 = vmatpush.msra.mxu2 %v5236_v20 }
 0x253   :  { %v935_v32 = vadd.f32 %v4272_v23, %v934_v29  ;;  %v952_v18 = vmul.f32 %v5371_v39, %v5346_v8  ;;  %v4276_v58 = vpop.eup %4275  ;;  %1323 = vmatpush.msra.mxu3 %v5238_v33  ;;  %vm957_vm1 = vweird.f32 %v5371_v39 }
 0x254   :  { %v920_v31 = vsel %vm919_vm13, %v4270_v57, %v916_v17  ;;  %1284 = vmatpush.msra.mxu1 %v5244_v52  ;;  %1304 = vmatpush.msra.mxu2 %v5246_v35  ;;  %vm958_vm3 = vmor %vm956_vm2, %vm957_vm1 }
 0x255   :  { %v925_v11 = vsel %vm922_vm15, %v924_v3, %v920_v31  ;;  %v939_v41 = vsel %vm938_vm14, %v4272_v23, %v935_v32  ;;  %v953_v29 = vsub.f32 1.0, %v952_v18  ;;  %1324 = vmatpush.msra.mxu3 %v5248_v12  ;;  %v7362_v23 = vld [vmem:[#allocation49_spill] sm:$0xff]  ;;  %v7368_v18 = vld [vmem:[#allocation54_spill] sm:$0xff] }
 0x256   :  { %v944_v62 = vsel %vm941_vm0, %v943_v43, %v939_v41  ;;  %v967_v16 = vmul.f32 %v4276_v58, %v925_v11  ;;  %1285 = vmatpush.msra.mxu1 %v5258_v24  ;;  %1305 = vmatpush.msra.mxu2 %v5260_v38  ;;  %v7367_v32 = vld [vmem:[#allocation53_spill] sm:$0xff]  ;;  %v7373_v31 = vld [vmem:[#allocation42_spill] sm:$0xff]  ;;  %v7374_v58 = vld [vmem:[#allocation43_spill] sm:$0xff] }
 0x257   :  { %v966_v5 = vmul.f32 %v944_v62, %v5147_v1  ;;  %v954_v21 = vmul.f32 %v5371_v39, %v953_v29  ;;  %1325 = vmatpush.msra.mxu3 %v5262_v27  ;;  %v7363_v62 = vld [vmem:[#allocation50_spill] sm:$0xff]  ;;  %v7372_v43 = vld [vmem:[#allocation41_spill] sm:$0xff] }
 0x258   :  { %1286 = vmatpush.msra.mxu1 %v5268_v26  ;;  %1306 = vmatpush.msra.mxu2 %v5270_v19 }
 0x259   :  { %v5395_v57 = vadd.f32 %v967_v16, %v966_v5  ;;  %v955_v36 = vadd.f32 %v5371_v39, %v954_v21  ;;  %1326 = vmatpush.msra.mxu3 %v5272_v34  ;;  %v960_v16 = vand.u32 2147483647, %v5346_v8  ;;  %v7366_v8 = vld [vmem:[#allocation52_spill] sm:$0xff] }
 0x25a   :  { %1287 = vmatpush.msra.mxu1 %v5278_v9  ;;  %1307 = vmatpush.msra.mxu2 %v5280_v30 }
 0x25b   :  { %4277 = vtanh.f32 %v5395_v57  ;;  %1327 = vmatpush.msra.mxu3 %v7361_v49  ;;  %v959_v1 = vsel %vm958_vm3, %v5371_v39, %v955_v36  ;;  %vm961_vm4 = vcmp.eq.f32.partialorder %v960_v16, 8.507059e+37 }
 0x25c   :  { %1288 = vmatpush.msra.mxu1 %v7362_v23  ;;  %1308 = vmatpush.msra.mxu2 %v7363_v62  ;;  %v964_v3 = vsel %vm961_vm4, %v963_v48, %v959_v1 }
 0x25d   :  { %1328 = vmatpush.msra.mxu3 %v7364_v56 }
 0x25e   :  { %1289 = vmatpush.msra.mxu1 %v7366_v8  ;;  %1309 = vmatpush.msra.mxu2 %v7367_v32 }
 0x25f   :  { %1329 = vmatpush.msra.mxu3 %v7368_v18 }
 0x260   :  { %1290 = vmatpush.msra.mxu1 %v5310_v42  ;;  %1310 = vmatpush.msra.mxu2 %v5312_v4 }
 0x261   :  { %v4278_v17 = vpop.eup %4277  ;;  %1330 = vmatpush.msra.mxu3 %v5314_v22 }
 0x262   :  { %v5422_v39 = vmul.f32 %v4278_v17, %v964_v3  ;;  %1291 = vmatpush.msra.mxu1 %v5318_v45  ;;  %1311 = vmatpush.msra.mxu2 %v5320_v60 }
 0x263   :  { %1331 = vmatpush.msra.mxu3 %v5322_v28 }
 0x264   :  { %7369 = vst [vmem:[#allocation48_spill] sm:$0xff] %v5422_v39  ;;  %1056 = vmatmul.f32.vlgmr.msrb.gmra.mxu0 %v5422_v39  ;;  %1076 = vmatmul.f32.vlgmr.msrb.gmra.mxu1 %v5422_v39 }
 0x265   :  { %1096 = vmatmul.f32.vlgmr.msrb.gmra.mxu2 %v5422_v39  ;;  %1116 = vmatmul.f32.vlgmr.msrb.gmra.mxu3 %v5422_v39  ;;  %v5698_v39 = vld [vmem:[#allocation5 + $0x78] sm:$0xff] }
 0x266   :  { %1472 = vmatpush.msrb.mxu0 %v7370_v54  ;;  %1492 = vmatpush.msrb.mxu1 %v5158_v37  ;;  %v7376_v37 = vld [vmem:[#allocation45_spill] sm:$0xff]  ;;  %7399 = vst [vmem:[#allocation53_spill] sm:$0xff] %v5698_v39 }
 0x267   :  { %1512 = vmatpush.msrb.mxu2 %v7371_v63  ;;  %1532 = vmatpush.msrb.mxu3 %v7372_v43 }
 0x268   :  { %1473 = vmatpush.msrb.mxu0 %v7373_v31  ;;  %1493 = vmatpush.msrb.mxu1 %v7374_v58 }
 0x269   :  { %1513 = vmatpush.msrb.mxu2 %v5172_v25  ;;  %1533 = vmatpush.msrb.mxu3 %v5176_v13  ;;  %v7377_v25 = vld [vmem:[#allocation46_spill] sm:$0xff]  ;;  %v7378_v13 = vld [vmem:[#allocation47_spill] sm:$0xff] }
 0x26a   :  { %1474 = vmatpush.msrb.mxu0 %v5180_v6  ;;  %1494 = vmatpush.msrb.mxu1 %v5182_v7  ;;  %v7384_v7 = vld [vmem:[#allocation23_spill] sm:$0xff] }
 0x26b   :  { %1514 = vmatpush.msrb.mxu2 %v5184_v15  ;;  %1534 = vmatpush.msrb.mxu3 %v5188_v46 }
 0x26c   :  { %1475 = vmatpush.msrb.mxu0 %v5192_v47  ;;  %1495 = vmatpush.msrb.mxu1 %v7375_v59 }
 0x26d   :  { %1515 = vmatpush.msrb.mxu2 %v7376_v37  ;;  %1535 = vmatpush.msrb.mxu3 %v5200_v50 }
 0x26e   :  { %1496 = vmatpush.msrb.mxu1 %v5204_v61 }
 0x26f   :  { %1516 = vmatpush.msrb.mxu2 %v5206_v2  ;;  %1536 = vmatpush.msrb.mxu3 %v5208_v51 }
 0x270   :  { %1497 = vmatpush.msrb.mxu1 %v5214_v40 }
 0x271   :  { %1517 = vmatpush.msrb.mxu2 %v5216_v14  ;;  %1537 = vmatpush.msrb.mxu3 %v5218_v55  ;;  %v7385_v55 = vld [vmem:[#allocation34_spill] sm:$0xff] }
 0x272   :  { %1498 = vmatpush.msrb.mxu1 %v5224_v44  ;;  %v7386_v44 = vld [vmem:[#allocation16_spill] sm:$0xff] }
 0x273   :  { %1518 = vmatpush.msrb.mxu2 %v7377_v25  ;;  %1538 = vmatpush.msrb.mxu3 %v7378_v13 }
 0x274   :  { %1499 = vmatpush.msrb.mxu1 %v5234_v0 }
 0x275   :  { %1519 = vmatpush.msrb.mxu2 %v5236_v20  ;;  %1539 = vmatpush.msrb.mxu3 %v5238_v33  ;;  %v7382_v33 = vld [vmem:[#allocation36_spill] sm:$0xff] }
 0x276   :  { %1500 = vmatpush.msrb.mxu1 %v5244_v52 }
 0x277   :  { %1520 = vmatpush.msrb.mxu2 %v5246_v35  ;;  %1540 = vmatpush.msrb.mxu3 %v5248_v12  ;;  %v7379_v12 = vld [vmem:[#allocation29_spill] sm:$0xff] }
 0x278   :  { %1501 = vmatpush.msrb.mxu1 %v5258_v24 }
 0x279   :  { %1521 = vmatpush.msrb.mxu2 %v5260_v38  ;;  %1541 = vmatpush.msrb.mxu3 %v5262_v27  ;;  %v7381_v27 = vld [vmem:[#allocation28_spill] sm:$0xff] }
 0x27a   :  { %1502 = vmatpush.msrb.mxu1 %v5268_v26  ;;  %v237_v26 = vadd.f32 %v7386_v44, %v7385_v55 }
 0x27b   :  { %1522 = vmatpush.msrb.mxu2 %v5270_v19  ;;  %1542 = vmatpush.msrb.mxu3 %v5272_v34  ;;  %v7380_v19 = vld [vmem:[#allocation17_spill] sm:$0xff]  ;;  %v155_v34 = vadd.f32 %v7382_v33, %v7381_v27 }
 0x27c   :  { %1503 = vmatpush.msrb.mxu1 %v5278_v9  ;;  %v196_v24 = vadd.f32 %v7380_v19, %v7379_v12 }
 0x27d   :  { %1523 = vmatpush.msrb.mxu2 %v5280_v30  ;;  %1543 = vmatpush.msrb.mxu3 %v7361_v49 }
 0x27e   :  { %1504 = vmatpush.msrb.mxu1 %v7362_v23 }
 0x27f   :  { %1524 = vmatpush.msrb.mxu2 %v7363_v62  ;;  %1544 = vmatpush.msrb.mxu3 %v7364_v56 }
 0x280   :  { %1505 = vmatpush.msrb.mxu1 %v7366_v8 }
 0x281   :  { %1525 = vmatpush.msrb.mxu2 %v7367_v32  ;;  %1545 = vmatpush.msrb.mxu3 %v7368_v18 }
 0x282   :  { %1506 = vmatpush.msrb.mxu1 %v5310_v42 }
 0x283   :  { %1526 = vmatpush.msrb.mxu2 %v5312_v4  ;;  %1546 = vmatpush.msrb.mxu3 %v5314_v22  ;;  %v7383_v22 = vld [vmem:[#allocation33_spill] sm:$0xff] }
 0x284   :  { %1507 = vmatpush.msrb.mxu1 %v5318_v45  ;;  %v278_v15 = vadd.f32 %v7384_v7, %v7383_v22 }
 0x285   :  { %1527 = vmatpush.msrb.mxu2 %v5320_v60  ;;  %1547 = vmatpush.msrb.mxu3 %v5322_v28 }
 0x2e1   :  { %v1057_v35 = vpop.f32.mrf.mxu0  ;;  %v1077_v38 = vpop.f32.mrf.mxu1 }
 0x2e2   :  { %v1120_v52 = vadd.f32 %v1057_v35, %v155_v34  ;;  %v1121_v20 = vadd.f32 %v1077_v38, %v196_v24  ;;  %v5509_v34 = vld [vmem:[#allocation5 + $0x140] sm:$0xff] }
 0x2e3   :  { %v5512_v35 = vld [vmem:[#allocation5 + $0x120] sm:$0xff] }
 0x2e4   :  { %v4183_v0 = vmul.f32 -1.442695, %v1120_v52  ;;  %v4184_v6 = vmul.f32 -1.442695, %v1121_v20  ;;  %v5515_v38 = vld [vmem:[#allocation5 + $0x100] sm:$0xff] }
 0x2e5   :  { %v5518_v52 = vld [vmem:[#allocation5 + $0xe0] sm:$0xff] }
 0x2e6   :  { %4279 = vpow2.f32 %v4183_v0  ;;  %v7388_v20 = vld [vmem:[#allocation12_spill] sm:$0xff] }
 0x2e7   :  { %4281 = vpow2.f32 %v4184_v6  ;;  %v158_v0 = vadd.f32 %v7388_v20, %v7381_v27  ;;  %v7389_v6 = vld [vmem:[#allocation19_spill] sm:$0xff] }
 0x2e8   :  { %v1117_v60 = vpop.f32.mrf.mxu3  ;;  %v1097_v40 = vpop.f32.mrf.mxu2  ;;  %v199_v7 = vadd.f32 %v7389_v6, %v7379_v12 }
 0x2e9   :  { %v1123_v46 = vadd.f32 %v1117_v60, %v278_v15  ;;  %v1122_v45 = vadd.f32 %v1097_v40, %v237_v26  ;;  %v5531_v40 = vld [vmem:[#allocation5 + $0x80] sm:$0xff] }
 0x2ea   :  { %v5536_v26 = vld [vmem:[#allocation5 + $0x60] sm:$0xff] }
 0x2eb   :  { %v4185_v47 = vmul.f32 -1.442695, %v1123_v46  ;;  %v5525_v46 = vld [vmem:[#allocation5 + $0xc0] sm:$0xff] }
 0x2ec   :  { %v4280_v50 = vpop.eup %4279 }
 0x2ed   :  { %v4282_v61 = vpop.eup %4281  ;;  %v1127_v2 = vadd.f32 1.0, %v4280_v50  ;;  %4283 = vpow2.f32 %v4185_v47 }
 0x2ee   :  { %v1146_v51 = vadd.f32 1.0, %v4282_v61  ;;  %v5528_v61 = vld [vmem:[#allocation5 + $0xa0] sm:$0xff] }
 0x2ef   :  { %4285 = vrcp.f32 %v1127_v2  ;;  %v1139_v29 = vand.u32 2147483648, %v1127_v2  ;;  %v1137_v36 = vand.u32 2147483647, %v1127_v2  ;;  %vm1133_vm7 = vweird.f32 %v1127_v2 }
 0x2f0   :  { %4287 = vrcp.f32 %v1146_v51  ;;  %v1158_v5 = vand.u32 2147483648, %v1146_v51  ;;  %v1156_v16 = vand.u32 2147483647, %v1146_v51  ;;  %vm1152_vm8 = vweird.f32 %v1146_v51 }
 0x2f1   :  { %v1140_v23 = vor.u32 1.1754944e-38, %v1139_v29  ;;  %vm1138_vm11 = vcmp.eq.f32.partialorder %v1137_v36, 8.507059e+37 }
 0x2f2   :  { %v1159_v56 = vor.u32 1.1754944e-38, %v1158_v5  ;;  %vm1157_vm12 = vcmp.eq.f32.partialorder %v1156_v16, 8.507059e+37 }
 0x2f3   :  { %v4284_v14 = vpop.eup %4283 }
 0x2f4   :  { %v1166_v9 = vadd.f32 1.0, %v4284_v14  ;;  %v7390_v14 = vld [vmem:[#allocation26_spill] sm:$0xff] }
 0x2f5   :  { %v4286_v30 = vpop.eup %4285  ;;  %v281_v44 = vadd.f32 %v7390_v14, %v7383_v22 }
 0x2f6   :  { %v4288_v42 = vpop.eup %4287  ;;  %v1129_v4 = vmul.f32 %v4286_v30, %v1127_v2  ;;  %4289 = vrcp.f32 %v1166_v9  ;;  %vm1134_vm5 = vweird.f32 %v4286_v30  ;;  %v1178_v59 = vand.u32 2147483648, %v1166_v9 }
 0x2f7   :  { %v1148_v28 = vmul.f32 %v4288_v42, %v1146_v51  ;;  %4291 = vtanh.f32 %v1122_v45  ;;  %vm1153_vm6 = vweird.f32 %v4288_v42  ;;  %vm1135_vm9 = vmor %vm1133_vm7, %vm1134_vm5  ;;  %vm1172_vm14 = vweird.f32 %v1166_v9  ;;  %v5539_v45 = vld [vmem:[#allocation5 + $0x40] sm:$0xff] }
 0x2f8   :  { %v1130_v11 = vsub.f32 1.0, %v1129_v4  ;;  %vm1154_vm10 = vmor %vm1152_vm8, %vm1153_vm6  ;;  %v1176_v37 = vand.u32 2147483647, %v1166_v9  ;;  %v1179_v13 = vor.u32 1.1754944e-38, %v1178_v59  ;;  %7391 = vst [vmem:[#allocation50_spill] sm:$0xff] %v5539_v45  ;;  %v5542_v4 = vld [vmem:[#allocation5 + $0x20] sm:$0xff] }
 0x2f9   :  { %v1149_v41 = vsub.f32 1.0, %v1148_v28 }
 0x2fa   :  { %v1131_v21 = vmul.f32 %v4286_v30, %v1130_v11  ;;  %vm1177_vm0 = vcmp.eq.f32.partialorder %v1176_v37, 8.507059e+37  ;;  %v5545_v11 = vld [vmem:[#allocation5] sm:$0xff] }
 0x2fb   :  { %v1150_v10 = vmul.f32 %v4288_v42, %v1149_v41 }
 0x2fc   :  { %v4290_v49 = vpop.eup %4289  ;;  %v1132_v1 = vadd.f32 %v4286_v30, %v1131_v21 }
 0x2fd   :  { %v1151_v48 = vadd.f32 %v4288_v42, %v1150_v10  ;;  %v1168_v62 = vmul.f32 %v4290_v49, %v1166_v9  ;;  %v4292_v8 = vpop.eup %4291  ;;  %vm1173_vm13 = vweird.f32 %v4290_v49  ;;  %v7392_v10 = vld [vmem:[#allocation18_spill] sm:$0xff] }
 0x2fe   :  { %v1136_v53 = vsel %vm1135_vm9, %v4286_v30, %v1132_v1  ;;  %vm1174_vm15 = vmor %vm1172_vm14, %vm1173_vm13  ;;  %v240_v16 = vadd.f32 %v7392_v10, %v7385_v55  ;;  %v5576_v10 = vld [vmem:[#allocation5 + $0x1d0] sm:$0xff] }
 0x2ff   :  { %v1141_v17 = vsel %vm1138_vm11, %v1140_v23, %v1136_v53  ;;  %v1155_v3 = vsel %vm1154_vm10, %v4288_v42, %v1151_v48  ;;  %v1169_v32 = vsub.f32 1.0, %v1168_v62 }
 0x300   :  { %v1160_v18 = vsel %vm1157_vm12, %v1159_v56, %v1155_v3  ;;  %v1183_v54 = vmul.f32 %v4292_v8, %v1141_v17 }
 0x301   :  { %v1182_v63 = vmul.f32 %v1160_v18, %v5395_v57  ;;  %v1170_v43 = vmul.f32 %v4290_v49, %v1169_v32  ;;  %v5506_v57 = vld [vmem:[#allocation5 + $0x160] sm:$0xff] }
 0x302   :  { %1476 = vmatpush.msrb.mxu0 %v5506_v57 }
 0x303   :  { %v5497_v31 = vadd.f32 %v1183_v54, %v1182_v63  ;;  %v1171_v58 = vadd.f32 %v4290_v49, %v1170_v43 }
 0x304   :  { %1477 = vmatpush.msrb.mxu0 %v5509_v34 }
 0x305   :  { %4293 = vtanh.f32 %v5497_v31  ;;  %v1175_v25 = vsel %vm1174_vm15, %v4290_v49, %v1171_v58 }
 0x306   :  { %v1180_v24 = vsel %vm1177_vm0, %v1179_v13, %v1175_v25  ;;  %1478 = vmatpush.msrb.mxu0 %v5512_v35 }
 0x308   :  { %1479 = vmatpush.msrb.mxu0 %v5515_v38 }
 0x30a   :  { %1480 = vmatpush.msrb.mxu0 %v5518_v52 }
 0x30b   :  { %v4294_v19 = vpop.eup %4293 }
 0x30c   :  { %v5500_v33 = vmul.f32 %v4294_v19, %v1180_v24  ;;  %1481 = vmatpush.msrb.mxu0 %v5525_v46 }
 0x30e   :  { %7387 = vst [vmem:[#allocation49_spill] sm:$0xff] %v5500_v33  ;;  %1272 = vmatmul.f32.vlgmr.msra.gmra.mxu0 %v5500_v33  ;;  %1292 = vmatmul.f32.vlgmr.msra.gmra.mxu1 %v5500_v33 }
 0x30f   :  { %1312 = vmatmul.f32.vlgmr.msra.gmra.mxu2 %v5500_v33  ;;  %1332 = vmatmul.f32.vlgmr.msra.gmra.mxu3 %v5500_v33  ;;  %v5696_v33 = vld [vmem:[#allocation5 + $0x70] sm:$0xff] }
 0x310   :  { %1482 = vmatpush.msrb.mxu0 %v5528_v61  ;;  %7398 = vst [vmem:[#allocation52_spill] sm:$0xff] %v5696_v33 }
 0x312   :  { %1483 = vmatpush.msrb.mxu0 %v5531_v40 }
 0x314   :  { %1484 = vmatpush.msrb.mxu0 %v5536_v26 }
 0x316   :  { %1485 = vmatpush.msrb.mxu0 %v5539_v45 }
 0x318   :  { %1486 = vmatpush.msrb.mxu0 %v5542_v4 }
 0x31a   :  { %1487 = vmatpush.msrb.mxu0 %v5545_v11 }
 0x38b   :  { %v1273_v15 = vpop.f32.mrf.mxu0  ;;  %v1293_v60 = vpop.f32.mrf.mxu1 }
 0x38c   :  { %v1336_v47 = vadd.f32 %v1273_v15, %v158_v0  ;;  %v1337_v50 = vadd.f32 %v1293_v60, %v199_v7 }
 0x38e   :  { %v4186_v2 = vmul.f32 -1.442695, %v1336_v47  ;;  %v4187_v51 = vmul.f32 -1.442695, %v1337_v50 }
 0x390   :  { %4295 = vpow2.f32 %v4186_v2 }
 0x391   :  { %4297 = vpow2.f32 %v4187_v51 }
 0x392   :  { %v1333_v9 = vpop.f32.mrf.mxu3  ;;  %v1313_v21 = vpop.f32.mrf.mxu2 }
 0x393   :  { %v1339_v30 = vadd.f32 %v1333_v9, %v281_v44  ;;  %v1338_v23 = vadd.f32 %v1313_v21, %v240_v16  ;;  %v5572_v21 = vld [vmem:[#allocation5 + $0x1c0] sm:$0xff]  ;;  %v5580_v16 = vld [vmem:[#allocation5 + $0x1d8] sm:$0xff] }
 0x395   :  { %v4188_v42 = vmul.f32 -1.442695, %v1339_v30 }
 0x396   :  { %v4296_v28 = vpop.eup %4295 }
 0x397   :  { %v4298_v41 = vpop.eup %4297  ;;  %v1343_v29 = vadd.f32 1.0, %v4296_v28  ;;  %4299 = vpow2.f32 %v4188_v42 }
 0x398   :  { %v1362_v5 = vadd.f32 1.0, %v4298_v41  ;;  %v5562_v41 = vld [vmem:[#allocation5 + $0x1e8] sm:$0xff] }
 0x399   :  { %4301 = vrcp.f32 %v1343_v29  ;;  %v1355_v17 = vand.u32 2147483648, %v1343_v29  ;;  %v1353_v18 = vand.u32 2147483647, %v1343_v29  ;;  %vm1349_vm3 = vweird.f32 %v1343_v29  ;;  %1708 = vmatpush.msra.mxu1 %v5562_v41 }
 0x39a   :  { %4303 = vrcp.f32 %v1362_v5  ;;  %v1374_v3 = vand.u32 2147483648, %v1362_v5  ;;  %v1372_v63 = vand.u32 2147483647, %v1362_v5  ;;  %vm1368_vm4 = vweird.f32 %v1362_v5 }
 0x39b   :  { %v1356_v59 = vor.u32 1.1754944e-38, %v1355_v17  ;;  %vm1354_vm7 = vcmp.eq.f32.partialorder %v1353_v18, 8.507059e+37  ;;  %v5608_v17 = vld [vmem:[#allocation5 + $0x168] sm:$0xff] }
 0x39c   :  { %v1375_v13 = vor.u32 1.1754944e-38, %v1374_v3  ;;  %vm1373_vm8 = vcmp.eq.f32.partialorder %v1372_v63, 8.507059e+37  ;;  %v5610_v3 = vld [vmem:[#allocation5 + $0x170] sm:$0xff]  ;;  %v5618_v18 = vld [vmem:[#allocation5 + $0x148] sm:$0xff]  ;;  %v5622_v63 = vld [vmem:[#allocation5 + $0x158] sm:$0xff] }
 0x39d   :  { %v4300_v36 = vpop.eup %4299 }
 0x39e   :  { %v1382_v49 = vadd.f32 1.0, %v4300_v36  ;;  %v5574_v36 = vld [vmem:[#allocation5 + $0x1c8] sm:$0xff] }
 0x39f   :  { %v4302_v1 = vpop.eup %4301  ;;  %1709 = vmatpush.msra.mxu1 %v5574_v36 }
 0x3a0   :  { %v4304_v48 = vpop.eup %4303  ;;  %v1345_v62 = vmul.f32 %v4302_v1, %v1343_v29  ;;  %4305 = vrcp.f32 %v1382_v49  ;;  %vm1350_vm1 = vweird.f32 %v4302_v1  ;;  %v1394_v51 = vand.u32 2147483648, %v1382_v49  ;;  %v5564_v29 = vld [vmem:[#allocation5 + $0x1f0] sm:$0xff] }
 0x3a1   :  { %v1364_v56 = vmul.f32 %v4304_v48, %v1362_v5  ;;  %4307 = vtanh.f32 %v1338_v23  ;;  %vm1369_vm2 = vweird.f32 %v4304_v48  ;;  %vm1351_vm5 = vmor %vm1349_vm3, %vm1350_vm1  ;;  %vm1388_vm10 = vweird.f32 %v1382_v49  ;;  %v5568_v5 = vld [vmem:[#allocation5 + $0x1f8] sm:$0xff]  ;;  %1728 = vmatpush.msra.mxu2 %v5564_v29  ;;  %v5588_v23 = vld [vmem:[#allocation5 + $0x1b0] sm:$0xff] }
 0x3a2   :  { %v1346_v53 = vsub.f32 1.0, %v1345_v62  ;;  %vm1370_vm6 = vmor %vm1368_vm4, %vm1369_vm2  ;;  %v1392_v14 = vand.u32 2147483647, %v1382_v49  ;;  %v1395_v9 = vor.u32 1.1754944e-38, %v1394_v51  ;;  %1748 = vmatpush.msra.mxu3 %v5568_v5  ;;  %v5596_v62 = vld [vmem:[#allocation5 + $0x180] sm:$0xff]  ;;  %v5664_v51 = vld [vmem:[#allocation5 + $0xd0] sm:$0xff] }
 0x3a3   :  { %v1365_v8 = vsub.f32 1.0, %v1364_v56  ;;  %1729 = vmatpush.msra.mxu2 %v5576_v10  ;;  %v5598_v56 = vld [vmem:[#allocation5 + $0x188] sm:$0xff] }
 0x3a4   :  { %v1347_v32 = vmul.f32 %v4302_v1, %v1346_v53  ;;  %vm1393_vm12 = vcmp.eq.f32.partialorder %v1392_v14, 8.507059e+37  ;;  %1749 = vmatpush.msra.mxu3 %v5580_v16  ;;  %v5600_v53 = vld [vmem:[#allocation5 + $0x190] sm:$0xff]  ;;  %v5666_v14 = vld [vmem:[#allocation5 + $0xd8] sm:$0xff] }
 0x3a5   :  { %v1366_v54 = vmul.f32 %v4304_v48, %v1365_v8  ;;  %1730 = vmatpush.msra.mxu2 %v5588_v23  ;;  %v5604_v8 = vld [vmem:[#allocation5 + $0x198] sm:$0xff] }
 0x3a6   :  { %v4306_v43 = vpop.eup %4305  ;;  %v1348_v58 = vadd.f32 %v4302_v1, %v1347_v32  ;;  %v5612_v32 = vld [vmem:[#allocation5 + $0x178] sm:$0xff] }
 0x3a7   :  { %v1367_v37 = vadd.f32 %v4304_v48, %v1366_v54  ;;  %v1384_v25 = vmul.f32 %v4306_v43, %v1382_v49  ;;  %v4308_v24 = vpop.eup %4307  ;;  %vm1389_vm9 = vweird.f32 %v4306_v43  ;;  %v5584_v49 = vld [vmem:[#allocation5 + $0x1a0] sm:$0xff]  ;;  %1731 = vmatpush.msra.mxu2 %v5600_v53  ;;  %v5620_v54 = vld [vmem:[#allocation5 + $0x150] sm:$0xff] }
 0x3a8   :  { %v1352_v19 = vsel %vm1351_vm5, %v4302_v1, %v1348_v58  ;;  %vm1390_vm11 = vmor %vm1388_vm10, %vm1389_vm9  ;;  %v5586_v1 = vld [vmem:[#allocation5 + $0x1a8] sm:$0xff]  ;;  %v5630_v58 = vld [vmem:[#allocation5 + $0x130] sm:$0xff] }
 0x3a9   :  { %v1357_v20 = vsel %vm1354_vm7, %v1356_v59, %v1352_v19  ;;  %v1371_v0 = vsel %vm1370_vm6, %v4304_v48, %v1367_v37  ;;  %v1385_v6 = vsub.f32 1.0, %v1384_v25  ;;  %1710 = vmatpush.msra.mxu1 %v5586_v1  ;;  %v5592_v48 = vld [vmem:[#allocation5 + $0x1b8] sm:$0xff]  ;;  %1732 = vmatpush.msra.mxu2 %v5610_v3  ;;  %v5638_v37 = vld [vmem:[#allocation5 + $0x108] sm:$0xff]  ;;  %v5640_v25 = vld [vmem:[#allocation5 + $0x110] sm:$0xff] }
 0x3aa   :  { %v1376_v7 = vsel %vm1373_vm8, %v1375_v13, %v1371_v0  ;;  %v1399_v15 = vmul.f32 %v4308_v24, %v1357_v20  ;;  %1750 = vmatpush.msra.mxu3 %v5592_v48  ;;  %v5632_v59 = vld [vmem:[#allocation5 + $0x138] sm:$0xff]  ;;  %v5648_v19 = vld [vmem:[#allocation5 + $0xe8] sm:$0xff]  ;;  %v5650_v24 = vld [vmem:[#allocation5 + $0xf0] sm:$0xff] }
 0x3ab   :  { %v1398_v60 = vmul.f32 %v1376_v7, %v5497_v31  ;;  %v1386_v47 = vmul.f32 %v4306_v43, %v1385_v6  ;;  %v5560_v31 = vld [vmem:[#allocation5 + $0x1e0] sm:$0xff]  ;;  %1711 = vmatpush.msra.mxu1 %v5598_v56  ;;  %1733 = vmatpush.msra.mxu2 %v5620_v54  ;;  %v5642_v13 = vld [vmem:[#allocation5 + $0x118] sm:$0xff]  ;;  %v7394_v0 = vld [vmem:[#allocation13_spill] sm:$0xff] }
 0x3ac   :  { %1688 = vmatpush.msra.mxu0 %v5560_v31  ;;  %1751 = vmatpush.msra.mxu3 %v5604_v8  ;;  %v5652_v20 = vld [vmem:[#allocation5 + $0xf8] sm:$0xff]  ;;  %v161_v6 = vadd.f32 %v7394_v0, %v7381_v27  ;;  %v7395_v7 = vld [vmem:[#allocation21_spill] sm:$0xff] }
 0x3ad   :  { %v5551_v50 = vadd.f32 %v1399_v15, %v1398_v60  ;;  %v1387_v2 = vadd.f32 %v4306_v43, %v1386_v47  ;;  %1712 = vmatpush.msra.mxu1 %v5608_v17  ;;  %1734 = vmatpush.msra.mxu2 %v5630_v58  ;;  %v202_v15 = vadd.f32 %v7395_v7, %v7379_v12  ;;  %v5676_v0 = vld [vmem:[#allocation5 + $0xb8] sm:$0xff] }
 0x3ae   :  { %1689 = vmatpush.msra.mxu0 %v5572_v21  ;;  %1752 = vmatpush.msra.mxu3 %v5612_v32 }
 0x3af   :  { %4309 = vtanh.f32 %v5551_v50  ;;  %v1391_v44 = vsel %vm1390_vm11, %v4306_v43, %v1387_v2  ;;  %1713 = vmatpush.msra.mxu1 %v5618_v18  ;;  %v5628_v43 = vld [vmem:[#allocation5 + $0x128] sm:$0xff]  ;;  %1735 = vmatpush.msra.mxu2 %v5640_v25 }
 0x3b0   :  { %v1396_v42 = vsel %vm1393_vm12, %v1395_v9, %v1391_v44  ;;  %1690 = vmatpush.msra.mxu0 %v5584_v49  ;;  %1753 = vmatpush.msra.mxu3 %v5622_v63  ;;  %v5662_v2 = vld [vmem:[#allocation5 + $0xc8] sm:$0xff] }
 0x3b1   :  { %1714 = vmatpush.msra.mxu1 %v5628_v43  ;;  %1736 = vmatpush.msra.mxu2 %v5650_v24 }
 0x3b2   :  { %1691 = vmatpush.msra.mxu0 %v5596_v62  ;;  %1754 = vmatpush.msra.mxu3 %v5632_v59 }
 0x3b3   :  { %1715 = vmatpush.msra.mxu1 %v5638_v37  ;;  %1737 = vmatpush.msra.mxu2 %v5664_v51 }
 0x3b4   :  { %1692 = vmatpush.msra.mxu0 %v5506_v57  ;;  %1755 = vmatpush.msra.mxu3 %v5642_v13 }
 0x3b5   :  { %v4310_v30 = vpop.eup %4309  ;;  %1716 = vmatpush.msra.mxu1 %v5648_v19 }
 0x3b6   :  { %v5554_v28 = vmul.f32 %v4310_v30, %v1396_v42  ;;  %1693 = vmatpush.msra.mxu0 %v5509_v34  ;;  %1756 = vmatpush.msra.mxu3 %v5652_v20  ;;  %v5672_v30 = vld [vmem:[#allocation5 + $0xa8] sm:$0xff]  ;;  %v5674_v42 = vld [vmem:[#allocation5 + $0xb0] sm:$0xff] }
 0x3b7   :  { %1717 = vmatpush.msra.mxu1 %v5662_v2  ;;  %1738 = vmatpush.msra.mxu2 %v5674_v42 }
 0x3b8   :  { %7393 = vst [vmem:[#allocation51_spill] sm:$0xff] %v5554_v28  ;;  %1488 = vmatmul.f32.vlgmr.msrb.gmra.mxu0 %v5554_v28  ;;  %1508 = vmatmul.f32.vlgmr.msrb.gmra.mxu1 %v5554_v28 }
 0x3b9   :  { %1528 = vmatmul.f32.vlgmr.msrb.gmra.mxu2 %v5554_v28  ;;  %1548 = vmatmul.f32.vlgmr.msrb.gmra.mxu3 %v5554_v28 }
 0x3ba   :  { %1694 = vmatpush.msra.mxu0 %v5512_v35  ;;  %1757 = vmatpush.msra.mxu3 %v5666_v14 }
 0x3bb   :  { %1718 = vmatpush.msra.mxu1 %v5672_v30 }
 0x3bc   :  { %1695 = vmatpush.msra.mxu0 %v5515_v38  ;;  %1758 = vmatpush.msra.mxu3 %v5676_v0 }
 0x3be   :  { %1696 = vmatpush.msra.mxu0 %v5518_v52 }
 0x3c0   :  { %1697 = vmatpush.msra.mxu0 %v5525_v46 }
 0x3c2   :  { %1698 = vmatpush.msra.mxu0 %v5528_v61 }
 0x3c4   :  { %1699 = vmatpush.msra.mxu0 %v5531_v40 }
 0x3c6   :  { %1700 = vmatpush.msra.mxu0 %v5536_v26 }
 0x3c8   :  { %1701 = vmatpush.msra.mxu0 %v5539_v45  ;;  %v5724_v45 = vld [vmem:[#allocation5 + $0x10] sm:$0xff] }
 0x3c9   :  { %7403 = vst [vmem:[#allocation41_spill] sm:$0xff] %v5724_v45 }
 0x3ca   :  { %1702 = vmatpush.msra.mxu0 %v5542_v4 }
 0x3cc   :  { %1703 = vmatpush.msra.mxu0 %v5545_v11 }
 0x3ce   :  { %1904 = vmatpush.msrb.mxu0 %v5560_v31 }
 0x3d0   :  { %1905 = vmatpush.msrb.mxu0 %v5572_v21 }
 0x3d2   :  { %1906 = vmatpush.msrb.mxu0 %v5584_v49 }
 0x3d4   :  { %1907 = vmatpush.msrb.mxu0 %v5596_v62 }
 0x3d6   :  { %1908 = vmatpush.msrb.mxu0 %v5506_v57 }
 0x3d8   :  { %1909 = vmatpush.msrb.mxu0 %v5509_v34 }
 0x3da   :  { %1910 = vmatpush.msrb.mxu0 %v5512_v35 }
 0x3dc   :  { %1911 = vmatpush.msrb.mxu0 %v5515_v38 }
 0x3de   :  { %1912 = vmatpush.msrb.mxu0 %v5518_v52 }
 0x3e0   :  { %1913 = vmatpush.msrb.mxu0 %v5525_v46 }
 0x3e2   :  { %1914 = vmatpush.msrb.mxu0 %v5528_v61 }
 0x3e4   :  { %1915 = vmatpush.msrb.mxu0 %v5531_v40  ;;  %v7408_v40 = vld [vmem:[#allocation50_spill] sm:$0xff] }
 0x3e6   :  { %1916 = vmatpush.msrb.mxu0 %v5536_v26  ;;  %v7412_v26 = vld [vmem:[#allocation41_spill] sm:$0xff] }
 0x3e8   :  { %1917 = vmatpush.msrb.mxu0 %v7408_v40  ;;  %v2085_v40 = vld [vmem:[#allocation7 + $0xc8] sm:$0xff] }
 0x3ea   :  { %1918 = vmatpush.msrb.mxu0 %v5542_v4  ;;  %v2120_v4 = vld [vmem:[#allocation7 + $0x1e0] sm:$0xff] }
 0x3ec   :  { %1919 = vmatpush.msrb.mxu0 %v5545_v11  ;;  %v2119_v11 = vld [vmem:[#allocation7 + $0x1d8] sm:$0xff] }
 0x435   :  { %v1489_v60 = vpop.f32.mrf.mxu0  ;;  %v1509_v47 = vpop.f32.mrf.mxu1 }
 0x436   :  { %v1552_v44 = vadd.f32 %v1489_v60, %v161_v6  ;;  %v1553_v9 = vadd.f32 %v1509_v47, %v202_v15  ;;  %v5682_v6 = vld [vmem:[#allocation5 + $0x88] sm:$0xff]  ;;  %v5684_v15 = vld [vmem:[#allocation5 + $0x90] sm:$0xff]  ;;  %v5686_v60 = vld [vmem:[#allocation5 + $0x98] sm:$0xff] }
 0x437   :  { %1719 = vmatpush.msra.mxu1 %v5682_v6  ;;  %v7396_v47 = vld [vmem:[#allocation30_spill] sm:$0xff]  ;;  %1739 = vmatpush.msra.mxu2 %v5684_v15 }
 0x438   :  { %v4189_v7 = vmul.f32 -1.442695, %v1552_v44  ;;  %v4190_v28 = vmul.f32 -1.442695, %v1553_v9  ;;  %v284_v44 = vadd.f32 %v7396_v47, %v7383_v22  ;;  %1759 = vmatpush.msra.mxu3 %v5686_v60  ;;  %v5694_v9 = vld [vmem:[#allocation5 + $0x68] sm:$0xff]  ;;  %v5706_v47 = vld [vmem:[#allocation5 + $0x50] sm:$0xff] }
 0x439   :  { %7397 = vst [vmem:[#allocation37_spill] sm:$0xff] %v5694_v9  ;;  %1720 = vmatpush.msra.mxu1 %v5694_v9  ;;  %1740 = vmatpush.msra.mxu2 %v5696_v33  ;;  %v5708_v22 = vld [vmem:[#allocation5 + $0x58] sm:$0xff]  ;;  %v5722_v9 = vld [vmem:[#allocation5 + $0x8] sm:$0xff] }
 0x43a   :  { %4311 = vpow2.f32 %v4189_v7  ;;  %1760 = vmatpush.msra.mxu3 %v5698_v39  ;;  %7401 = vst [vmem:[#allocation39_spill] sm:$0xff] %v5706_v47  ;;  %v5718_v39 = vld [vmem:[#allocation5 + $0x38] sm:$0xff] }
 0x43b   :  { %4313 = vpow2.f32 %v4190_v28  ;;  %v5704_v28 = vld [vmem:[#allocation5 + $0x48] sm:$0xff]  ;;  %7402 = vst [vmem:[#allocation40_spill] sm:$0xff] %v5708_v22  ;;  %1741 = vmatpush.msra.mxu2 %v5706_v47 }
 0x43c   :  { %v1549_v12 = vpop.f32.mrf.mxu3  ;;  %7400 = vst [vmem:[#allocation54_spill] sm:$0xff] %v5704_v28  ;;  %1721 = vmatpush.msra.mxu1 %v5704_v28  ;;  %1761 = vmatpush.msra.mxu3 %v5708_v22 }
 0x43d   :  { %v1555_v7 = vadd.f32 %v1549_v12, %v284_v44  ;;  %v5714_v12 = vld [vmem:[#allocation5 + $0x28] sm:$0xff]  ;;  %v5716_v44 = vld [vmem:[#allocation5 + $0x30] sm:$0xff] }
 0x43e   :  { %1722 = vmatpush.msra.mxu1 %v5714_v12  ;;  %1742 = vmatpush.msra.mxu2 %v5716_v44 }
 0x43f   :  { %v4191_v27 = vmul.f32 -1.442695, %v1555_v7  ;;  %v5726_v7 = vld [vmem:[#allocation5 + $0x18] sm:$0xff]  ;;  %1762 = vmatpush.msra.mxu3 %v5718_v39 }
 0x440   :  { %v4312_v33 = vpop.eup %4311  ;;  %1723 = vmatpush.msra.mxu1 %v5722_v9  ;;  %1743 = vmatpush.msra.mxu2 %v5724_v45 }
 0x441   :  { %v4314_v47 = vpop.eup %4313  ;;  %v5728_v28 = vadd.f32 1.0, %v4312_v33  ;;  %4315 = vpow2.f32 %v4191_v27  ;;  %1763 = vmatpush.msra.mxu3 %v5726_v7  ;;  %v1529_v27 = vpop.f32.mrf.mxu2 }
 0x442   :  { %v5732_v22 = vadd.f32 1.0, %v4314_v47  ;;  %1924 = vmatpush.msrb.mxu1 %v5562_v41  ;;  %1944 = vmatpush.msrb.mxu2 %v5564_v29  ;;  %v7404_v47 = vld [vmem:[#allocation20_spill] sm:$0xff] }
 0x443   :  { %4317 = vrcp.f32 %v5728_v28  ;;  %1964 = vmatpush.msrb.mxu3 %v5568_v5  ;;  %v243_v45 = vadd.f32 %v7404_v47, %v7385_v55  ;;  %vm1565_vm15 = vweird.f32 %v5728_v28  ;;  %v2104_v47 = vld [vmem:[#allocation7 + $0x160] sm:$0xff] }
 0x444   :  { %4319 = vrcp.f32 %v5732_v22  ;;  %1925 = vmatpush.msrb.mxu1 %v5574_v36  ;;  %1945 = vmatpush.msrb.mxu2 %v5576_v10  ;;  %v1590_v49 = vand.u32 2147483648, %v5732_v22  ;;  %vm1584_vm0 = vweird.f32 %v5732_v22 }
 0x445   :  { %1965 = vmatpush.msrb.mxu3 %v5580_v16  ;;  %v1554_v29 = vadd.f32 %v1529_v27, %v243_v45  ;;  %v1571_v16 = vand.u32 2147483648, %v5728_v28  ;;  %v2110_v27 = vld [vmem:[#allocation7 + $0x190] sm:$0xff] }
 0x446   :  { %1926 = vmatpush.msrb.mxu1 %v5586_v1  ;;  %1946 = vmatpush.msrb.mxu2 %v5588_v23  ;;  %v1569_v23 = vand.u32 2147483647, %v5728_v28 }
 0x447   :  { %v4316_v33 = vpop.eup %4315  ;;  %1966 = vmatpush.msrb.mxu3 %v5592_v48  ;;  %v1588_v48 = vand.u32 2147483647, %v5732_v22  ;;  %v1572_v34 = vor.u32 1.1754944e-38, %v1571_v16  ;;  %v2107_v16 = vld [vmem:[#allocation7 + $0x178] sm:$0xff] }
 0x448   :  { %v5750_v31 = vadd.f32 1.0, %v4316_v33  ;;  %1927 = vmatpush.msrb.mxu1 %v5598_v56  ;;  %1947 = vmatpush.msrb.mxu2 %v5600_v53  ;;  %vm1570_vm3 = vcmp.eq.f32.partialorder %v1569_v23, 8.507059e+37  ;;  %v2111_v33 = vld [vmem:[#allocation7 + $0x198] sm:$0xff]  ;;  %v2100_v23 = vld [vmem:[#allocation7 + $0x140] sm:$0xff] }
 0x449   :  { %v4318_v41 = vpop.eup %4317  ;;  %1967 = vmatpush.msrb.mxu3 %v5604_v8  ;;  %vm1589_vm4 = vcmp.eq.f32.partialorder %v1588_v48, 8.507059e+37  ;;  %v2102_v48 = vld [vmem:[#allocation7 + $0x150] sm:$0xff] }
 0x44a   :  { %v4320_v5 = vpop.eup %4319  ;;  %v1561_v21 = vmul.f32 %v4318_v41, %v5728_v28  ;;  %4321 = vrcp.f32 %v5750_v31  ;;  %1928 = vmatpush.msrb.mxu1 %v5608_v17  ;;  %1948 = vmatpush.msrb.mxu2 %v5610_v3  ;;  %vm1566_vm13 = vweird.f32 %v4318_v41  ;;  %v1591_v17 = vor.u32 1.1754944e-38, %v1590_v49  ;;  %v2114_v28 = vld [vmem:[#allocation7 + $0x1b0] sm:$0xff] }
 0x44b   :  { %v1580_v36 = vmul.f32 %v4320_v5, %v5732_v22  ;;  %4323 = vtanh.f32 %v1554_v29  ;;  %1968 = vmatpush.msrb.mxu3 %v5612_v32  ;;  %vm1585_vm14 = vweird.f32 %v4320_v5  ;;  %vm1567_vm1 = vmor %vm1565_vm15, %vm1566_vm13  ;;  %v1610_v46 = vand.u32 2147483648, %v5750_v31  ;;  %v7413_v29 = vld [vmem:[#allocation28_spill] sm:$0xff] }
 0x44c   :  { %v1562_v45 = vsub.f32 1.0, %v1561_v21  ;;  %1929 = vmatpush.msrb.mxu1 %v5618_v18  ;;  %1949 = vmatpush.msrb.mxu2 %v5620_v54  ;;  %vm1586_vm2 = vmor %vm1584_vm0, %vm1585_vm14  ;;  %vm1604_vm6 = vweird.f32 %v5750_v31 }
 0x44d   :  { %v1581_v10 = vsub.f32 1.0, %v1580_v36  ;;  %1969 = vmatpush.msrb.mxu3 %v5622_v63  ;;  %v7415_v36 = vld [vmem:[#allocation29_spill] sm:$0xff] }
 0x44e   :  { %v1563_v1 = vmul.f32 %v4318_v41, %v1562_v45  ;;  %1930 = vmatpush.msrb.mxu1 %v5628_v43  ;;  %1950 = vmatpush.msrb.mxu2 %v5630_v58  ;;  %v7416_v45 = vld [vmem:[#allocation24_spill] sm:$0xff] }
 0x44f   :  { %v1582_v57 = vmul.f32 %v4320_v5, %v1581_v10  ;;  %1970 = vmatpush.msrb.mxu3 %v5632_v59  ;;  %v7405_v59 = vld [vmem:[#allocation37_spill] sm:$0xff]  ;;  %v205_v10 = vadd.f32 %v7416_v45, %v7415_v36  ;;  %v2067_v45 = vld [vmem:[#allocation7 + $0x38] sm:$0xff] }
 0x450   :  { %v5775_v62 = vpop.eup %4321  ;;  %v1564_v56 = vadd.f32 %v4318_v41, %v1563_v1  ;;  %1931 = vmatpush.msrb.mxu1 %v5638_v37  ;;  %1951 = vmatpush.msrb.mxu2 %v5640_v25  ;;  %v1611_v37 = vor.u32 1.1754944e-38, %v1610_v46  ;;  %v7406_v25 = vld [vmem:[#allocation52_spill] sm:$0xff] }
 0x451   :  { %v1583_v53 = vadd.f32 %v4320_v5, %v1582_v57  ;;  %v1600_v8 = vmul.f32 %v5775_v62, %v5750_v31  ;;  %v4324_v22 = vpop.eup %4323  ;;  %1971 = vmatpush.msrb.mxu3 %v5642_v13  ;;  %vm1605_vm5 = vweird.f32 %v5775_v62  ;;  %v7407_v13 = vld [vmem:[#allocation53_spill] sm:$0xff]  ;;  %v2088_v46 = vld [vmem:[#allocation7 + $0xe0] sm:$0xff] }
 0x452   :  { %v1568_v3 = vsel %vm1567_vm1, %v4318_v41, %v1564_v56  ;;  %1932 = vmatpush.msrb.mxu1 %v5648_v19  ;;  %1952 = vmatpush.msrb.mxu2 %v5650_v24  ;;  %vm1606_vm7 = vmor %vm1604_vm6, %vm1605_vm5  ;;  %v7409_v19 = vld [vmem:[#allocation54_spill] sm:$0xff]  ;;  %v2101_v57 = vld [vmem:[#allocation7 + $0x148] sm:$0xff] }
 0x453   :  { %v1573_v35 = vsel %vm1570_vm3, %v1572_v34, %v1568_v3  ;;  %v1587_v32 = vsel %vm1586_vm2, %v4320_v5, %v1583_v53  ;;  %v1601_v18 = vsub.f32 1.0, %v1600_v8  ;;  %1972 = vmatpush.msrb.mxu3 %v5652_v20  ;;  %v2106_v41 = vld [vmem:[#allocation7 + $0x170] sm:$0xff]  ;;  %v2103_v34 = vld [vmem:[#allocation7 + $0x158] sm:$0xff]  ;;  %v2096_v53 = vld [vmem:[#allocation7 + $0x120] sm:$0xff] }
 0x454   :  { %v1592_v54 = vsel %vm1589_vm4, %v1591_v17, %v1587_v32  ;;  %v1615_v63 = vmul.f32 %v4324_v22, %v1573_v35  ;;  %1933 = vmatpush.msrb.mxu1 %v5662_v2  ;;  %1953 = vmatpush.msrb.mxu2 %v5664_v51  ;;  %v7410_v2 = vld [vmem:[#allocation39_spill] sm:$0xff]  ;;  %v7411_v51 = vld [vmem:[#allocation40_spill] sm:$0xff]  ;;  %v7414_v5 = vld [vmem:[#allocation14_spill] sm:$0xff] }
 0x455   :  { %v1614_v43 = vmul.f32 %v1592_v54, %v5551_v50  ;;  %v1602_v38 = vmul.f32 %v5775_v62, %v1601_v18  ;;  %1973 = vmatpush.msrb.mxu3 %v5666_v14  ;;  %v1608_v50 = vand.u32 2147483647, %v5750_v31  ;;  %v2105_v31 = vld [vmem:[#allocation7 + $0x168] sm:$0xff]  ;;  %v164_v21 = vadd.f32 %v7414_v5, %v7413_v29  ;;  %v2098_v17 = vld [vmem:[#allocation7 + $0x130] sm:$0xff]  ;;  %v2099_v35 = vld [vmem:[#allocation7 + $0x138] sm:$0xff] }
 0x456   :  { %1934 = vmatpush.msrb.mxu1 %v5672_v30  ;;  %1954 = vmatpush.msrb.mxu2 %v5674_v42  ;;  %v2121_v30 = vld [vmem:[#allocation7 + $0x1e8] sm:$0xff]  ;;  %v2122_v42 = vld [vmem:[#allocation7 + $0x1f0] sm:$0xff]  ;;  %v2092_v32 = vld [vmem:[#allocation7 + $0x100] sm:$0xff] }
 0x457   :  { %v5799_v58 = vadd.f32 %v1615_v63, %v1614_v43  ;;  %v1603_v52 = vadd.f32 %v5775_v62, %v1602_v38  ;;  %1974 = vmatpush.msrb.mxu3 %v5676_v0  ;;  %vm1609_vm8 = vcmp.eq.f32.partialorder %v1608_v50, 8.507059e+37  ;;  %v2116_v0 = vld [vmem:[#allocation7 + $0x1c0] sm:$0xff]  ;;  %v2097_v8 = vld [vmem:[#allocation7 + $0x128] sm:$0xff]  ;;  %v2094_v54 = vld [vmem:[#allocation7 + $0x110] sm:$0xff] }
 0x458   :  { %1935 = vmatpush.msrb.mxu1 %v5682_v6  ;;  %1955 = vmatpush.msrb.mxu2 %v5684_v15  ;;  %v2117_v6 = vld [vmem:[#allocation7 + $0x1c8] sm:$0xff]  ;;  %v2118_v15 = vld [vmem:[#allocation7 + $0x1d0] sm:$0xff]  ;;  %v2095_v63 = vld [vmem:[#allocation7 + $0x118] sm:$0xff] }
 0x459   :  { %4325 = vtanh.f32 %v5799_v58  ;;  %1975 = vmatpush.msrb.mxu3 %v5686_v60  ;;  %v1607_v61 = vsel %vm1606_vm7, %v5775_v62, %v1603_v52  ;;  %v2112_v60 = vld [vmem:[#allocation7 + $0x1a0] sm:$0xff]  ;;  %v2093_v18 = vld [vmem:[#allocation7 + $0x108] sm:$0xff]  ;;  %v7418_v38 = vld [vmem:[#allocation31_spill] sm:$0xff] }
 0x45a   :  { %1936 = vmatpush.msrb.mxu1 %v7405_v59  ;;  %1956 = vmatpush.msrb.mxu2 %v7406_v25  ;;  %v1612_v20 = vsel %vm1609_vm8, %v1611_v37, %v1607_v61  ;;  %v7417_v43 = vld [vmem:[#allocation33_spill] sm:$0xff]  ;;  %v2090_v61 = vld [vmem:[#allocation7 + $0xf0] sm:$0xff]  ;;  %v2091_v37 = vld [vmem:[#allocation7 + $0xf8] sm:$0xff] }
 0x45b   :  { %1976 = vmatpush.msrb.mxu3 %v7407_v13  ;;  %v287_v52 = vadd.f32 %v7418_v38, %v7417_v43  ;;  %v2089_v50 = vld [vmem:[#allocation7 + $0xe8] sm:$0xff]  ;;  %v2084_v13 = vld [vmem:[#allocation7 + $0xc0] sm:$0xff] }
 0x45c   :  { %1937 = vmatpush.msrb.mxu1 %v7409_v19  ;;  %1957 = vmatpush.msrb.mxu2 %v7410_v2  ;;  %v2086_v19 = vld [vmem:[#allocation7 + $0xd0] sm:$0xff]  ;;  %v2080_v2 = vld [vmem:[#allocation7 + $0xa0] sm:$0xff]  ;;  %v2065_v5 = vld [vmem:[#allocation7 + $0x28] sm:$0xff] }
 0x45d   :  { %1977 = vmatpush.msrb.mxu3 %v7411_v51  ;;  %v2081_v51 = vld [vmem:[#allocation7 + $0xa8] sm:$0xff] }
 0x45e   :  { %1938 = vmatpush.msrb.mxu1 %v5714_v12  ;;  %1958 = vmatpush.msrb.mxu2 %v5716_v44  ;;  %v2115_v12 = vld [vmem:[#allocation7 + $0x1b8] sm:$0xff]  ;;  %v2108_v44 = vld [vmem:[#allocation7 + $0x180] sm:$0xff] }
 0x45f   :  { %v4326_v24 = vpop.eup %4325  ;;  %1978 = vmatpush.msrb.mxu3 %v5718_v39  ;;  %v2123_v39 = vld [vmem:[#allocation7 + $0x1f8] sm:$0xff] }
 0x460   :  { %v5826_v14 = vmul.f32 %v4326_v24, %v1612_v20  ;;  %1939 = vmatpush.msrb.mxu1 %v5722_v9  ;;  %1959 = vmatpush.msrb.mxu2 %v7412_v26  ;;  %v2113_v9 = vld [vmem:[#allocation7 + $0x1a8] sm:$0xff]  ;;  %v2087_v24 = vld [vmem:[#allocation7 + $0xd8] sm:$0xff]  ;;  %v2082_v26 = vld [vmem:[#allocation7 + $0xb0] sm:$0xff] }
 0x461   :  { %1979 = vmatpush.msrb.mxu3 %v5726_v7  ;;  %v2109_v7 = vld [vmem:[#allocation7 + $0x188] sm:$0xff] }
 0x462   :  { %1704 = vmatmul.f32.vlgmr.msra.gmra.mxu0 %v5826_v14  ;;  %1724 = vmatmul.f32.vlgmr.msra.gmra.mxu1 %v5826_v14 }
 0x463   :  { %1744 = vmatmul.f32.vlgmr.msra.gmra.mxu2 %v5826_v14  ;;  %1764 = vmatmul.f32.vlgmr.msra.gmra.mxu3 %v5826_v14 }
 0x464   :  { %2134 = vmatpush.msra.mxu0 %v2120_v4  ;;  %2175 = vmatpush.msra.mxu1 %v2121_v30  ;;  %v2083_v30 = vld [vmem:[#allocation7 + $0xb8] sm:$0xff] }
 0x465   :  { %2216 = vmatpush.msra.mxu2 %v2122_v42  ;;  %2257 = vmatpush.msra.mxu3 %v2123_v39  ;;  %v2076_v42 = vld [vmem:[#allocation7 + $0x80] sm:$0xff]  ;;  %v2077_v39 = vld [vmem:[#allocation7 + $0x88] sm:$0xff] }
 0x466   :  { %2135 = vmatpush.msra.mxu0 %v2116_v0  ;;  %2176 = vmatpush.msra.mxu1 %v2117_v6 }
 0x467   :  { %2217 = vmatpush.msra.mxu2 %v2118_v15  ;;  %2258 = vmatpush.msra.mxu3 %v2119_v11  ;;  %v2078_v15 = vld [vmem:[#allocation7 + $0x90] sm:$0xff]  ;;  %v2079_v11 = vld [vmem:[#allocation7 + $0x98] sm:$0xff] }
 0x468   :  { %2136 = vmatpush.msra.mxu0 %v2112_v60  ;;  %2177 = vmatpush.msra.mxu1 %v2113_v9  ;;  %v2072_v9 = vld [vmem:[#allocation7 + $0x60] sm:$0xff] }
 0x469   :  { %2218 = vmatpush.msra.mxu2 %v2114_v28  ;;  %2259 = vmatpush.msra.mxu3 %v2115_v12  ;;  %v2073_v28 = vld [vmem:[#allocation7 + $0x68] sm:$0xff]  ;;  %v2074_v12 = vld [vmem:[#allocation7 + $0x70] sm:$0xff] }
 0x46a   :  { %2137 = vmatpush.msra.mxu0 %v2108_v44  ;;  %2178 = vmatpush.msra.mxu1 %v2109_v7  ;;  %v2075_v44 = vld [vmem:[#allocation7 + $0x78] sm:$0xff]  ;;  %v2068_v7 = vld [vmem:[#allocation7 + $0x40] sm:$0xff] }
 0x46b   :  { %2219 = vmatpush.msra.mxu2 %v2110_v27  ;;  %2260 = vmatpush.msra.mxu3 %v2111_v33  ;;  %v2069_v27 = vld [vmem:[#allocation7 + $0x48] sm:$0xff]  ;;  %v2070_v33 = vld [vmem:[#allocation7 + $0x50] sm:$0xff] }
 0x46c   :  { %2138 = vmatpush.msra.mxu0 %v2104_v47  ;;  %2179 = vmatpush.msra.mxu1 %v2105_v31  ;;  %v2071_v47 = vld [vmem:[#allocation7 + $0x58] sm:$0xff]  ;;  %v2064_v31 = vld [vmem:[#allocation7 + $0x20] sm:$0xff] }
 0x46d   :  { %2220 = vmatpush.msra.mxu2 %v2106_v41  ;;  %2261 = vmatpush.msra.mxu3 %v2107_v16  ;;  %v7419_v16 = vld [vmem:[#allocation22_spill] sm:$0xff] }
 0x46e   :  { %2139 = vmatpush.msra.mxu0 %v2100_v23  ;;  %2180 = vmatpush.msra.mxu1 %v2101_v57  ;;  %v2061_v23 = vld [vmem:[#allocation7 + $0x8] sm:$0xff] }
 0x46f   :  { %2221 = vmatpush.msra.mxu2 %v2102_v48  ;;  %2262 = vmatpush.msra.mxu3 %v2103_v34  ;;  %v2062_v48 = vld [vmem:[#allocation7 + $0x10] sm:$0xff] }
 0x470   :  { %2140 = vmatpush.msra.mxu0 %v2096_v53  ;;  %2181 = vmatpush.msra.mxu1 %v2097_v8 }
 0x471   :  { %2222 = vmatpush.msra.mxu2 %v2098_v17  ;;  %2263 = vmatpush.msra.mxu3 %v2099_v35 }
 0x472   :  { %2141 = vmatpush.msra.mxu0 %v2092_v32  ;;  %2182 = vmatpush.msra.mxu1 %v2093_v18 }
 0x473   :  { %2223 = vmatpush.msra.mxu2 %v2094_v54  ;;  %2264 = vmatpush.msra.mxu3 %v2095_v63 }
 0x474   :  { %2142 = vmatpush.msra.mxu0 %v2088_v46  ;;  %2183 = vmatpush.msra.mxu1 %v2089_v50 }
 0x475   :  { %2224 = vmatpush.msra.mxu2 %v2090_v61  ;;  %2265 = vmatpush.msra.mxu3 %v2091_v37 }
 0x476   :  { %2143 = vmatpush.msra.mxu0 %v2084_v13  ;;  %2184 = vmatpush.msra.mxu1 %v2085_v40 }
 0x477   :  { %2225 = vmatpush.msra.mxu2 %v2086_v19  ;;  %2266 = vmatpush.msra.mxu3 %v2087_v24 }
 0x478   :  { %2144 = vmatpush.msra.mxu0 %v2080_v2  ;;  %2185 = vmatpush.msra.mxu1 %v2081_v51 }
 0x479   :  { %2226 = vmatpush.msra.mxu2 %v2082_v26  ;;  %2267 = vmatpush.msra.mxu3 %v2083_v30 }
 0x47a   :  { %2145 = vmatpush.msra.mxu0 %v2076_v42  ;;  %2186 = vmatpush.msra.mxu1 %v2077_v39 }
 0x47b   :  { %2227 = vmatpush.msra.mxu2 %v2078_v15  ;;  %2268 = vmatpush.msra.mxu3 %v2079_v11 }
 0x47c   :  { %2146 = vmatpush.msra.mxu0 %v2072_v9  ;;  %2187 = vmatpush.msra.mxu1 %v2073_v28  ;;  %v7421_v9 = vld [vmem:[#allocation38_spill] sm:$0xff]  ;;  %v7422_v28 = vld [vmem:[#allocation48_spill] sm:$0xff] }
 0x47d   :  { %2228 = vmatpush.msra.mxu2 %v2074_v12  ;;  %2269 = vmatpush.msra.mxu3 %v2075_v44  ;;  %v5878_v12 = vld [vmem:[#allocation9 + $0x1e0] sm:$0xff]  ;;  %v5880_v44 = vld [vmem:[#allocation9 + $0x1e8] sm:$0xff] }
 0x47e   :  { %2147 = vmatpush.msra.mxu0 %v2068_v7  ;;  %2188 = vmatpush.msra.mxu1 %v2069_v27  ;;  %v5882_v7 = vld [vmem:[#allocation9 + $0x1c0] sm:$0xff]  ;;  %v5886_v27 = vld [vmem:[#allocation9 + $0x1c8] sm:$0xff] }
 0x47f   :  { %2229 = vmatpush.msra.mxu2 %v2070_v33  ;;  %2270 = vmatpush.msra.mxu3 %v2071_v47  ;;  %v5888_v33 = vld [vmem:[#allocation9 + $0x1f8] sm:$0xff]  ;;  %v5891_v47 = vld [vmem:[#allocation9 + $0x1a0] sm:$0xff] }
 0x480   :  { %2148 = vmatpush.msra.mxu0 %v2064_v31  ;;  %2189 = vmatpush.msra.mxu1 %v2065_v5  ;;  %v5893_v31 = vld [vmem:[#allocation9 + $0x1a8] sm:$0xff] }
 0x481   :  { %2271 = vmatpush.msra.mxu3 %v2067_v45  ;;  %v7423_v5 = vld [vmem:[#allocation49_spill] sm:$0xff]  ;;  %v5914_v45 = vld [vmem:[#allocation9 + $0x1f0] sm:$0xff] }
 0x482   :  { %2190 = vmatpush.msra.mxu1 %v2061_v23  ;;  %v5926_v23 = vld [vmem:[#allocation9 + $0x188] sm:$0xff] }
 0x4df   :  { %v1705_v49 = vpop.f32.mrf.mxu0  ;;  %v1725_v1 = vpop.f32.mrf.mxu1 }
 0x4e0   :  { %v1768_v62 = vadd.f32 %v1705_v49, %v164_v21  ;;  %v1769_v56 = vadd.f32 %v1725_v1, %v205_v10  ;;  %v2066_v21 = vld [vmem:[#allocation7 + $0x30] sm:$0xff]  ;;  %v246_v49 = vadd.f32 %v7419_v16, %v7385_v55  ;;  %v2060_v1 = vld [vmem:[#allocation7] sm:$0xff]  ;;  %v5920_v16 = vld [vmem:[#allocation9 + $0x1b8] sm:$0xff] }
 0x4e1   :  { %2230 = vmatpush.msra.mxu2 %v2066_v21  ;;  %2149 = vmatpush.msra.mxu0 %v2060_v1  ;;  %v7424_v21 = vld [vmem:[#allocation51_spill] sm:$0xff]  ;;  %v5924_v1 = vld [vmem:[#allocation9 + $0x180] sm:$0xff] }
 0x4e2   :  { %v4192_v3 = vmul.f32 -1.442695, %v1768_v62  ;;  %v4193_v22 = vmul.f32 -1.442695, %v1769_v56  ;;  %v2063_v62 = vld [vmem:[#allocation7 + $0x18] sm:$0xff] }
 0x4e3   :  { %2231 = vmatpush.msra.mxu2 %v2062_v48  ;;  %2272 = vmatpush.msra.mxu3 %v2063_v62  ;;  %v5936_v48 = vld [vmem:[#allocation9 + $0x198] sm:$0xff]  ;;  %v5938_v62 = vld [vmem:[#allocation9 + $0x190] sm:$0xff] }
 0x4e4   :  { %4327 = vpow2.f32 %v4192_v3 }
 0x4e5   :  { %4329 = vpow2.f32 %v4193_v22 }
 0x4e6   :  { %v1765_v59 = vpop.f32.mrf.mxu3  ;;  %v1745_v41 = vpop.f32.mrf.mxu2 }
 0x4e7   :  { %v1771_v25 = vadd.f32 %v1765_v59, %v287_v52  ;;  %v1770_v34 = vadd.f32 %v1745_v41, %v246_v49  ;;  %v5895_v41 = vld [vmem:[#allocation9 + $0x1d8] sm:$0xff]  ;;  %v5922_v49 = vld [vmem:[#allocation9 + $0x1b0] sm:$0xff] }
 0x4e9   :  { %v4194_v20 = vmul.f32 -1.442695, %v1771_v25 }
 0x4ea   :  { %v4328_v4 = vpop.eup %4327 }
 0x4eb   :  { %v4330_v0 = vpop.eup %4329  ;;  %v5846_v6 = vadd.f32 1.0, %v4328_v4  ;;  %4331 = vpow2.f32 %v4194_v20 }
 0x4ec   :  { %v5848_v60 = vadd.f32 1.0, %v4330_v0 }
 0x4ed   :  { %4333 = vrcp.f32 %v5846_v6  ;;  %v1787_v35 = vand.u32 2147483648, %v5846_v6  ;;  %v1785_v54 = vand.u32 2147483647, %v5846_v6  ;;  %vm1781_vm11 = vweird.f32 %v5846_v6 }
 0x4ee   :  { %4335 = vrcp.f32 %v5848_v60  ;;  %v1806_v32 = vand.u32 2147483648, %v5848_v60  ;;  %v1804_v38 = vand.u32 2147483647, %v5848_v60  ;;  %vm1800_vm12 = vweird.f32 %v5848_v60 }
 0x4ef   :  { %v1788_v50 = vor.u32 1.1754944e-38, %v1787_v35  ;;  %vm1786_vm15 = vcmp.eq.f32.partialorder %v1785_v54, 8.507059e+37  ;;  %v5956_v35 = vld [vmem:[#allocation9 + $0x148] sm:$0xff] }
 0x4f0   :  { %v1807_v37 = vor.u32 1.1754944e-38, %v1806_v32  ;;  %vm1805_vm0 = vcmp.eq.f32.partialorder %v1804_v38, 8.507059e+37  ;;  %v5958_v32 = vld [vmem:[#allocation9 + $0x158] sm:$0xff] }
 0x4f1   :  { %v4332_v10 = vpop.eup %4331 }
 0x4f2   :  { %v1814_v57 = vadd.f32 1.0, %v4332_v10  ;;  %v5917_v10 = vld [vmem:[#allocation9 + $0x1d0] sm:$0xff] }
 0x4f3   :  { %v4334_v56 = vpop.eup %4333 }
 0x4f4   :  { %v4336_v53 = vpop.eup %4335  ;;  %v1777_v8 = vmul.f32 %v4334_v56, %v5846_v6  ;;  %4337 = vrcp.f32 %v1814_v57  ;;  %vm1782_vm9 = vweird.f32 %v4334_v56  ;;  %v1826_v42 = vand.u32 2147483648, %v1814_v57 }
 0x4f5   :  { %v1796_v17 = vmul.f32 %v4336_v53, %v5848_v60  ;;  %4339 = vtanh.f32 %v1770_v34  ;;  %vm1801_vm10 = vweird.f32 %v4336_v53  ;;  %vm1783_vm13 = vmor %vm1781_vm11, %vm1782_vm9  ;;  %vm1820_vm2 = vweird.f32 %v1814_v57  ;;  %v5946_v34 = vld [vmem:[#allocation9 + $0x170] sm:$0xff] }
 0x4f6   :  { %v1778_v3 = vsub.f32 1.0, %v1777_v8  ;;  %vm1802_vm14 = vmor %vm1800_vm12, %vm1801_vm10  ;;  %v1824_v39 = vand.u32 2147483647, %v1814_v57  ;;  %v1827_v6 = vor.u32 1.1754944e-38, %v1826_v42 }
 0x4f7   :  { %v1797_v22 = vsub.f32 1.0, %v1796_v17  ;;  %v7426_v17 = vld [vmem:[#allocation27_spill] sm:$0xff] }
 0x4f8   :  { %v1779_v18 = vmul.f32 %v4334_v56, %v1778_v3  ;;  %vm1825_vm4 = vcmp.eq.f32.partialorder %v1824_v39, 8.507059e+37  ;;  %v208_v3 = vadd.f32 %v7426_v17, %v7415_v36  ;;  %v5969_v36 = vld [vmem:[#allocation9 + $0x138] sm:$0xff]  ;;  %v6004_v39 = vld [vmem:[#allocation9 + $0xa0] sm:$0xff] }
 0x4f9   :  { %v1798_v63 = vmul.f32 %v4336_v53, %v1797_v22  ;;  %v5954_v22 = vld [vmem:[#allocation9 + $0x140] sm:$0xff] }
 0x4fa   :  { %v4338_v52 = vpop.eup %4337  ;;  %v1780_v46 = vadd.f32 %v4334_v56, %v1779_v18 }
 0x4fb   :  { %v1799_v61 = vadd.f32 %v4336_v53, %v1798_v63  ;;  %v1816_v59 = vmul.f32 %v4338_v52, %v1814_v57  ;;  %v4340_v13 = vpop.eup %4339  ;;  %vm1821_vm1 = vweird.f32 %v4338_v52  ;;  %v5934_v57 = vld [vmem:[#allocation9 + $0x168] sm:$0xff]  ;;  %v5962_v63 = vld [vmem:[#allocation9 + $0x150] sm:$0xff] }
 0x4fc   :  { %v1784_v25 = vsel %vm1783_vm13, %v4334_v56, %v1780_v46  ;;  %vm1822_vm3 = vmor %vm1820_vm2, %vm1821_vm1  ;;  %v5944_v56 = vld [vmem:[#allocation9 + $0x178] sm:$0xff]  ;;  %v5966_v46 = vld [vmem:[#allocation9 + $0x128] sm:$0xff] }
 0x4fd   :  { %v1789_v40 = vsel %vm1786_vm15, %v1788_v50, %v1784_v25  ;;  %v1803_v19 = vsel %vm1802_vm14, %v4336_v53, %v1799_v61  ;;  %v1817_v24 = vsub.f32 1.0, %v1816_v59  ;;  %v7425_v53 = vld [vmem:[#allocation15_spill] sm:$0xff]  ;;  %v5974_v50 = vld [vmem:[#allocation9 + $0x130] sm:$0xff]  ;;  %v5978_v25 = vld [vmem:[#allocation9 + $0x108] sm:$0xff] }
 0x4fe   :  { %v1808_v20 = vsel %vm1805_vm0, %v1807_v37, %v1803_v19  ;;  %v1831_v2 = vmul.f32 %v4340_v13, %v1789_v40  ;;  %v167_v8 = vadd.f32 %v7425_v53, %v7413_v29  ;;  %v5964_v29 = vld [vmem:[#allocation9 + $0x120] sm:$0xff]  ;;  %v5986_v40 = vld [vmem:[#allocation9 + $0xe8] sm:$0xff]  ;;  %v5988_v19 = vld [vmem:[#allocation9 + $0x118] sm:$0xff] }
 0x4ff   :  { %v1830_v51 = vmul.f32 %v1808_v20, %v5799_v58  ;;  %v1818_v26 = vmul.f32 %v4338_v52, %v1817_v24  ;;  %v7420_v58 = vld [vmem:[#allocation35_spill] sm:$0xff]  ;;  %v5976_v37 = vld [vmem:[#allocation9 + $0x100] sm:$0xff]  ;;  %v5993_v20 = vld [vmem:[#allocation9 + $0xc8] sm:$0xff] }
 0x500   :  { %v5984_v13 = vld [vmem:[#allocation9 + $0xe0] sm:$0xff] }
 0x501   :  { %v5863_v4 = vadd.f32 %v1831_v2, %v1830_v51  ;;  %v1819_v30 = vadd.f32 %v4338_v52, %v1818_v26  ;;  %v5991_v24 = vld [vmem:[#allocation9 + $0xc0] sm:$0xff]  ;;  %v5995_v2 = vld [vmem:[#allocation9 + $0xf8] sm:$0xff] }
 0x502   :  { %v7427_v51 = vld [vmem:[#allocation32_spill] sm:$0xff] }
 0x503   :  { %4341 = vtanh.f32 %v5863_v4  ;;  %v1823_v0 = vsel %vm1822_vm3, %v4338_v52, %v1819_v30  ;;  %v290_v26 = vadd.f32 %v7427_v51, %v7417_v43  ;;  %v6001_v30 = vld [vmem:[#allocation9 + $0xd8] sm:$0xff]  ;;  %v6030_v53 = vld [vmem:[#allocation9 + $0x60] sm:$0xff] }
 0x504   :  { %v1828_v11 = vsel %vm1825_vm4, %v1827_v6, %v1823_v0  ;;  %v6006_v0 = vld [vmem:[#allocation9 + $0xa8] sm:$0xff]  ;;  %v6008_v6 = vld [vmem:[#allocation9 + $0x110] sm:$0xff]  ;;  %v6012_v43 = vld [vmem:[#allocation9 + $0xb8] sm:$0xff]  ;;  %7430 = vst [vmem:[#allocation44_spill] sm:$0xff] %v6030_v53 }
 0x505   :  { %v6058_v51 = vld [vmem:[#allocation9 + $0x20] sm:$0xff] }
 0x506   :  { %7436 = vst [vmem:[#allocation23_spill] sm:$0xff] %v6058_v51 }
 0x509   :  { %v4342_v15 = vpop.eup %4341 }
 0x50a   :  { %v1834_v60 = vmul.f32 %v4342_v15, %v1828_v11  ;;  %v6014_v11 = vld [vmem:[#allocation9 + $0xf0] sm:$0xff] }
 0x50c   :  { %1920 = vmatmul.f32.vlgmr.msrb.gmra.mxu0 %v1834_v60  ;;  %1940 = vmatmul.f32.vlgmr.msrb.gmra.mxu1 %v1834_v60 }
 0x50d   :  { %1960 = vmatmul.f32.vlgmr.msrb.gmra.mxu2 %v1834_v60  ;;  %1980 = vmatmul.f32.vlgmr.msrb.gmra.mxu3 %v1834_v60 }
 0x50e   :  { %2398 = vmatpush.msrb.mxu0 %v5878_v12  ;;  %2418 = vmatpush.msrb.mxu1 %v5880_v44 }
 0x50f   :  { %2458 = vmatpush.msrb.mxu3 %v5888_v33  ;;  %2438 = vmatpush.msrb.mxu2 %v5914_v45 }
 0x510   :  { %2399 = vmatpush.msrb.mxu0 %v5882_v7  ;;  %2419 = vmatpush.msrb.mxu1 %v5886_v27 }
 0x511   :  { %2459 = vmatpush.msrb.mxu3 %v5895_v41  ;;  %2439 = vmatpush.msrb.mxu2 %v5917_v10 }
 0x512   :  { %2400 = vmatpush.msrb.mxu0 %v5891_v47  ;;  %2420 = vmatpush.msrb.mxu1 %v5893_v31 }
 0x513   :  { %2460 = vmatpush.msrb.mxu3 %v5920_v16  ;;  %2440 = vmatpush.msrb.mxu2 %v5922_v49 }
 0x514   :  { %2150 = vmatmul.f32.vlgmr.msra.gmra.mxu0 %v7420_v58  ;;  %2191 = vmatmul.f32.vlgmr.msra.gmra.mxu1 %v7420_v58 }
 0x515   :  { %2232 = vmatmul.f32.vlgmr.msra.gmra.mxu2 %v7420_v58  ;;  %2273 = vmatmul.f32.vlgmr.msra.gmra.mxu3 %v7420_v58  ;;  %v6020_v58 = vld [vmem:[#allocation9 + $0x88] sm:$0xff] }
 0x516   :  { %2401 = vmatpush.msrb.mxu0 %v5924_v1  ;;  %2421 = vmatpush.msrb.mxu1 %v5926_v23  ;;  %7428 = vst [vmem:[#allocation42_spill] sm:$0xff] %v6020_v58 }
 0x517   :  { %2461 = vmatpush.msrb.mxu3 %v5936_v48  ;;  %2441 = vmatpush.msrb.mxu2 %v5938_v62 }
 0x518   :  { %2422 = vmatpush.msrb.mxu1 %v5934_v57 }
 0x519   :  { %2462 = vmatpush.msrb.mxu3 %v5944_v56  ;;  %2442 = vmatpush.msrb.mxu2 %v5946_v34 }
 0x51a   :  { %2423 = vmatpush.msrb.mxu1 %v5956_v35 }
 0x51b   :  { %2463 = vmatpush.msrb.mxu3 %v5958_v32  ;;  %2443 = vmatpush.msrb.mxu2 %v5962_v63 }
 0x51c   :  { %2153 = vmatmul.f32.gmra.mxu0 %v7421_v9  ;;  %2194 = vmatmul.f32.gmra.mxu1 %v7421_v9 }
 0x51d   :  { %2235 = vmatmul.f32.gmra.mxu2 %v7421_v9  ;;  %2276 = vmatmul.f32.gmra.mxu3 %v7421_v9 }
 0x51e   :  { %2424 = vmatpush.msrb.mxu1 %v5966_v46  ;;  %2464 = vmatpush.msrb.mxu3 %v5969_v36 }
 0x51f   :  { %2444 = vmatpush.msrb.mxu2 %v5974_v50 }
 0x520   :  { %2425 = vmatpush.msrb.mxu1 %v5978_v25  ;;  %2465 = vmatpush.msrb.mxu3 %v5988_v19 }
 0x521   :  { %2445 = vmatpush.msrb.mxu2 %v6008_v6 }
 0x522   :  { %2426 = vmatpush.msrb.mxu1 %v5986_v40  ;;  %2466 = vmatpush.msrb.mxu3 %v5995_v2 }
 0x523   :  { %2446 = vmatpush.msrb.mxu2 %v6014_v11 }
 0x524   :  { %2156 = vmatmul.f32.gmra.mxu0 %v7422_v28  ;;  %2197 = vmatmul.f32.gmra.mxu1 %v7422_v28 }
 0x525   :  { %2238 = vmatmul.f32.gmra.mxu2 %v7422_v28  ;;  %2279 = vmatmul.f32.gmra.mxu3 %v7422_v28  ;;  %v6024_v28 = vld [vmem:[#allocation9 + $0x98] sm:$0xff] }
 0x526   :  { %2427 = vmatpush.msrb.mxu1 %v5993_v20  ;;  %2467 = vmatpush.msrb.mxu3 %v6001_v30  ;;  %7429 = vst [vmem:[#allocation43_spill] sm:$0xff] %v6024_v28 }
 0x528   :  { %2428 = vmatpush.msrb.mxu1 %v6006_v0  ;;  %2468 = vmatpush.msrb.mxu3 %v6012_v43 }
 0x52a   :  { %2429 = vmatpush.msrb.mxu1 %v6020_v58  ;;  %2469 = vmatpush.msrb.mxu3 %v6024_v28  ;;  %v6082_v28 = vld [vmem:[#allocation9 + $0x18] sm:$0xff] }
 0x52b   :  { %7443 = vst [vmem:[#allocation18_spill] sm:$0xff] %v6082_v28 }
 0x52c   :  { %2159 = vmatmul.f32.gmra.mxu0 %v7423_v5  ;;  %2200 = vmatmul.f32.gmra.mxu1 %v7423_v5 }
 0x52d   :  { %2241 = vmatmul.f32.gmra.mxu2 %v7423_v5  ;;  %2282 = vmatmul.f32.gmra.mxu3 %v7423_v5  ;;  %v6026_v5 = vld [vmem:[#allocation9 + $0xd0] sm:$0xff] }
 0x52e   :  { %2447 = vmatpush.msrb.mxu2 %v6026_v5 }
 0x534   :  { %2162 = vmatmul.f32.gmra.mxu0 %v7424_v21  ;;  %2203 = vmatmul.f32.gmra.mxu1 %v7424_v21 }
 0x535   :  { %2244 = vmatmul.f32.gmra.mxu2 %v7424_v21  ;;  %2285 = vmatmul.f32.gmra.mxu3 %v7424_v21 }
 0x53c   :  { %2165 = vmatmul.f32.gmra.mxu0 %v5826_v14  ;;  %2206 = vmatmul.f32.gmra.mxu1 %v5826_v14 }
 0x53d   :  { %2247 = vmatmul.f32.gmra.mxu2 %v5826_v14  ;;  %2288 = vmatmul.f32.gmra.mxu3 %v5826_v14  ;;  %v5929_v14 = vld [vmem:[#allocation9 + $0x160] sm:$0xff] }
 0x53e   :  { %2402 = vmatpush.msrb.mxu0 %v5929_v14 }
 0x540   :  { %2403 = vmatpush.msrb.mxu0 %v5954_v22 }
 0x542   :  { %2404 = vmatpush.msrb.mxu0 %v5964_v29 }
 0x544   :  { %2168 = vmatmul.f32.gmra.mxu0 %v1834_v60  ;;  %2209 = vmatmul.f32.gmra.mxu1 %v1834_v60 }
 0x545   :  { %2250 = vmatmul.f32.gmra.mxu2 %v1834_v60  ;;  %2291 = vmatmul.f32.gmra.mxu3 %v1834_v60  ;;  %v6018_v60 = vld [vmem:[#allocation9 + $0x80] sm:$0xff] }
 0x546   :  { %2405 = vmatpush.msrb.mxu0 %v5976_v37 }
 0x548   :  { %2406 = vmatpush.msrb.mxu0 %v5984_v13 }
 0x54a   :  { %2407 = vmatpush.msrb.mxu0 %v5991_v24 }
 0x54c   :  { %2408 = vmatpush.msrb.mxu0 %v6004_v39 }
 0x54e   :  { %2409 = vmatpush.msrb.mxu0 %v6018_v60 }
 0x550   :  { %2410 = vmatpush.msrb.mxu0 %v6030_v53 }
 0x589   :  { %v1921_v18 = vpop.f32.mrf.mxu0  ;;  %v1941_v54 = vpop.f32.mrf.mxu1 }
 0x58a   :  { %v1984_v38 = vadd.f32 %v1921_v18, %v167_v8  ;;  %v1985_v52 = vadd.f32 %v1941_v54, %v208_v3  ;;  %v6032_v8 = vld [vmem:[#allocation9 + $0x68] sm:$0xff]  ;;  %v6038_v18 = vld [vmem:[#allocation9 + $0xb0] sm:$0xff]  ;;  %v6040_v54 = vld [vmem:[#allocation9 + $0x78] sm:$0xff] }
 0x58b   :  { %7431 = vst [vmem:[#allocation45_spill] sm:$0xff] %v6032_v8  ;;  %2430 = vmatpush.msrb.mxu1 %v6032_v8  ;;  %2448 = vmatpush.msrb.mxu2 %v6038_v18  ;;  %v7441_v8 = vld [vmem:[#allocation25_spill] sm:$0xff] }
 0x58c   :  { %v4195_v61 = vmul.f32 -1.442695, %v1984_v38  ;;  %v4196_v59 = vmul.f32 -1.442695, %v1985_v52  ;;  %7432 = vst [vmem:[#allocation46_spill] sm:$0xff] %v6040_v54  ;;  %v6046_v52 = vld [vmem:[#allocation9 + $0x40] sm:$0xff]  ;;  %2470 = vmatpush.msrb.mxu3 %v6040_v54  ;;  %v249_v53 = vadd.f32 %v7441_v8, %v7385_v55 }
 0x58d   :  { %7433 = vst [vmem:[#allocation47_spill] sm:$0xff] %v6046_v52  ;;  %2411 = vmatpush.msrb.mxu0 %v6046_v52  ;;  %v6080_v52 = vld [vmem:[#allocation9 + $0x38] sm:$0xff]  ;;  %v6090_v55 = vld [vmem:[#allocation9 + $0x30] sm:$0xff] }
 0x58e   :  { %4343 = vpow2.f32 %v4195_v61  ;;  %v6048_v61 = vld [vmem:[#allocation9 + $0x48] sm:$0xff]  ;;  %7442 = vst [vmem:[#allocation26_spill] sm:$0xff] %v6080_v52 }
 0x58f   :  { %4345 = vpow2.f32 %v4196_v59  ;;  %7434 = vst [vmem:[#allocation17_spill] sm:$0xff] %v6048_v61  ;;  %v6053_v59 = vld [vmem:[#allocation9 + $0x90] sm:$0xff]  ;;  %2431 = vmatpush.msrb.mxu1 %v6048_v61  ;;  %2412 = vmatpush.msrb.mxu0 %v6058_v51 }
 0x590   :  { %v1981_v42 = vpop.f32.mrf.mxu3  ;;  %7435 = vst [vmem:[#allocation36_spill] sm:$0xff] %v6053_v59  ;;  %2449 = vmatpush.msrb.mxu2 %v6053_v59  ;;  %v6078_v61 = vld [vmem:[#allocation9 + $0x50] sm:$0xff] }
 0x591   :  { %v1987_v15 = vadd.f32 %v1981_v42, %v290_v26  ;;  %v6060_v26 = vld [vmem:[#allocation9 + $0x28] sm:$0xff]  ;;  %v6062_v42 = vld [vmem:[#allocation9 + $0x58] sm:$0xff] }
 0x592   :  { %7437 = vst [vmem:[#allocation34_spill] sm:$0xff] %v6060_v26  ;;  %2471 = vmatpush.msrb.mxu3 %v6062_v42  ;;  %2432 = vmatpush.msrb.mxu1 %v6060_v26 }
 0x593   :  { %v4197_v9 = vmul.f32 -1.442695, %v1987_v15  ;;  %7438 = vst [vmem:[#allocation16_spill] sm:$0xff] %v6062_v42  ;;  %v6066_v15 = vld [vmem:[#allocation9 + $0x70] sm:$0xff] }
 0x594   :  { %v4344_v21 = vpop.eup %4343  ;;  %2450 = vmatpush.msrb.mxu2 %v6066_v15  ;;  %2472 = vmatpush.msrb.mxu3 %v6080_v52  ;;  %v6097_v52 = vld [vmem:[#allocation9 + $0x10] sm:$0xff] }
 0x595   :  { %v4346_v17 = vpop.eup %4345  ;;  %v6034_v3 = vadd.f32 1.0, %v4344_v21  ;;  %4347 = vpow2.f32 %v4197_v9  ;;  %v1961_v9 = vpop.f32.mrf.mxu2  ;;  %v6070_v21 = vld [vmem:[#allocation9] sm:$0xff] }
 0x596   :  { %v6042_v38 = vadd.f32 1.0, %v4346_v17  ;;  %7439 = vst [vmem:[#allocation12_spill] sm:$0xff] %v6070_v21  ;;  %v6072_v17 = vld [vmem:[#allocation9 + $0x8] sm:$0xff]  ;;  %v1986_v58 = vadd.f32 %v1961_v9, %v249_v53  ;;  %2413 = vmatpush.msrb.mxu0 %v6070_v21  ;;  %2451 = vmatpush.msrb.mxu2 %v6078_v61 }
 0x597   :  { %4349 = vrcp.f32 %v6034_v3  ;;  %7440 = vst [vmem:[#allocation19_spill] sm:$0xff] %v6072_v17  ;;  %2433 = vmatpush.msrb.mxu1 %v6072_v17  ;;  %2473 = vmatpush.msrb.mxu3 %v6082_v28  ;;  %v2003_v17 = vand.u32 2147483648, %v6034_v3  ;;  %vm1997_vm7 = vweird.f32 %v6034_v3 }
 0x598   :  { %4351 = vrcp.f32 %v6042_v38  ;;  %2614 = vmatpush.msra.mxu0 %v5878_v12  ;;  %2452 = vmatpush.msrb.mxu2 %v6090_v55  ;;  %v2022_v28 = vand.u32 2147483648, %v6042_v38  ;;  %v2001_v12 = vand.u32 2147483647, %v6034_v3  ;;  %vm2016_vm8 = vweird.f32 %v6042_v38 }
 0x599   :  { %2634 = vmatpush.msra.mxu1 %v5880_v44  ;;  %2674 = vmatpush.msra.mxu3 %v5888_v33  ;;  %v2020_v33 = vand.u32 2147483647, %v6042_v38 }
 0x59a   :  { %2615 = vmatpush.msra.mxu0 %v5882_v7  ;;  %2453 = vmatpush.msrb.mxu2 %v6097_v52  ;;  %vm2002_vm11 = vcmp.eq.f32.partialorder %v2001_v12, 8.507059e+37 }
 0x59b   :  { %v4348_v54 = vpop.eup %4347  ;;  %2635 = vmatpush.msra.mxu1 %v5886_v27  ;;  %2675 = vmatpush.msra.mxu3 %v5895_v41  ;;  %v2004_v41 = vor.u32 1.1754944e-38, %v2003_v17  ;;  %vm2021_vm12 = vcmp.eq.f32.partialorder %v2020_v33, 8.507059e+37 }
 0x59c   :  { %v6084_v59 = vadd.f32 1.0, %v4348_v54  ;;  %2654 = vmatpush.msra.mxu2 %v5914_v45  ;;  %2616 = vmatpush.msra.mxu0 %v5891_v47  ;;  %v2023_v47 = vor.u32 1.1754944e-38, %v2022_v28 }
 0x59d   :  { %v4350_v42 = vpop.eup %4349  ;;  %2636 = vmatpush.msra.mxu1 %v5893_v31  ;;  %2676 = vmatpush.msra.mxu3 %v5920_v16 }
 0x59e   :  { %v4352_v8 = vpop.eup %4351  ;;  %v1993_v26 = vmul.f32 %v4350_v42, %v6034_v3  ;;  %4353 = vrcp.f32 %v6084_v59  ;;  %vm1998_vm5 = vweird.f32 %v4350_v42  ;;  %2655 = vmatpush.msra.mxu2 %v5917_v10  ;;  %2617 = vmatpush.msra.mxu0 %v5924_v1  ;;  %vm2036_vm14 = vweird.f32 %v6084_v59 }
 0x59f   :  { %v2012_v54 = vmul.f32 %v4352_v8, %v6042_v38  ;;  %4355 = vtanh.f32 %v1986_v58  ;;  %vm2017_vm6 = vweird.f32 %v4352_v8  ;;  %vm1999_vm9 = vmor %vm1997_vm7, %vm1998_vm5  ;;  %2637 = vmatpush.msra.mxu1 %v5926_v23  ;;  %2677 = vmatpush.msra.mxu3 %v5936_v48  ;;  %v2040_v12 = vand.u32 2147483647, %v6084_v59 }
 0x5a0   :  { %v1994_v53 = vsub.f32 1.0, %v1993_v26  ;;  %vm2018_vm10 = vmor %vm2016_vm8, %vm2017_vm6  ;;  %2656 = vmatpush.msra.mxu2 %v5922_v49  ;;  %2618 = vmatpush.msra.mxu0 %v5929_v14 }
 0x5a1   :  { %v2013_v9 = vsub.f32 1.0, %v2012_v54  ;;  %2638 = vmatpush.msra.mxu1 %v5934_v57  ;;  %2678 = vmatpush.msra.mxu3 %v5944_v56  ;;  %vm2041_vm0 = vcmp.eq.f32.partialorder %v2040_v12, 8.507059e+37 }
 0x5a2   :  { %v1995_v21 = vmul.f32 %v4350_v42, %v1994_v53  ;;  %2657 = vmatpush.msra.mxu2 %v5938_v62  ;;  %2619 = vmatpush.msra.mxu0 %v5954_v22 }
 0x5a3   :  { %v2014_v44 = vmul.f32 %v4352_v8, %v2013_v9  ;;  %2639 = vmatpush.msra.mxu1 %v5956_v35  ;;  %2679 = vmatpush.msra.mxu3 %v5958_v32 }
 0x5a4   :  { %v6113_v7 = vpop.eup %4353  ;;  %v1996_v27 = vadd.f32 %v4350_v42, %v1995_v21  ;;  %2658 = vmatpush.msra.mxu2 %v5946_v34  ;;  %2620 = vmatpush.msra.mxu0 %v5964_v29 }
 0x5a5   :  { %v2015_v58 = vadd.f32 %v4352_v8, %v2014_v44  ;;  %v2032_v26 = vmul.f32 %v6113_v7, %v6084_v59  ;;  %v4356_v31 = vpop.eup %4355  ;;  %vm2037_vm13 = vweird.f32 %v6113_v7  ;;  %2640 = vmatpush.msra.mxu1 %v5966_v46  ;;  %2680 = vmatpush.msra.mxu3 %v5969_v36 }
 0x5a6   :  { %v2000_v3 = vsel %vm1999_vm9, %v4350_v42, %v1996_v27  ;;  %2659 = vmatpush.msra.mxu2 %v5962_v63  ;;  %2621 = vmatpush.msra.mxu0 %v5976_v37  ;;  %vm2038_vm15 = vmor %vm2036_vm14, %vm2037_vm13 }
 0x5a7   :  { %v2005_v38 = vsel %vm2002_vm11, %v2004_v41, %v2000_v3  ;;  %v2019_v21 = vsel %vm2018_vm10, %v4352_v8, %v2015_v58  ;;  %v2033_v17 = vsub.f32 1.0, %v2032_v26  ;;  %2641 = vmatpush.msra.mxu1 %v5978_v25  ;;  %2681 = vmatpush.msra.mxu3 %v5988_v19  ;;  %v7444_v41 = vld [vmem:[#allocation42_spill] sm:$0xff]  ;;  %v7445_v58 = vld [vmem:[#allocation43_spill] sm:$0xff]  ;;  %v7446_v26 = vld [vmem:[#allocation36_spill] sm:$0xff] }
 0x5a8   :  { %v2024_v54 = vsel %vm2021_vm12, %v2023_v47, %v2019_v21  ;;  %v2047_v53 = vmul.f32 %v4356_v31, %v2005_v38  ;;  %2660 = vmatpush.msra.mxu2 %v5974_v50  ;;  %2622 = vmatpush.msra.mxu0 %v5984_v13  ;;  %v7447_v47 = vld [vmem:[#allocation44_spill] sm:$0xff]  ;;  %v7448_v3 = vld [vmem:[#allocation45_spill] sm:$0xff]  ;;  %v7449_v31 = vld [vmem:[#allocation46_spill] sm:$0xff] }
 0x5a9   :  { %v2046_v28 = vmul.f32 %v2024_v54, %v5863_v4  ;;  %v2034_v42 = vmul.f32 %v6113_v7, %v2033_v17  ;;  %v2042_v4 = vand.u32 2147483648, %v6084_v59  ;;  %2642 = vmatpush.msra.mxu1 %v5986_v40  ;;  %2682 = vmatpush.msra.mxu3 %v5995_v2  ;;  %v7450_v38 = vld [vmem:[#allocation47_spill] sm:$0xff]  ;;  %v7451_v21 = vld [vmem:[#allocation17_spill] sm:$0xff]  ;;  %v7452_v17 = vld [vmem:[#allocation16_spill] sm:$0xff]  ;;  %v7453_v54 = vmov 0.0  }
 0x5aa   :  { %2661 = vmatpush.msra.mxu2 %v6008_v6  ;;  %2623 = vmatpush.msra.mxu0 %v5991_v24 }
 0x5ab   :  { %v2048_v8 = vadd.f32 %v2047_v53, %v2046_v28  ;;  %v2035_v9 = vadd.f32 %v6113_v7, %v2034_v42  ;;  %v2043_v33 = vor.u32 1.1754944e-38, %v2042_v4  ;;  %2643 = vmatpush.msra.mxu1 %v5993_v20  ;;  %2683 = vmatpush.msra.mxu3 %v6001_v30  ;;  %v7454_v53 = vld [vmem:[#allocation34_spill] sm:$0xff]  ;;  %v7456_v42 = vld [vmem:[#allocation12_spill] sm:$0xff] }
 0x5ac   :  { %2662 = vmatpush.msra.mxu2 %v6014_v11  ;;  %2624 = vmatpush.msra.mxu0 %v6004_v39  ;;  %v7455_v28 = vld [vmem:[#allocation26_spill] sm:$0xff] }
 0x5ad   :  { %4357 = vtanh.f32 %v2048_v8  ;;  %v2039_v44 = vsel %vm2038_vm15, %v6113_v7, %v2035_v9  ;;  %2644 = vmatpush.msra.mxu1 %v6006_v0  ;;  %2684 = vmatpush.msra.mxu3 %v6012_v43  ;;  %v7457_v8 = vld [vmem:[#allocation19_spill] sm:$0xff]  ;;  %v7458_v9 = vld [vmem:[#allocation18_spill] sm:$0xff] }
 0x5ae   :  { %v2044_v27 = vsel %vm2041_vm0, %v2043_v33, %v2039_v44  ;;  %2663 = vmatpush.msra.mxu2 %v6026_v5  ;;  %2625 = vmatpush.msra.mxu0 %v6018_v60 }
 0x5af   :  { %2645 = vmatpush.msra.mxu1 %v7444_v41  ;;  %2685 = vmatpush.msra.mxu3 %v7445_v58 }
 0x5b0   :  { %2664 = vmatpush.msra.mxu2 %v6038_v18  ;;  %2626 = vmatpush.msra.mxu0 %v7447_v47 }
 0x5b1   :  { %2646 = vmatpush.msra.mxu1 %v7448_v3  ;;  %2686 = vmatpush.msra.mxu3 %v7449_v31 }
 0x5b2   :  { %2665 = vmatpush.msra.mxu2 %v7446_v26  ;;  %2627 = vmatpush.msra.mxu0 %v7450_v38 }
 0x5b3   :  { %v4358_v59 = vpop.eup %4357  ;;  %2647 = vmatpush.msra.mxu1 %v7451_v21  ;;  %2687 = vmatpush.msra.mxu3 %v7452_v17 }
 0x5b4   :  { %v2050_v7 = vmul.f32 %v4358_v59, %v2044_v27  ;;  %2666 = vmatpush.msra.mxu2 %v6066_v15  ;;  %2628 = vmatpush.msra.mxu0 %v6058_v51 }
 0x5b5   :  { %2648 = vmatpush.msra.mxu1 %v7454_v53  ;;  %2688 = vmatpush.msra.mxu3 %v7455_v28 }
 0x5b6   :  { %2171 = vmatmul.f32.gmra.mxu0 %v2050_v7  ;;  %2212 = vmatmul.f32.gmra.mxu1 %v2050_v7 }
 0x5b7   :  { %2253 = vmatmul.f32.gmra.mxu2 %v2050_v7  ;;  %2294 = vmatmul.f32.gmra.mxu3 %v2050_v7 }
 0x5b8   :  { %2667 = vmatpush.msra.mxu2 %v6078_v61  ;;  %2629 = vmatpush.msra.mxu0 %v7456_v42 }
 0x5b9   :  { %2649 = vmatpush.msra.mxu1 %v7457_v8  ;;  %2689 = vmatpush.msra.mxu3 %v7458_v9 }
 0x5ba   :  { %2668 = vmatpush.msra.mxu2 %v6090_v55 }
 0x5bc   :  { %2669 = vmatpush.msra.mxu2 %v6097_v52 }
 0x5be   :  { %2414 = vmatmul.f32.vlgmr.msrb.gmra.mxu0 %v7453_v54  ;;  %2434 = vmatmul.f32.vlgmr.msrb.gmra.mxu1 %v7453_v54 }
 0x5bf   :  { %2454 = vmatmul.f32.vlgmr.msrb.gmra.mxu2 %v7453_v54  ;;  %2474 = vmatmul.f32.vlgmr.msrb.gmra.mxu3 %v7453_v54 }
 0x5c0   :  { %2870 = vmatpush.msrb.mxu2 %v5914_v45  ;;  %v2151_v45 = vpop.f32.mrf.mxu0 }
 0x5c2   :  { %2871 = vmatpush.msrb.mxu2 %v5917_v10  ;;  %v2192_v10 = vpop.f32.mrf.mxu1 }
 0x5c4   :  { %2872 = vmatpush.msrb.mxu2 %v5922_v49  ;;  %v2274_v49 = vpop.f32.mrf.mxu3 }
 0x5c6   :  { %2873 = vmatpush.msrb.mxu2 %v5938_v62 }
 0x5c8   :  { %2874 = vmatpush.msrb.mxu2 %v5946_v34  ;;  %v6205_v62 = vpop.f32.mrf.mxu0 }
 0x5ca   :  { %2875 = vmatpush.msrb.mxu2 %v5962_v63  ;;  %v6207_v34 = vpop.f32.mrf.mxu1  ;;  %v2233_v63 = vpop.f32.mrf.mxu2 }
 0x5cc   :  { %2876 = vmatpush.msrb.mxu2 %v5974_v50  ;;  %v6209_v50 = vpop.f32.mrf.mxu3 }
 0x5ce   :  { %2877 = vmatpush.msrb.mxu2 %v6008_v6 }
 0x5d0   :  { %2878 = vmatpush.msrb.mxu2 %v6014_v11  ;;  %v6211_v6 = vpop.f32.mrf.mxu0 }
 0x5d1   :  { %7459 = vst [vmem:[#allocation13_spill] sm:$0xff] %v6211_v6 }
 0x5d2   :  { %2879 = vmatpush.msrb.mxu2 %v6026_v5  ;;  %v6213_v11 = vpop.f32.mrf.mxu1  ;;  %v6215_v5 = vpop.f32.mrf.mxu2 }
 0x5d3   :  { %7460 = vst [vmem:[#allocation21_spill] sm:$0xff] %v6213_v11 }
 0x5d4   :  { %2880 = vmatpush.msrb.mxu2 %v6038_v18  ;;  %7461 = vst [vmem:[#allocation30_spill] sm:$0xff] %v6215_v5  ;;  %v6217_v18 = vpop.f32.mrf.mxu3 }
 0x5d5   :  { %7462 = vst [vmem:[#allocation20_spill] sm:$0xff] %v6217_v18 }
 0x5d6   :  { %2881 = vmatpush.msrb.mxu2 %v7446_v26 }
 0x5d8   :  { %2882 = vmatpush.msrb.mxu2 %v6066_v15 }
 0x5da   :  { %2883 = vmatpush.msrb.mxu2 %v6078_v61  ;;  %v6219_v61 = vpop.f32.mrf.mxu0  ;;  %v6223_v15 = vpop.f32.mrf.mxu2 }
 0x5db   :  { %7463 = vst [vmem:[#allocation37_spill] sm:$0xff] %v6219_v61 }
 0x5dc   :  { %2884 = vmatpush.msrb.mxu2 %v6090_v55  ;;  %7465 = vst [vmem:[#allocation53_spill] sm:$0xff] %v6223_v15  ;;  %v6225_v55 = vpop.f32.mrf.mxu3 }
 0x5dd   :  { %7466 = vst [vmem:[#allocation50_spill] sm:$0xff] %v6225_v55 }
 0x5de   :  { %2885 = vmatpush.msrb.mxu2 %v6097_v52  ;;  %v6221_v52 = vpop.f32.mrf.mxu1 }
 0x5df   :  { %7464 = vst [vmem:[#allocation52_spill] sm:$0xff] %v6221_v52 }
 0x5e2   :  { %v6227_v4 = vpop.f32.mrf.mxu0  ;;  %v6231_v44 = vpop.f32.mrf.mxu2 }
 0x5e3   :  { %7467 = vst [vmem:[#allocation54_spill] sm:$0xff] %v6227_v4 }
 0x5e4   :  { %7469 = vst [vmem:[#allocation40_spill] sm:$0xff] %v6231_v44  ;;  %v6233_v33 = vpop.f32.mrf.mxu3 }
 0x5e5   :  { %7470 = vst [vmem:[#allocation41_spill] sm:$0xff] %v6233_v33  ;;  %v2124_v33 = vld [vmem:[%s7182_s6] sm:$0xf] }
 0x5e6   :  { %v6229_v12 = vpop.f32.mrf.mxu1  ;;  %v6268_v18 = vperm.slane %v2124_v33, 3 }
 0x5e7   :  { %7468 = vst [vmem:[#allocation39_spill] sm:$0xff] %v6229_v12 }
 0x5e8   :  { %7485 = vst [vmem:[#allocation32_spill] sm:$0xff] %v6268_v18  ;;  %v2275_v11 = vadd.f32 %v2274_v49, %v6268_v18 }
 0x5ea   :  { %v6235_v59 = vpop.f32.mrf.mxu0  ;;  %v6239_v7 = vpop.f32.mrf.mxu2 }
 0x5eb   :  { %7471 = vst [vmem:[#allocation28_spill] sm:$0xff] %v6235_v59 }
 0x5ec   :  { %7473 = vst [vmem:[#allocation29_spill] sm:$0xff] %v6239_v7  ;;  %v6241_v26 = vpop.f32.mrf.mxu3  ;;  %v6260_v7 = vperm.slane %v2124_v33, 1 }
 0x5ed   :  { %7474 = vst [vmem:[#allocation24_spill] sm:$0xff] %v6241_v26 }
 0x5ee   :  { %v6237_v27 = vpop.f32.mrf.mxu1  ;;  %7482 = vst [vmem:[#allocation51_spill] sm:$0xff] %v6260_v7 }
 0x5ef   :  { %7472 = vst [vmem:[#allocation14_spill] sm:$0xff] %v6237_v27  ;;  %v6258_v27 = vperm.slane %v2124_v33, 0 }
 0x5f1   :  { %7481 = vst [vmem:[#allocation49_spill] sm:$0xff] %v6258_v27 }
 0x5f2   :  { %v6243_v54 = vpop.f32.mrf.mxu0  ;;  %v6247_v55 = vpop.f32.mrf.mxu2 }
 0x5f3   :  { %7475 = vst [vmem:[#allocation33_spill] sm:$0xff] %v6243_v54  ;;  %v2152_v54 = vadd.f32 %v2151_v45, %v6258_v27 }
 0x5f4   :  { %7477 = vst [vmem:[#allocation22_spill] sm:$0xff] %v6247_v55  ;;  %v6249_v4 = vpop.f32.mrf.mxu3 }
 0x5f5   :  { %7478 = vst [vmem:[#allocation35_spill] sm:$0xff] %v6249_v4 }
 0x5f6   :  { %v6245_v52 = vpop.f32.mrf.mxu1 }
 0x5f7   :  { %7476 = vst [vmem:[#allocation31_spill] sm:$0xff] %v6245_v52  ;;  %v2193_v52 = vadd.f32 %v2192_v10, %v6260_v7 }
 0x5fa   :  { %v6264_v26 = vpop.f32.mrf.mxu2 }
 0x5fb   :  { %7483 = vst [vmem:[#allocation15_spill] sm:$0xff] %v6264_v26 }
 0x633   :  { %v6254_v12 = vpop.f32.mrf.mxu0  ;;  %v6256_v59 = vpop.f32.mrf.mxu1 }
 0x634   :  { %7479 = vst [vmem:[#allocation38_spill] sm:$0xff] %v6254_v12 }
 0x635   :  { %7480 = vst [vmem:[#allocation48_spill] sm:$0xff] %v6256_v59 }
 0x63a   :  { %v6266_v55 = vpop.f32.mrf.mxu3  ;;  %v6271_v6 = vpop.f32.mrf.mxu2 }
 0x63b   :  { %7484 = vst [vmem:[#allocation27_spill] sm:$0xff] %v6266_v55  ;;  %v2415_v4 = vpop.f32.mrf.mxu0  ;;  %v2435_v44 = vpop.f32.mrf.mxu1 }
 0x63c   :  { %v2478_v61 = vadd.f32 %v2415_v4, %v2152_v54  ;;  %v2479_v15 = vadd.f32 %v2435_v44, %v2193_v52  ;;  %7486 = vst [vmem:[#allocation25_spill] sm:$0xff] %v6271_v6  ;;  %v6273_v4 = vperm.slane %v2124_v33, 2 }
 0x63e   :  { %v4198_v12 = vmul.f32 -1.442695, %v2478_v61  ;;  %v4199_v59 = vmul.f32 -1.442695, %v2479_v15  ;;  %7487 = vst [vmem:[#allocation42_spill] sm:$0xff] %v6273_v4  ;;  %v2234_v15 = vadd.f32 %v2233_v63, %v6273_v4 }
 0x640   :  { %4359 = vpow2.f32 %v4198_v12 }
 0x641   :  { %4361 = vpow2.f32 %v4199_v59 }
 0x642   :  { %v2475_v45 = vpop.f32.mrf.mxu3  ;;  %v2455_v61 = vpop.f32.mrf.mxu2 }
 0x643   :  { %v2481_v10 = vadd.f32 %v2475_v45, %v2275_v11  ;;  %v2480_v44 = vadd.f32 %v2455_v61, %v2234_v15 }
 0x645   :  { %v4200_v5 = vmul.f32 -1.442695, %v2481_v10 }
 0x646   :  { %v4360_v26 = vpop.eup %4359 }
 0x647   :  { %v4362_v9 = vpop.eup %4361  ;;  %v2485_v55 = vadd.f32 1.0, %v4360_v26  ;;  %4363 = vpow2.f32 %v4200_v5 }
 0x648   :  { %v2504_v8 = vadd.f32 1.0, %v4362_v9 }
 0x649   :  { %4365 = vrcp.f32 %v2485_v55  ;;  %v2497_v26 = vand.u32 2147483648, %v2485_v55  ;;  %v2495_v33 = vand.u32 2147483647, %v2485_v55  ;;  %vm2491_vm3 = vweird.f32 %v2485_v55 }
 0x64a   :  { %4367 = vrcp.f32 %v2504_v8  ;;  %v2516_v9 = vand.u32 2147483648, %v2504_v8  ;;  %v2514_v42 = vand.u32 2147483647, %v2504_v8  ;;  %vm2510_vm4 = vweird.f32 %v2504_v8 }
 0x64b   :  { %v2498_v61 = vor.u32 1.1754944e-38, %v2497_v26  ;;  %vm2496_vm6 = vcmp.eq.f32.partialorder %v2495_v33, 8.507059e+37  ;;  %v6305_v33 = vld [vmem:[#allocation9 + $0x1a8] sm:$0xff] }
 0x64c   :  { %v2517_v4 = vor.u32 1.1754944e-38, %v2516_v9  ;;  %vm2515_vm8 = vcmp.eq.f32.partialorder %v2514_v42, 8.507059e+37 }
 0x64d   :  { %v4364_v52 = vpop.eup %4363 }
 0x64e   :  { %v2524_v49 = vadd.f32 1.0, %v4364_v52 }
 0x64f   :  { %v4366_v12 = vpop.eup %4365 }
 0x650   :  { %v4368_v59 = vpop.eup %4367  ;;  %v2487_v54 = vmul.f32 %v4366_v12, %v2485_v55  ;;  %4369 = vrcp.f32 %v2524_v49  ;;  %vm2492_vm1 = vweird.f32 %v4366_v12  ;;  %vm2530_vm10 = vweird.f32 %v2524_v49 }
 0x651   :  { %v2506_v11 = vmul.f32 %v4368_v59, %v2504_v8  ;;  %4371 = vtanh.f32 %v2480_v44  ;;  %vm2511_vm2 = vweird.f32 %v4368_v59  ;;  %vm2493_vm5 = vmor %vm2491_vm3, %vm2492_vm1  ;;  %v2534_v55 = vand.u32 2147483647, %v2524_v49 }
 0x652   :  { %v2488_v45 = vsub.f32 1.0, %v2487_v54  ;;  %vm2512_vm7 = vmor %vm2510_vm4, %vm2511_vm2 }
 0x653   :  { %v2507_v10 = vsub.f32 1.0, %v2506_v11  ;;  %vm2535_vm12 = vcmp.eq.f32.partialorder %v2534_v55, 8.507059e+37 }
 0x654   :  { %v2489_v5 = vmul.f32 %v4366_v12, %v2488_v45 }
 0x655   :  { %v2508_v6 = vmul.f32 %v4368_v59, %v2507_v10 }
 0x656   :  { %v4370_v28 = vpop.eup %4369  ;;  %v2490_v63 = vadd.f32 %v4366_v12, %v2489_v5 }
 0x657   :  { %v2509_v52 = vadd.f32 %v4368_v59, %v2508_v6  ;;  %v2526_v15 = vmul.f32 %v4370_v28, %v2524_v49  ;;  %v4372_v44 = vpop.eup %4371  ;;  %vm2531_vm9 = vweird.f32 %v4370_v28  ;;  %v2536_v6 = vand.u32 2147483648, %v2524_v49  ;;  %v6303_v49 = vld [vmem:[#allocation9 + $0x1a0] sm:$0xff] }
 0x658   :  { %v2494_v54 = vsel %vm2493_vm5, %v4366_v12, %v2490_v63  ;;  %vm2532_vm11 = vmor %vm2530_vm10, %vm2531_vm9 }
 0x659   :  { %v2499_v11 = vsel %vm2496_vm6, %v2498_v61, %v2494_v54  ;;  %v2513_v45 = vsel %vm2512_vm7, %v4368_v59, %v2509_v52  ;;  %v2527_v53 = vsub.f32 1.0, %v2526_v15  ;;  %v2537_v26 = vor.u32 1.1754944e-38, %v2536_v6 }
 0x65a   :  { %v2518_v10 = vsel %vm2515_vm8, %v2517_v4, %v2513_v45  ;;  %v2541_v51 = vmul.f32 %v4372_v44, %v2499_v11  ;;  %v6298_v4 = vld [vmem:[#allocation9 + $0x1d8] sm:$0xff] }
 0x65b   :  { %v2540_v17 = vmul.f32 0.0, %v2518_v10  ;;  %v2528_v21 = vmul.f32 %v4370_v28, %v2527_v53  ;;  %v6294_v53 = vld [vmem:[#allocation9 + $0x1c0] sm:$0xff] }
 0x65d   :  { %v6276_v5 = vadd.f32 %v2541_v51, %v2540_v17  ;;  %v2529_v8 = vadd.f32 %v4370_v28, %v2528_v21  ;;  %v6285_v51 = vld [vmem:[#allocation9 + $0x1e0] sm:$0xff]  ;;  %v6287_v21 = vld [vmem:[#allocation9 + $0x1e8] sm:$0xff]  ;;  %v6289_v17 = vld [vmem:[#allocation9 + $0x1f8] sm:$0xff] }
 0x65e   :  { %2830 = vmatpush.msrb.mxu0 %v6285_v51  ;;  %2850 = vmatpush.msrb.mxu1 %v6287_v21 }
 0x65f   :  { %4373 = vtanh.f32 %v6276_v5  ;;  %v2533_v12 = vsel %vm2532_vm11, %v4370_v28, %v2529_v8  ;;  %2890 = vmatpush.msrb.mxu3 %v6289_v17  ;;  %v6296_v28 = vld [vmem:[#allocation9 + $0x1c8] sm:$0xff] }
 0x660   :  { %v2538_v42 = vsel %vm2535_vm12, %v2537_v26, %v2533_v12  ;;  %2831 = vmatpush.msrb.mxu0 %v6294_v53  ;;  %2851 = vmatpush.msrb.mxu1 %v6296_v28 }
 0x661   :  { %2891 = vmatpush.msrb.mxu3 %v6298_v4 }
 0x662   :  { %2832 = vmatpush.msrb.mxu0 %v6303_v49  ;;  %2852 = vmatpush.msrb.mxu1 %v6305_v33 }
 0x663   :  { %2892 = vmatpush.msrb.mxu3 %v5920_v16  ;;  %v2155_v16 = vadd.f32 %v6205_v62, %v6258_v27 }
 0x664   :  { %2833 = vmatpush.msrb.mxu0 %v5924_v1  ;;  %2853 = vmatpush.msrb.mxu1 %v5926_v23  ;;  %v2196_v1 = vadd.f32 %v6207_v34, %v6260_v7 }
 0x665   :  { %v4374_v59 = vpop.eup %4373  ;;  %2893 = vmatpush.msrb.mxu3 %v5936_v48 }
 0x666   :  { %v6279_v9 = vmul.f32 %v4374_v59, %v2538_v42  ;;  %2834 = vmatpush.msrb.mxu0 %v5929_v14  ;;  %2854 = vmatpush.msrb.mxu1 %v5934_v57 }
 0x667   :  { %2894 = vmatpush.msrb.mxu3 %v5944_v56 }
 0x668   :  { %7488 = vst [vmem:[#allocation43_spill] sm:$0xff] %v6279_v9  ;;  %2630 = vmatmul.f32.vlgmr.msra.gmra.mxu0 %v6279_v9  ;;  %2650 = vmatmul.f32.vlgmr.msra.gmra.mxu1 %v6279_v9 }
 0x669   :  { %2670 = vmatmul.f32.vlgmr.msra.gmra.mxu2 %v6279_v9  ;;  %2690 = vmatmul.f32.vlgmr.msra.gmra.mxu3 %v6279_v9  ;;  %v6515_v9 = vld [vmem:[#allocation9 + $0x50] sm:$0xff] }
 0x66a   :  { %2835 = vmatpush.msrb.mxu0 %v5954_v22  ;;  %2855 = vmatpush.msrb.mxu1 %v5956_v35  ;;  %v2278_v35 = vadd.f32 %v6209_v50, %v6268_v18 }
 0x66b   :  { %2895 = vmatpush.msrb.mxu3 %v5958_v32 }
 0x66c   :  { %2836 = vmatpush.msrb.mxu0 %v5964_v29  ;;  %2856 = vmatpush.msrb.mxu1 %v5966_v46  ;;  %v7489_v46 = vld [vmem:[#allocation17_spill] sm:$0xff] }
 0x66d   :  { %2896 = vmatpush.msrb.mxu3 %v5969_v36 }
 0x66e   :  { %2837 = vmatpush.msrb.mxu0 %v5976_v37  ;;  %2857 = vmatpush.msrb.mxu1 %v5978_v25  ;;  %v7490_v37 = vld [vmem:[#allocation16_spill] sm:$0xff] }
 0x66f   :  { %2897 = vmatpush.msrb.mxu3 %v5988_v19 }
 0x670   :  { %2838 = vmatpush.msrb.mxu0 %v5984_v13  ;;  %2858 = vmatpush.msrb.mxu1 %v5986_v40  ;;  %v7491_v13 = vld [vmem:[#allocation23_spill] sm:$0xff]  ;;  %v7492_v40 = vld [vmem:[#allocation34_spill] sm:$0xff] }
 0x671   :  { %2898 = vmatpush.msrb.mxu3 %v5995_v2 }
 0x672   :  { %2839 = vmatpush.msrb.mxu0 %v5991_v24  ;;  %2859 = vmatpush.msrb.mxu1 %v5993_v20  ;;  %v7493_v20 = vld [vmem:[#allocation26_spill] sm:$0xff] }
 0x673   :  { %2899 = vmatpush.msrb.mxu3 %v6001_v30  ;;  %v7494_v30 = vld [vmem:[#allocation12_spill] sm:$0xff] }
 0x674   :  { %2840 = vmatpush.msrb.mxu0 %v6004_v39  ;;  %2860 = vmatpush.msrb.mxu1 %v6006_v0  ;;  %v7495_v39 = vld [vmem:[#allocation19_spill] sm:$0xff]  ;;  %v7496_v0 = vld [vmem:[#allocation18_spill] sm:$0xff] }
 0x675   :  { %2900 = vmatpush.msrb.mxu3 %v6012_v43 }
 0x676   :  { %2841 = vmatpush.msrb.mxu0 %v6018_v60  ;;  %2861 = vmatpush.msrb.mxu1 %v7444_v41  ;;  %v7497_v41 = vld [vmem:[#allocation42_spill] sm:$0xff] }
 0x677   :  { %2901 = vmatpush.msrb.mxu3 %v7445_v58  ;;  %v7498_v58 = vld [vmem:[#allocation30_spill] sm:$0xff] }
 0x678   :  { %2842 = vmatpush.msrb.mxu0 %v7447_v47  ;;  %2862 = vmatpush.msrb.mxu1 %v7448_v3  ;;  %v2237_v47 = vadd.f32 %v7498_v58, %v7497_v41  ;;  %v6407_v58 = vld [vmem:[#allocation9 + $0x178] sm:$0xff] }
 0x679   :  { %2902 = vmatpush.msrb.mxu3 %v7449_v31  ;;  %7500 = vst [vmem:[#allocation44_spill] sm:$0xff] %v6407_v58 }
 0x67a   :  { %2843 = vmatpush.msrb.mxu0 %v7450_v38  ;;  %2863 = vmatpush.msrb.mxu1 %v7489_v46 }
 0x67b   :  { %2903 = vmatpush.msrb.mxu3 %v7490_v37 }
 0x67c   :  { %2844 = vmatpush.msrb.mxu0 %v7491_v13  ;;  %2864 = vmatpush.msrb.mxu1 %v7492_v40  ;;  %v6378_v40 = vld [vmem:[#allocation9 + $0x1d0] sm:$0xff] }
 0x67d   :  { %2904 = vmatpush.msrb.mxu3 %v7493_v20  ;;  %v6387_v20 = vld [vmem:[#allocation9 + $0x180] sm:$0xff] }
 0x67e   :  { %2845 = vmatpush.msrb.mxu0 %v7494_v30  ;;  %2865 = vmatpush.msrb.mxu1 %v7495_v39  ;;  %v6391_v30 = vld [vmem:[#allocation9 + $0x190] sm:$0xff]  ;;  %v6395_v39 = vld [vmem:[#allocation9 + $0x198] sm:$0xff] }
 0x67f   :  { %2905 = vmatpush.msrb.mxu3 %v7496_v0  ;;  %v6399_v0 = vld [vmem:[#allocation9 + $0x160] sm:$0xff] }
 0x680   :  { %3046 = vmatpush.msra.mxu0 %v6285_v51  ;;  %3066 = vmatpush.msra.mxu1 %v6287_v21 }
 0x681   :  { %3106 = vmatpush.msra.mxu3 %v6289_v17 }
 0x682   :  { %3047 = vmatpush.msra.mxu0 %v6294_v53  ;;  %3067 = vmatpush.msra.mxu1 %v6296_v28 }
 0x683   :  { %3107 = vmatpush.msra.mxu3 %v6298_v4 }
 0x684   :  { %3048 = vmatpush.msra.mxu0 %v6303_v49  ;;  %3068 = vmatpush.msra.mxu1 %v6305_v33 }
 0x686   :  { %3049 = vmatpush.msra.mxu0 %v6387_v20 }
 0x688   :  { %3050 = vmatpush.msra.mxu0 %v6399_v0 }
 0x6e5   :  { %v2631_v23 = vpop.f32.mrf.mxu0  ;;  %v2651_v14 = vpop.f32.mrf.mxu1 }
 0x6e6   :  { %v2694_v57 = vadd.f32 %v2631_v23, %v2155_v16  ;;  %v2695_v48 = vadd.f32 %v2651_v14, %v2196_v1 }
 0x6e8   :  { %v4201_v56 = vmul.f32 -1.442695, %v2694_v57  ;;  %v4202_v22 = vmul.f32 -1.442695, %v2695_v48 }
 0x6ea   :  { %4375 = vpow2.f32 %v4201_v56 }
 0x6eb   :  { %4377 = vpow2.f32 %v4202_v22 }
 0x6ec   :  { %v2691_v32 = vpop.f32.mrf.mxu3  ;;  %v2671_v43 = vpop.f32.mrf.mxu2 }
 0x6ed   :  { %v2697_v29 = vadd.f32 %v2691_v32, %v2278_v35  ;;  %v2696_v38 = vadd.f32 %v2671_v43, %v2237_v47  ;;  %v6401_v43 = vld [vmem:[#allocation9 + $0x168] sm:$0xff]  ;;  %v6411_v47 = vld [vmem:[#allocation9 + $0x140] sm:$0xff] }
 0x6ee   :  { %3051 = vmatpush.msra.mxu0 %v6411_v47 }
 0x6ef   :  { %v4203_v36 = vmul.f32 -1.442695, %v2697_v29 }
 0x6f0   :  { %v4376_v25 = vpop.eup %4375 }
 0x6f1   :  { %v4378_v19 = vpop.eup %4377  ;;  %v2701_v24 = vadd.f32 1.0, %v4376_v25  ;;  %4379 = vpow2.f32 %v4203_v36 }
 0x6f2   :  { %v2720_v2 = vadd.f32 1.0, %v4378_v19  ;;  %v6381_v19 = vld [vmem:[#allocation9 + $0x1b0] sm:$0xff] }
 0x6f3   :  { %4381 = vrcp.f32 %v2701_v24  ;;  %v2713_v52 = vand.u32 2147483648, %v2701_v24  ;;  %v2711_v44 = vand.u32 2147483647, %v2701_v24  ;;  %vm2707_vm15 = vweird.f32 %v2701_v24 }
 0x6f4   :  { %4383 = vrcp.f32 %v2720_v2  ;;  %v2732_v15 = vand.u32 2147483648, %v2720_v2  ;;  %v2730_v45 = vand.u32 2147483647, %v2720_v2  ;;  %vm2726_vm0 = vweird.f32 %v2720_v2 }
 0x6f5   :  { %v2714_v6 = vor.u32 1.1754944e-38, %v2713_v52  ;;  %vm2712_vm3 = vcmp.eq.f32.partialorder %v2711_v44, 8.507059e+37  ;;  %v6437_v52 = vld [vmem:[#allocation9 + $0x108] sm:$0xff]  ;;  %v6447_v44 = vld [vmem:[#allocation9 + $0xe0] sm:$0xff] }
 0x6f6   :  { %v2733_v26 = vor.u32 1.1754944e-38, %v2732_v15  ;;  %vm2731_vm4 = vcmp.eq.f32.partialorder %v2730_v45, 8.507059e+37  ;;  %v6439_v15 = vld [vmem:[#allocation9 + $0x110] sm:$0xff] }
 0x6f7   :  { %v4380_v60 = vpop.eup %4379  ;;  %v6451_v45 = vld [vmem:[#allocation9 + $0xf0] sm:$0xff] }
 0x6f8   :  { %v2740_v3 = vadd.f32 1.0, %v4380_v60  ;;  %v6403_v60 = vld [vmem:[#allocation9 + $0x170] sm:$0xff] }
 0x6f9   :  { %v4382_v31 = vpop.eup %4381 }
 0x6fa   :  { %v4384_v62 = vpop.eup %4383  ;;  %v2703_v34 = vmul.f32 %v4382_v31, %v2701_v24  ;;  %4385 = vrcp.f32 %v2740_v3  ;;  %vm2708_vm13 = vweird.f32 %v4382_v31  ;;  %v2752_v32 = vand.u32 2147483648, %v2740_v3  ;;  %v6383_v24 = vld [vmem:[#allocation9 + $0x1b8] sm:$0xff] }
 0x6fb   :  { %v2722_v50 = vmul.f32 %v4384_v62, %v2720_v2  ;;  %4387 = vtanh.f32 %v2696_v38  ;;  %vm2727_vm14 = vweird.f32 %v4384_v62  ;;  %vm2709_vm1 = vmor %vm2707_vm15, %vm2708_vm13  ;;  %vm2746_vm6 = vweird.f32 %v2740_v3  ;;  %3108 = vmatpush.msra.mxu3 %v6383_v24  ;;  %v6389_v2 = vld [vmem:[#allocation9 + $0x188] sm:$0xff]  ;;  %v6419_v38 = vld [vmem:[#allocation9 + $0x158] sm:$0xff] }
 0x6fc   :  { %v2704_v63 = vsub.f32 1.0, %v2703_v34  ;;  %vm2728_vm2 = vmor %vm2726_vm0, %vm2727_vm14  ;;  %v2750_v29 = vand.u32 2147483647, %v2740_v3  ;;  %v2753_v36 = vor.u32 1.1754944e-38, %v2752_v32  ;;  %3069 = vmatpush.msra.mxu1 %v6389_v2  ;;  %v6425_v34 = vld [vmem:[#allocation9 + $0x128] sm:$0xff] }
 0x6fd   :  { %v2723_v61 = vsub.f32 1.0, %v2722_v50  ;;  %3109 = vmatpush.msra.mxu3 %v6395_v39  ;;  %7503 = vst [vmem:[#allocation47_spill] sm:$0xff] %v6425_v34  ;;  %v6427_v50 = vld [vmem:[#allocation9 + $0x130] sm:$0xff] }
 0x6fe   :  { %v2705_v54 = vmul.f32 %v4382_v31, %v2704_v63  ;;  %vm2751_vm8 = vcmp.eq.f32.partialorder %v2750_v29, 8.507059e+37  ;;  %3070 = vmatpush.msra.mxu1 %v6401_v43  ;;  %v6431_v63 = vld [vmem:[#allocation9 + $0x138] sm:$0xff] }
 0x6ff   :  { %v2724_v11 = vmul.f32 %v4384_v62, %v2723_v61  ;;  %3110 = vmatpush.msra.mxu3 %v6407_v58  ;;  %7504 = vst [vmem:[#allocation17_spill] sm:$0xff] %v6431_v63  ;;  %v6435_v61 = vld [vmem:[#allocation9 + $0x100] sm:$0xff] }
 0x700   :  { %v4386_v10 = vpop.eup %4385  ;;  %v2706_v8 = vadd.f32 %v4382_v31, %v2705_v54  ;;  %v6443_v54 = vld [vmem:[#allocation9 + $0x118] sm:$0xff] }
 0x701   :  { %v2725_v55 = vadd.f32 %v4384_v62, %v2724_v11  ;;  %v2742_v12 = vmul.f32 %v4386_v10, %v2740_v3  ;;  %v4388_v42 = vpop.eup %4387  ;;  %vm2747_vm5 = vweird.f32 %v4386_v10  ;;  %v6413_v3 = vld [vmem:[#allocation9 + $0x148] sm:$0xff]  ;;  %3111 = vmatpush.msra.mxu3 %v6419_v38 }
 0x702   :  { %v2710_v59 = vsel %vm2709_vm1, %v4382_v31, %v2706_v8  ;;  %vm2748_vm7 = vmor %vm2746_vm6, %vm2747_vm5  ;;  %7501 = vst [vmem:[#allocation45_spill] sm:$0xff] %v6413_v3  ;;  %v6415_v31 = vld [vmem:[#allocation9 + $0x150] sm:$0xff]  ;;  %3071 = vmatpush.msra.mxu1 %v6413_v3  ;;  %v6449_v11 = vld [vmem:[#allocation9 + $0xe8] sm:$0xff] }
 0x703   :  { %v2715_v16 = vsel %vm2712_vm3, %v2714_v6, %v2710_v59  ;;  %v2729_v1 = vsel %vm2728_vm2, %v4384_v62, %v2725_v55  ;;  %v2743_v23 = vsub.f32 1.0, %v2742_v12  ;;  %v6423_v62 = vld [vmem:[#allocation9 + $0x120] sm:$0xff]  ;;  %3112 = vmatpush.msra.mxu3 %v6431_v63  ;;  %v7506_v6 = vld [vmem:[#allocation21_spill] sm:$0xff]  ;;  %v6459_v12 = vld [vmem:[#allocation9 + $0xf8] sm:$0xff] }
 0x704   :  { %v2734_v14 = vsel %vm2731_vm4, %v2733_v26, %v2729_v1  ;;  %v2757_v57 = vmul.f32 %v4388_v42, %v2715_v16  ;;  %7502 = vst [vmem:[#allocation46_spill] sm:$0xff] %v6423_v62  ;;  %3052 = vmatpush.msra.mxu0 %v6423_v62  ;;  %3072 = vmatpush.msra.mxu1 %v6425_v34  ;;  %v6463_v42 = vld [vmem:[#allocation9 + $0xc0] sm:$0xff]  ;;  %v6465_v16 = vld [vmem:[#allocation9 + $0xc8] sm:$0xff]  ;;  %v6467_v1 = vld [vmem:[#allocation9 + $0xd0] sm:$0xff] }
 0x705   :  { %v2756_v48 = vmul.f32 %v2734_v14, %v6276_v5  ;;  %v2744_v56 = vmul.f32 %v4386_v10, %v2743_v23  ;;  %v6375_v5 = vld [vmem:[#allocation9 + $0x1f0] sm:$0xff]  ;;  %3113 = vmatpush.msra.mxu3 %v6443_v54  ;;  %v2199_v55 = vadd.f32 %v7506_v6, %v6260_v7  ;;  %v6499_v6 = vld [vmem:[#allocation9 + $0x68] sm:$0xff] }
 0x706   :  { %3086 = vmatpush.msra.mxu2 %v6375_v5  ;;  %3053 = vmatpush.msra.mxu0 %v6435_v61  ;;  %7509 = vst [vmem:[#allocation34_spill] sm:$0xff] %v6499_v6  ;;  %v6523_v7 = vld [vmem:[#allocation9 + $0x28] sm:$0xff] }
 0x707   :  { %v6366_v22 = vadd.f32 %v2757_v57, %v2756_v48  ;;  %v2745_v35 = vadd.f32 %v4386_v10, %v2744_v56  ;;  %3073 = vmatpush.msra.mxu1 %v6437_v52  ;;  %3114 = vmatpush.msra.mxu3 %v6459_v12  ;;  %v6471_v57 = vld [vmem:[#allocation9 + $0xd8] sm:$0xff]  ;;  %v6475_v48 = vld [vmem:[#allocation9 + $0xa0] sm:$0xff]  ;;  %v6477_v56 = vld [vmem:[#allocation9 + $0xa8] sm:$0xff] }
 0x708   :  { %3087 = vmatpush.msra.mxu2 %v6378_v40  ;;  %3054 = vmatpush.msra.mxu0 %v6447_v44 }
 0x709   :  { %4389 = vtanh.f32 %v6366_v22  ;;  %v2749_v46 = vsel %vm2748_vm7, %v4386_v10, %v2745_v35  ;;  %v7505_v10 = vld [vmem:[#allocation13_spill] sm:$0xff]  ;;  %3074 = vmatpush.msra.mxu1 %v6449_v11  ;;  %3115 = vmatpush.msra.mxu3 %v6471_v57  ;;  %v6479_v35 = vld [vmem:[#allocation9 + $0xb0] sm:$0xff] }
 0x70a   :  { %v2754_v25 = vsel %vm2751_vm8, %v2753_v36, %v2749_v46  ;;  %3088 = vmatpush.msra.mxu2 %v6381_v19  ;;  %v2158_v8 = vadd.f32 %v7505_v10, %v6258_v27  ;;  %3055 = vmatpush.msra.mxu0 %v6463_v42  ;;  %v6483_v46 = vld [vmem:[#allocation9 + $0xb8] sm:$0xff]  ;;  %v6487_v36 = vld [vmem:[#allocation9 + $0x80] sm:$0xff]  ;;  %v6527_v27 = vld [vmem:[#allocation9 + $0x30] sm:$0xff] }
 0x70b   :  { %3075 = vmatpush.msra.mxu1 %v6465_v16  ;;  %3116 = vmatpush.msra.mxu3 %v6483_v46  ;;  %v6495_v10 = vld [vmem:[#allocation9 + $0x98] sm:$0xff] }
 0x70c   :  { %3089 = vmatpush.msra.mxu2 %v6391_v30  ;;  %3056 = vmatpush.msra.mxu0 %v6475_v48  ;;  %7507 = vst [vmem:[#allocation16_spill] sm:$0xff] %v6495_v10 }
 0x70d   :  { %3076 = vmatpush.msra.mxu1 %v6477_v56  ;;  %3117 = vmatpush.msra.mxu3 %v6495_v10 }
 0x70e   :  { %3090 = vmatpush.msra.mxu2 %v6403_v60  ;;  %3057 = vmatpush.msra.mxu0 %v6487_v36 }
 0x70f   :  { %v4390_v37 = vpop.eup %4389 }
 0x710   :  { %v6369_v13 = vmul.f32 %v4390_v37, %v2754_v25  ;;  %3091 = vmatpush.msra.mxu2 %v6415_v31  ;;  %v6489_v37 = vld [vmem:[#allocation9 + $0x88] sm:$0xff]  ;;  %v6491_v25 = vld [vmem:[#allocation9 + $0x90] sm:$0xff] }
 0x711   :  { %3077 = vmatpush.msra.mxu1 %v6489_v37 }
 0x712   :  { %7499 = vst [vmem:[#allocation36_spill] sm:$0xff] %v6369_v13  ;;  %2846 = vmatmul.f32.vlgmr.msrb.gmra.mxu0 %v6369_v13  ;;  %2866 = vmatmul.f32.vlgmr.msrb.gmra.mxu1 %v6369_v13 }
 0x713   :  { %2886 = vmatmul.f32.vlgmr.msrb.gmra.mxu2 %v6369_v13  ;;  %2906 = vmatmul.f32.vlgmr.msrb.gmra.mxu3 %v6369_v13  ;;  %v6513_v13 = vld [vmem:[#allocation9 + $0x48] sm:$0xff] }
 0x714   :  { %3092 = vmatpush.msra.mxu2 %v6427_v50  ;;  %3078 = vmatpush.msra.mxu1 %v6499_v6  ;;  %7514 = vst [vmem:[#allocation18_spill] sm:$0xff] %v6513_v13  ;;  %v6529_v6 = vld [vmem:[#allocation9 + $0x38] sm:$0xff] }
 0x716   :  { %3093 = vmatpush.msra.mxu2 %v6439_v15  ;;  %3079 = vmatpush.msra.mxu1 %v6513_v13  ;;  %v6541_v13 = vld [vmem:[#allocation9 + $0x18] sm:$0xff] }
 0x718   :  { %3094 = vmatpush.msra.mxu2 %v6451_v45  ;;  %3080 = vmatpush.msra.mxu1 %v6523_v7 }
 0x71a   :  { %3095 = vmatpush.msra.mxu2 %v6467_v1 }
 0x71c   :  { %3096 = vmatpush.msra.mxu2 %v6479_v35 }
 0x71e   :  { %3097 = vmatpush.msra.mxu2 %v6491_v25 }
 0x78f   :  { %v2847_v26 = vpop.f32.mrf.mxu0  ;;  %v2867_v59 = vpop.f32.mrf.mxu1 }
 0x790   :  { %v2910_v23 = vadd.f32 %v2847_v26, %v2158_v8  ;;  %v2911_v14 = vadd.f32 %v2867_v59, %v2199_v55  ;;  %v6497_v8 = vld [vmem:[#allocation9 + $0x60] sm:$0xff]  ;;  %v6505_v59 = vld [vmem:[#allocation9 + $0x70] sm:$0xff] }
 0x791   :  { %7508 = vst [vmem:[#allocation23_spill] sm:$0xff] %v6497_v8  ;;  %v7510_v55 = vld [vmem:[#allocation20_spill] sm:$0xff]  ;;  %3058 = vmatpush.msra.mxu0 %v6497_v8  ;;  %3098 = vmatpush.msra.mxu2 %v6505_v59 }
 0x792   :  { %v4204_v32 = vmul.f32 -1.442695, %v2910_v23  ;;  %v4205_v29 = vmul.f32 -1.442695, %v2911_v14  ;;  %v2281_v26 = vadd.f32 %v7510_v55, %v6268_v18  ;;  %7511 = vst [vmem:[#allocation26_spill] sm:$0xff] %v6505_v59  ;;  %v6507_v23 = vld [vmem:[#allocation9 + $0x78] sm:$0xff] }
 0x793   :  { %7512 = vst [vmem:[#allocation12_spill] sm:$0xff] %v6507_v23  ;;  %v6509_v14 = vld [vmem:[#allocation9 + $0x40] sm:$0xff]  ;;  %3118 = vmatpush.msra.mxu3 %v6507_v23  ;;  %3099 = vmatpush.msra.mxu2 %v6515_v9 }
 0x794   :  { %4391 = vpow2.f32 %v4204_v32  ;;  %7513 = vst [vmem:[#allocation19_spill] sm:$0xff] %v6509_v14  ;;  %v6521_v18 = vld [vmem:[#allocation9 + $0x20] sm:$0xff]  ;;  %3059 = vmatpush.msra.mxu0 %v6509_v14  ;;  %v6539_v14 = vld [vmem:[#allocation9 + $0x10] sm:$0xff] }
 0x795   :  { %4393 = vpow2.f32 %v4205_v29  ;;  %v6517_v29 = vld [vmem:[#allocation9 + $0x58] sm:$0xff]  ;;  %7515 = vst [vmem:[#allocation30_spill] sm:$0xff] %v6539_v14  ;;  %3100 = vmatpush.msra.mxu2 %v6527_v27 }
 0x796   :  { %v2907_v32 = vpop.f32.mrf.mxu3  ;;  %3119 = vmatpush.msra.mxu3 %v6517_v29  ;;  %3060 = vmatpush.msra.mxu0 %v6521_v18 }
 0x797   :  { %v2913_v55 = vadd.f32 %v2907_v32, %v2281_v26  ;;  %v6533_v26 = vld [vmem:[#allocation9] sm:$0xff]  ;;  %v6535_v32 = vld [vmem:[#allocation9 + $0x8] sm:$0xff]  ;;  %3101 = vmatpush.msra.mxu2 %v6539_v14 }
 0x798   :  { %3120 = vmatpush.msra.mxu3 %v6529_v6  ;;  %3061 = vmatpush.msra.mxu0 %v6533_v26 }
 0x799   :  { %v4206_v8 = vmul.f32 -1.442695, %v2913_v55  ;;  %3081 = vmatpush.msra.mxu1 %v6535_v32  ;;  %3302 = vmatpush.msrb.mxu2 %v6375_v5 }
 0x79a   :  { %v4392_v23 = vpop.eup %4391  ;;  %3121 = vmatpush.msra.mxu3 %v6541_v13  ;;  %3262 = vmatpush.msrb.mxu0 %v6285_v51 }
 0x79b   :  { %v4394_v59 = vpop.eup %4393  ;;  %v6543_v10 = vadd.f32 1.0, %v4392_v23  ;;  %4395 = vpow2.f32 %v4206_v8  ;;  %3282 = vmatpush.msrb.mxu1 %v6287_v21  ;;  %v2887_v8 = vpop.f32.mrf.mxu2  ;;  %v7516_v23 = vld [vmem:[#allocation53_spill] sm:$0xff]  ;;  %3303 = vmatpush.msrb.mxu2 %v6378_v40 }
 0x79c   :  { %v6547_v55 = vadd.f32 1.0, %v4394_v59  ;;  %3322 = vmatpush.msrb.mxu3 %v6289_v17  ;;  %3263 = vmatpush.msrb.mxu0 %v6294_v53  ;;  %v2240_v14 = vadd.f32 %v7516_v23, %v7497_v41 }
 0x79d   :  { %4397 = vrcp.f32 %v6543_v10  ;;  %3283 = vmatpush.msrb.mxu1 %v6296_v28  ;;  %3304 = vmatpush.msrb.mxu2 %v6381_v19  ;;  %v2927_v23 = vand.u32 2147483647, %v6543_v10  ;;  %vm2923_vm11 = vweird.f32 %v6543_v10 }
 0x79e   :  { %4399 = vrcp.f32 %v6547_v55  ;;  %3323 = vmatpush.msrb.mxu3 %v6298_v4  ;;  %3264 = vmatpush.msrb.mxu0 %v6303_v49  ;;  %v2912_v17 = vadd.f32 %v2887_v8, %v2240_v14  ;;  %v2929_v14 = vand.u32 2147483648, %v6543_v10  ;;  %v2948_v8 = vand.u32 2147483648, %v6547_v55 }
 0x79f   :  { %3284 = vmatpush.msrb.mxu1 %v6305_v33  ;;  %3305 = vmatpush.msrb.mxu2 %v6391_v30  ;;  %vm2942_vm12 = vweird.f32 %v6547_v55  ;;  %vm2928_vm15 = vcmp.eq.f32.partialorder %v2927_v23, 8.507059e+37  ;;  %v7519_v23 = vld [vmem:[#allocation34_spill] sm:$0xff] }
 0x7a0   :  { %3324 = vmatpush.msrb.mxu3 %v6383_v24  ;;  %3265 = vmatpush.msrb.mxu0 %v6387_v20 }
 0x7a1   :  { %v4396_v59 = vpop.eup %4395  ;;  %3285 = vmatpush.msrb.mxu1 %v6389_v2  ;;  %3306 = vmatpush.msrb.mxu2 %v6403_v60 }
 0x7a2   :  { %v6565_v51 = vadd.f32 1.0, %v4396_v59  ;;  %3325 = vmatpush.msrb.mxu3 %v6395_v39  ;;  %3266 = vmatpush.msrb.mxu0 %v6399_v0 }
 0x7a3   :  { %v4398_v21 = vpop.eup %4397  ;;  %3286 = vmatpush.msrb.mxu1 %v6401_v43  ;;  %3307 = vmatpush.msrb.mxu2 %v6415_v31 }
 0x7a4   :  { %v4400_v53 = vpop.eup %4399  ;;  %v2919_v28 = vmul.f32 %v4398_v21, %v6543_v10  ;;  %4401 = vrcp.f32 %v6565_v51  ;;  %3326 = vmatpush.msrb.mxu3 %v6407_v58  ;;  %vm2924_vm9 = vweird.f32 %v4398_v21  ;;  %3267 = vmatpush.msrb.mxu0 %v6411_v47  ;;  %v2949_v10 = vor.u32 1.1754944e-38, %v2948_v8  ;;  %v7518_v8 = vld [vmem:[#allocation23_spill] sm:$0xff] }
 0x7a5   :  { %v2938_v4 = vmul.f32 %v4400_v53, %v6547_v55  ;;  %4403 = vtanh.f32 %v2912_v17  ;;  %3287 = vmatpush.msrb.mxu1 %v6413_v3  ;;  %vm2943_vm10 = vweird.f32 %v4400_v53  ;;  %vm2925_vm13 = vmor %vm2923_vm11, %vm2924_vm9  ;;  %3308 = vmatpush.msrb.mxu2 %v6427_v50  ;;  %vm2962_vm2 = vweird.f32 %v6565_v51 }
 0x7a6   :  { %v2920_v49 = vsub.f32 1.0, %v2919_v28  ;;  %3327 = vmatpush.msrb.mxu3 %v6419_v38  ;;  %3268 = vmatpush.msrb.mxu0 %v6423_v62  ;;  %vm2944_vm14 = vmor %vm2942_vm12, %vm2943_vm10 }
 0x7a7   :  { %v2939_v33 = vsub.f32 1.0, %v2938_v4  ;;  %v2946_v4 = vand.u32 2147483647, %v6547_v55  ;;  %3288 = vmatpush.msrb.mxu1 %v6425_v34  ;;  %3309 = vmatpush.msrb.mxu2 %v6439_v15 }
 0x7a8   :  { %v2921_v59 = vmul.f32 %v4398_v21, %v2920_v49  ;;  %v2930_v49 = vor.u32 1.1754944e-38, %v2929_v14  ;;  %3328 = vmatpush.msrb.mxu3 %v6431_v63  ;;  %3269 = vmatpush.msrb.mxu0 %v6435_v61 }
 0x7a9   :  { %v2940_v28 = vmul.f32 %v4400_v53, %v2939_v33  ;;  %3289 = vmatpush.msrb.mxu1 %v6437_v52  ;;  %vm2947_vm0 = vcmp.eq.f32.partialorder %v2946_v4, 8.507059e+37  ;;  %3310 = vmatpush.msrb.mxu2 %v6451_v45 }
 0x7aa   :  { %v6590_v17 = vpop.eup %4401  ;;  %v2922_v58 = vadd.f32 %v4398_v21, %v2921_v59  ;;  %3329 = vmatpush.msrb.mxu3 %v6443_v54  ;;  %3270 = vmatpush.msrb.mxu0 %v6447_v44 }
 0x7ab   :  { %v2941_v33 = vadd.f32 %v4400_v53, %v2940_v28  ;;  %v2958_v3 = vmul.f32 %v6590_v17, %v6565_v51  ;;  %v4404_v55 = vpop.eup %4403  ;;  %3290 = vmatpush.msrb.mxu1 %v6449_v11  ;;  %3311 = vmatpush.msrb.mxu2 %v6467_v1  ;;  %vm2963_vm1 = vweird.f32 %v6590_v17 }
 0x7ac   :  { %v2926_v59 = vsel %vm2925_vm13, %v4398_v21, %v2922_v58  ;;  %3330 = vmatpush.msrb.mxu3 %v6459_v12  ;;  %3271 = vmatpush.msrb.mxu0 %v6463_v42  ;;  %vm2964_vm3 = vmor %vm2962_vm2, %vm2963_vm1 }
 0x7ad   :  { %v2931_v34 = vsel %vm2928_vm15, %v2930_v49, %v2926_v59  ;;  %v2945_v14 = vsel %vm2944_vm14, %v4400_v53, %v2941_v33  ;;  %v2959_v28 = vsub.f32 1.0, %v2958_v3  ;;  %3291 = vmatpush.msrb.mxu1 %v6465_v16  ;;  %3312 = vmatpush.msrb.mxu2 %v6479_v35  ;;  %v7520_v49 = vld [vmem:[#allocation26_spill] sm:$0xff]  ;;  %v7521_v33 = vld [vmem:[#allocation12_spill] sm:$0xff] }
 0x7ae   :  { %v2950_v62 = vsel %vm2947_vm0, %v2949_v10, %v2945_v14  ;;  %v2973_v63 = vmul.f32 %v4404_v55, %v2931_v34  ;;  %3331 = vmatpush.msrb.mxu3 %v6471_v57  ;;  %3272 = vmatpush.msrb.mxu0 %v6475_v48  ;;  %v2966_v34 = vand.u32 2147483647, %v6565_v51  ;;  %v7523_v10 = vld [vmem:[#allocation18_spill] sm:$0xff] }
 0x7af   :  { %v2972_v58 = vmul.f32 %v2950_v62, %v6366_v22  ;;  %v2960_v21 = vmul.f32 %v6590_v17, %v2959_v28  ;;  %3292 = vmatpush.msrb.mxu1 %v6477_v56  ;;  %v2968_v62 = vand.u32 2147483648, %v6565_v51  ;;  %3313 = vmatpush.msrb.mxu2 %v6491_v25  ;;  %v7522_v51 = vld [vmem:[#allocation19_spill] sm:$0xff]  ;;  %v7525_v14 = vld [vmem:[#allocation30_spill] sm:$0xff]  ;;  %v7530_v28 = vld [vmem:[#allocation32_spill] sm:$0xff] }
 0x7b0   :  { %3332 = vmatpush.msrb.mxu3 %v6483_v46  ;;  %3273 = vmatpush.msrb.mxu0 %v6487_v36  ;;  %vm2967_vm4 = vcmp.eq.f32.partialorder %v2966_v34, 8.507059e+37 }
 0x7b1   :  { %v6614_v3 = vadd.f32 %v2973_v63, %v2972_v58  ;;  %v2961_v22 = vadd.f32 %v6590_v17, %v2960_v21  ;;  %3293 = vmatpush.msrb.mxu1 %v6489_v37  ;;  %v7517_v63 = vld [vmem:[#allocation16_spill] sm:$0xff]  ;;  %v2969_v4 = vor.u32 1.1754944e-38, %v2968_v62  ;;  %3314 = vmatpush.msrb.mxu2 %v7520_v49  ;;  %v7531_v58 = vld [vmem:[#allocation50_spill] sm:$0xff] }
 0x7b2   :  { %3333 = vmatpush.msrb.mxu3 %v7517_v63  ;;  %3274 = vmatpush.msrb.mxu0 %v7518_v8 }
 0x7b3   :  { %4405 = vtanh.f32 %v6614_v3  ;;  %v2965_v53 = vsel %vm2964_vm3, %v6590_v17, %v2961_v22  ;;  %3294 = vmatpush.msrb.mxu1 %v7519_v23  ;;  %3315 = vmatpush.msrb.mxu2 %v6515_v9 }
 0x7b4   :  { %3334 = vmatpush.msrb.mxu3 %v7521_v33  ;;  %3275 = vmatpush.msrb.mxu0 %v7522_v51  ;;  %v2970_v55 = vsel %vm2967_vm4, %v2969_v4, %v2965_v53 }
 0x7b5   :  { %3295 = vmatpush.msrb.mxu1 %v7523_v10  ;;  %3316 = vmatpush.msrb.mxu2 %v6527_v27 }
 0x7b6   :  { %3335 = vmatpush.msrb.mxu3 %v6517_v29  ;;  %3276 = vmatpush.msrb.mxu0 %v6521_v18 }
 0x7b7   :  { %3296 = vmatpush.msrb.mxu1 %v6523_v7  ;;  %3317 = vmatpush.msrb.mxu2 %v7525_v14 }
 0x7b8   :  { %3336 = vmatpush.msrb.mxu3 %v6529_v6  ;;  %3277 = vmatpush.msrb.mxu0 %v6533_v26 }
 0x7b9   :  { %v4406_v59 = vpop.eup %4405  ;;  %3297 = vmatpush.msrb.mxu1 %v6535_v32 }
 0x7ba   :  { %v6641_v17 = vmul.f32 %v4406_v59, %v2970_v55  ;;  %3337 = vmatpush.msrb.mxu3 %v6541_v13  ;;  %v7532_v55 = vld [vmem:[#allocation40_spill] sm:$0xff] }
 0x7bc   :  { %7524 = vst [vmem:[#allocation13_spill] sm:$0xff] %v6641_v17  ;;  %3062 = vmatmul.f32.vlgmr.msra.gmra.mxu0 %v6641_v17  ;;  %3082 = vmatmul.f32.vlgmr.msra.gmra.mxu1 %v6641_v17 }
 0x7bd   :  { %3102 = vmatmul.f32.vlgmr.msra.gmra.mxu2 %v6641_v17  ;;  %3122 = vmatmul.f32.vlgmr.msra.gmra.mxu3 %v6641_v17 }
 0x7be   :  { %3518 = vmatpush.msra.mxu2 %v6375_v5  ;;  %v7526_v5 = vld [vmem:[#allocation49_spill] sm:$0xff] }
 0x7c0   :  { %3519 = vmatpush.msra.mxu2 %v6378_v40  ;;  %v7527_v40 = vld [vmem:[#allocation37_spill] sm:$0xff] }
 0x7c2   :  { %3520 = vmatpush.msra.mxu2 %v6381_v19  ;;  %v2161_v19 = vadd.f32 %v7527_v40, %v7526_v5 }
 0x7c4   :  { %3521 = vmatpush.msra.mxu2 %v6391_v30  ;;  %v7528_v30 = vld [vmem:[#allocation51_spill] sm:$0xff] }
 0x7c6   :  { %3522 = vmatpush.msra.mxu2 %v6403_v60  ;;  %v7529_v60 = vld [vmem:[#allocation52_spill] sm:$0xff] }
 0x7c8   :  { %3523 = vmatpush.msra.mxu2 %v6415_v31  ;;  %v2202_v31 = vadd.f32 %v7529_v60, %v7528_v30 }
 0x7ca   :  { %3524 = vmatpush.msra.mxu2 %v6427_v50 }
 0x7cc   :  { %3525 = vmatpush.msra.mxu2 %v6439_v15 }
 0x7ce   :  { %3526 = vmatpush.msra.mxu2 %v6451_v45 }
 0x7d0   :  { %3527 = vmatpush.msra.mxu2 %v6467_v1 }
 0x7d2   :  { %3528 = vmatpush.msra.mxu2 %v6479_v35 }
 0x7d4   :  { %3529 = vmatpush.msra.mxu2 %v6491_v25 }
 0x7d6   :  { %3530 = vmatpush.msra.mxu2 %v7520_v49 }
 0x7d8   :  { %3531 = vmatpush.msra.mxu2 %v6515_v9  ;;  %v2284_v9 = vadd.f32 %v7531_v58, %v7530_v28 }
 0x7da   :  { %3532 = vmatpush.msra.mxu2 %v6527_v27 }
 0x7dc   :  { %3533 = vmatpush.msra.mxu2 %v7525_v14  ;;  %v2243_v14 = vadd.f32 %v7532_v55, %v7497_v41 }
 0x839   :  { %v3063_v50 = vpop.f32.mrf.mxu0  ;;  %v3083_v15 = vpop.f32.mrf.mxu1 }
 0x83a   :  { %v3126_v45 = vadd.f32 %v3063_v50, %v2161_v19  ;;  %v3127_v1 = vadd.f32 %v3083_v15, %v2202_v31 }
 0x83c   :  { %v4207_v35 = vmul.f32 -1.442695, %v3126_v45  ;;  %v4208_v25 = vmul.f32 -1.442695, %v3127_v1 }
 0x83e   :  { %4407 = vpow2.f32 %v4207_v35 }
 0x83f   :  { %4409 = vpow2.f32 %v4208_v25 }
 0x840   :  { %v3123_v27 = vpop.f32.mrf.mxu3  ;;  %v3103_v49 = vpop.f32.mrf.mxu2 }
 0x841   :  { %v3129_v21 = vadd.f32 %v3123_v27, %v2284_v9  ;;  %v3128_v60 = vadd.f32 %v3103_v49, %v2243_v14 }
 0x843   :  { %v4209_v22 = vmul.f32 -1.442695, %v3129_v21 }
 0x844   :  { %v4408_v62 = vpop.eup %4407 }
 0x845   :  { %v4410_v34 = vpop.eup %4409  ;;  %v3133_v53 = vadd.f32 1.0, %v4408_v62  ;;  %4411 = vpow2.f32 %v4209_v22 }
 0x846   :  { %v3152_v4 = vadd.f32 1.0, %v4410_v34 }
 0x847   :  { %4413 = vrcp.f32 %v3133_v53  ;;  %v3145_v35 = vand.u32 2147483648, %v3133_v53  ;;  %v3143_v9 = vand.u32 2147483647, %v3133_v53  ;;  %vm3139_vm7 = vweird.f32 %v3133_v53 }
 0x848   :  { %4415 = vrcp.f32 %v3152_v4  ;;  %v3164_v25 = vand.u32 2147483648, %v3152_v4  ;;  %v3162_v21 = vand.u32 2147483647, %v3152_v4  ;;  %vm3158_vm8 = vweird.f32 %v3152_v4 }
 0x849   :  { %v3146_v34 = vor.u32 1.1754944e-38, %v3145_v35  ;;  %vm3144_vm11 = vcmp.eq.f32.partialorder %v3143_v9, 8.507059e+37 }
 0x84a   :  { %v3165_v55 = vor.u32 1.1754944e-38, %v3164_v25  ;;  %vm3163_vm12 = vcmp.eq.f32.partialorder %v3162_v21, 8.507059e+37 }
 0x84b   :  { %v4412_v59 = vpop.eup %4411 }
 0x84c   :  { %v3172_v40 = vadd.f32 1.0, %v4412_v59 }
 0x84d   :  { %v4414_v19 = vpop.eup %4413 }
 0x84e   :  { %v4416_v31 = vpop.eup %4415  ;;  %v3135_v50 = vmul.f32 %v4414_v19, %v3133_v53  ;;  %4417 = vrcp.f32 %v3172_v40  ;;  %vm3140_vm5 = vweird.f32 %v4414_v19  ;;  %v3184_v35 = vand.u32 2147483648, %v3172_v40 }
 0x84f   :  { %v3154_v15 = vmul.f32 %v4416_v31, %v3152_v4  ;;  %4419 = vtanh.f32 %v3128_v60  ;;  %vm3159_vm6 = vweird.f32 %v4416_v31  ;;  %vm3141_vm9 = vmor %vm3139_vm7, %vm3140_vm5  ;;  %vm3178_vm14 = vweird.f32 %v3172_v40 }
 0x850   :  { %v3136_v45 = vsub.f32 1.0, %v3135_v50  ;;  %vm3160_vm10 = vmor %vm3158_vm8, %vm3159_vm6  ;;  %v3185_v9 = vor.u32 1.1754944e-38, %v3184_v35 }
 0x851   :  { %v3155_v1 = vsub.f32 1.0, %v3154_v15 }
 0x852   :  { %v3137_v58 = vmul.f32 %v4414_v19, %v3136_v45 }
 0x853   :  { %v3156_v27 = vmul.f32 %v4416_v31, %v3155_v1 }
 0x854   :  { %v4418_v22 = vpop.eup %4417  ;;  %v3138_v62 = vadd.f32 %v4414_v19, %v3137_v58 }
 0x855   :  { %v3157_v49 = vadd.f32 %v4416_v31, %v3156_v27  ;;  %v3174_v59 = vmul.f32 %v4418_v22, %v3172_v40  ;;  %v4420_v60 = vpop.eup %4419  ;;  %vm3179_vm13 = vweird.f32 %v4418_v22 }
 0x856   :  { %v3142_v14 = vsel %vm3141_vm9, %v4414_v19, %v3138_v62  ;;  %v3182_v19 = vand.u32 2147483647, %v3172_v40  ;;  %vm3180_vm15 = vmor %vm3178_vm14, %vm3179_vm13  ;;  %v6698_v40 = vld [vmem:[#allocation9 + $0x1c0] sm:$0xff]  ;;  %v6702_v62 = vld [vmem:[#allocation9 + $0x1d8] sm:$0xff] }
 0x857   :  { %v3147_v50 = vsel %vm3144_vm11, %v3146_v34, %v3142_v14  ;;  %v3161_v15 = vsel %vm3160_vm10, %v4416_v31, %v3157_v49  ;;  %v3175_v45 = vsub.f32 1.0, %v3174_v59  ;;  %v6707_v34 = vld [vmem:[#allocation9 + $0x1a0] sm:$0xff]  ;;  %v6709_v49 = vld [vmem:[#allocation9 + $0x1a8] sm:$0xff]  ;;  %v7536_v14 = vld [vmem:[#allocation46_spill] sm:$0xff] }
 0x858   :  { %v3166_v1 = vsel %vm3163_vm12, %v3165_v55, %v3161_v15  ;;  %v3189_v17 = vmul.f32 %v4420_v60, %v3147_v50  ;;  %vm3183_vm0 = vcmp.eq.f32.partialorder %v3182_v19, 8.507059e+37  ;;  %v7534_v59 = vld [vmem:[#allocation44_spill] sm:$0xff]  ;;  %v7535_v55 = vld [vmem:[#allocation45_spill] sm:$0xff] }
 0x859   :  { %v3188_v41 = vmul.f32 %v3166_v1, %v6614_v3  ;;  %v3176_v58 = vmul.f32 %v4418_v22, %v3175_v45  ;;  %v6691_v3 = vld [vmem:[#allocation9 + $0x1e8] sm:$0xff] }
 0x85a   :  { %3498 = vmatpush.msra.mxu1 %v6691_v3 }
 0x85b   :  { %v6680_v53 = vadd.f32 %v3189_v17, %v3188_v41  ;;  %v3177_v4 = vadd.f32 %v4418_v22, %v3176_v58  ;;  %v6689_v41 = vld [vmem:[#allocation9 + $0x1e0] sm:$0xff]  ;;  %v6693_v17 = vld [vmem:[#allocation9 + $0x1f8] sm:$0xff] }
 0x85c   :  { %3478 = vmatpush.msra.mxu0 %v6689_v41  ;;  %3538 = vmatpush.msra.mxu3 %v6693_v17 }
 0x85d   :  { %4421 = vtanh.f32 %v6680_v53  ;;  %v3181_v25 = vsel %vm3180_vm15, %v4418_v22, %v3177_v4  ;;  %v6700_v22 = vld [vmem:[#allocation9 + $0x1c8] sm:$0xff] }
 0x85e   :  { %v3186_v27 = vsel %vm3183_vm0, %v3185_v9, %v3181_v25  ;;  %3479 = vmatpush.msra.mxu0 %v6698_v40  ;;  %3499 = vmatpush.msra.mxu1 %v6700_v22 }
 0x85f   :  { %3539 = vmatpush.msra.mxu3 %v6702_v62 }
 0x860   :  { %3480 = vmatpush.msra.mxu0 %v6707_v34  ;;  %3500 = vmatpush.msra.mxu1 %v6709_v49 }
 0x861   :  { %3540 = vmatpush.msra.mxu3 %v6383_v24  ;;  %v7537_v24 = vld [vmem:[#allocation47_spill] sm:$0xff] }
 0x862   :  { %3481 = vmatpush.msra.mxu0 %v6387_v20  ;;  %3501 = vmatpush.msra.mxu1 %v6389_v2  ;;  %v7538_v20 = vld [vmem:[#allocation17_spill] sm:$0xff]  ;;  %v7539_v2 = vld [vmem:[#allocation54_spill] sm:$0xff] }
 0x863   :  { %v4422_v31 = vpop.eup %4421  ;;  %3541 = vmatpush.msra.mxu3 %v6395_v39  ;;  %v2164_v39 = vadd.f32 %v7539_v2, %v7526_v5 }
 0x864   :  { %v6683_v21 = vmul.f32 %v4422_v31, %v3186_v27  ;;  %3482 = vmatpush.msra.mxu0 %v6399_v0  ;;  %3502 = vmatpush.msra.mxu1 %v6401_v43  ;;  %v7540_v0 = vld [vmem:[#allocation39_spill] sm:$0xff] }
 0x865   :  { %3542 = vmatpush.msra.mxu3 %v7534_v59  ;;  %v2205_v43 = vadd.f32 %v7540_v0, %v7528_v30 }
 0x866   :  { %7533 = vst [vmem:[#allocation21_spill] sm:$0xff] %v6683_v21  ;;  %3278 = vmatmul.f32.vlgmr.msrb.gmra.mxu0 %v6683_v21  ;;  %3298 = vmatmul.f32.vlgmr.msrb.gmra.mxu1 %v6683_v21 }
 0x867   :  { %3318 = vmatmul.f32.vlgmr.msrb.gmra.mxu2 %v6683_v21  ;;  %3338 = vmatmul.f32.vlgmr.msrb.gmra.mxu3 %v6683_v21  ;;  %v6919_v21 = vld [vmem:[#allocation9 + $0x50] sm:$0xff] }
 0x868   :  { %3483 = vmatpush.msra.mxu0 %v6411_v47  ;;  %3503 = vmatpush.msra.mxu1 %v7535_v55 }
 0x869   :  { %3543 = vmatpush.msra.mxu3 %v6419_v38 }
 0x86a   :  { %3484 = vmatpush.msra.mxu0 %v7536_v14  ;;  %3504 = vmatpush.msra.mxu1 %v7537_v24 }
 0x86b   :  { %3544 = vmatpush.msra.mxu3 %v7538_v20 }
 0x86c   :  { %3485 = vmatpush.msra.mxu0 %v6435_v61  ;;  %3505 = vmatpush.msra.mxu1 %v6437_v52 }
 0x86d   :  { %3545 = vmatpush.msra.mxu3 %v6443_v54 }
 0x86e   :  { %3486 = vmatpush.msra.mxu0 %v6447_v44  ;;  %3506 = vmatpush.msra.mxu1 %v6449_v11  ;;  %v7541_v44 = vld [vmem:[#allocation41_spill] sm:$0xff] }
 0x86f   :  { %3546 = vmatpush.msra.mxu3 %v6459_v12  ;;  %v2287_v11 = vadd.f32 %v7541_v44, %v7530_v28 }
 0x870   :  { %3487 = vmatpush.msra.mxu0 %v6463_v42  ;;  %3507 = vmatpush.msra.mxu1 %v6465_v16 }
 0x871   :  { %3547 = vmatpush.msra.mxu3 %v6471_v57 }
 0x872   :  { %3488 = vmatpush.msra.mxu0 %v6475_v48  ;;  %3508 = vmatpush.msra.mxu1 %v6477_v56 }
 0x873   :  { %3548 = vmatpush.msra.mxu3 %v6483_v46 }
 0x874   :  { %3489 = vmatpush.msra.mxu0 %v6487_v36  ;;  %3509 = vmatpush.msra.mxu1 %v6489_v37  ;;  %v7542_v36 = vld [vmem:[#allocation42_spill] sm:$0xff]  ;;  %v7543_v37 = vld [vmem:[#allocation29_spill] sm:$0xff] }
 0x875   :  { %3549 = vmatpush.msra.mxu3 %v7517_v63 }
 0x876   :  { %3490 = vmatpush.msra.mxu0 %v7518_v8  ;;  %3510 = vmatpush.msra.mxu1 %v7519_v23 }
 0x877   :  { %3550 = vmatpush.msra.mxu3 %v7521_v33 }
 0x878   :  { %3491 = vmatpush.msra.mxu0 %v7522_v51  ;;  %3511 = vmatpush.msra.mxu1 %v7523_v10 }
 0x879   :  { %3551 = vmatpush.msra.mxu3 %v6517_v29 }
 0x87a   :  { %3492 = vmatpush.msra.mxu0 %v6521_v18  ;;  %3512 = vmatpush.msra.mxu1 %v6523_v7 }
 0x87b   :  { %3552 = vmatpush.msra.mxu3 %v6529_v6  ;;  %v2246_v6 = vadd.f32 %v7543_v37, %v7542_v36  ;;  %v6811_v37 = vld [vmem:[#allocation9 + $0x178] sm:$0xff] }
 0x87c   :  { %3493 = vmatpush.msra.mxu0 %v6533_v26  ;;  %3513 = vmatpush.msra.mxu1 %v6535_v32 }
 0x87d   :  { %3553 = vmatpush.msra.mxu3 %v6541_v13 }
 0x87e   :  { %3694 = vmatpush.msrb.mxu0 %v6689_v41  ;;  %3714 = vmatpush.msrb.mxu1 %v6691_v3 }
 0x87f   :  { %3754 = vmatpush.msrb.mxu3 %v6693_v17 }
 0x880   :  { %3695 = vmatpush.msrb.mxu0 %v6698_v40  ;;  %3715 = vmatpush.msrb.mxu1 %v6700_v22 }
 0x881   :  { %3755 = vmatpush.msrb.mxu3 %v6702_v62 }
 0x882   :  { %3696 = vmatpush.msrb.mxu0 %v6707_v34  ;;  %3716 = vmatpush.msrb.mxu1 %v6709_v49 }
 0x8e3   :  { %v3279_v47 = vpop.f32.mrf.mxu0  ;;  %v3299_v38 = vpop.f32.mrf.mxu1 }
 0x8e4   :  { %v3342_v60 = vadd.f32 %v3279_v47, %v2164_v39  ;;  %v3343_v61 = vadd.f32 %v3299_v38, %v2205_v43 }
 0x8e6   :  { %v4210_v52 = vmul.f32 -1.442695, %v3342_v60  ;;  %v4211_v54 = vmul.f32 -1.442695, %v3343_v61 }
 0x8e8   :  { %4423 = vpow2.f32 %v4210_v52 }
 0x8e9   :  { %4425 = vpow2.f32 %v4211_v54 }
 0x8ea   :  { %v3339_v12 = vpop.f32.mrf.mxu3  ;;  %v3319_v18 = vpop.f32.mrf.mxu2 }
 0x8eb   :  { %v3345_v42 = vadd.f32 %v3339_v12, %v2287_v11  ;;  %v3344_v26 = vadd.f32 %v3319_v18, %v2246_v6  ;;  %v6782_v11 = vld [vmem:[#allocation9 + $0x1d0] sm:$0xff]  ;;  %v6805_v18 = vld [vmem:[#allocation9 + $0x168] sm:$0xff]  ;;  %v6815_v6 = vld [vmem:[#allocation9 + $0x140] sm:$0xff] }
 0x8ec   :  { %v6785_v12 = vld [vmem:[#allocation9 + $0x1b0] sm:$0xff] }
 0x8ed   :  { %v4212_v16 = vmul.f32 -1.442695, %v3345_v42  ;;  %v6787_v42 = vld [vmem:[#allocation9 + $0x1b8] sm:$0xff] }
 0x8ee   :  { %v4424_v57 = vpop.eup %4423  ;;  %3756 = vmatpush.msrb.mxu3 %v6787_v42 }
 0x8ef   :  { %v4426_v48 = vpop.eup %4425  ;;  %v3349_v56 = vadd.f32 1.0, %v4424_v57  ;;  %4427 = vpow2.f32 %v4212_v16  ;;  %v6791_v16 = vld [vmem:[#allocation9 + $0x180] sm:$0xff]  ;;  %v6793_v57 = vld [vmem:[#allocation9 + $0x188] sm:$0xff] }
 0x8f0   :  { %v3368_v46 = vadd.f32 1.0, %v4426_v48  ;;  %v6795_v48 = vld [vmem:[#allocation9 + $0x190] sm:$0xff]  ;;  %3697 = vmatpush.msrb.mxu0 %v6791_v16  ;;  %3717 = vmatpush.msrb.mxu1 %v6793_v57 }
 0x8f1   :  { %4429 = vrcp.f32 %v3349_v56  ;;  %v3361_v51 = vand.u32 2147483648, %v3349_v56  ;;  %v3359_v15 = vand.u32 2147483647, %v3349_v56  ;;  %vm3355_vm3 = vweird.f32 %v3349_v56 }
 0x8f2   :  { %4431 = vrcp.f32 %v3368_v46  ;;  %v3380_v10 = vand.u32 2147483648, %v3368_v46  ;;  %v3378_v1 = vand.u32 2147483647, %v3368_v46  ;;  %vm3374_vm4 = vweird.f32 %v3368_v46  ;;  %3718 = vmatpush.msrb.mxu1 %v6805_v18 }
 0x8f3   :  { %v3362_v35 = vor.u32 1.1754944e-38, %v3361_v51  ;;  %vm3360_vm7 = vcmp.eq.f32.partialorder %v3359_v15, 8.507059e+37  ;;  %v6841_v51 = vld [vmem:[#allocation9 + $0x108] sm:$0xff]  ;;  %v6851_v15 = vld [vmem:[#allocation9 + $0xe0] sm:$0xff] }
 0x8f4   :  { %v3381_v9 = vor.u32 1.1754944e-38, %v3380_v10  ;;  %vm3379_vm8 = vcmp.eq.f32.partialorder %v3378_v1, 8.507059e+37  ;;  %v6843_v10 = vld [vmem:[#allocation9 + $0x110] sm:$0xff] }
 0x8f5   :  { %v4428_v7 = vpop.eup %4427  ;;  %v6855_v1 = vld [vmem:[#allocation9 + $0xf0] sm:$0xff] }
 0x8f6   :  { %v3388_v13 = vadd.f32 1.0, %v4428_v7  ;;  %v6807_v7 = vld [vmem:[#allocation9 + $0x170] sm:$0xff] }
 0x8f7   :  { %v4430_v29 = vpop.eup %4429 }
 0x8f8   :  { %v4432_v32 = vpop.eup %4431  ;;  %v3351_v63 = vmul.f32 %v4430_v29, %v3349_v56  ;;  %4433 = vrcp.f32 %v3388_v13  ;;  %vm3356_vm1 = vweird.f32 %v4430_v29  ;;  %v3400_v47 = vand.u32 2147483648, %v3388_v13  ;;  %v6799_v56 = vld [vmem:[#allocation9 + $0x198] sm:$0xff] }
 0x8f9   :  { %v3370_v8 = vmul.f32 %v4432_v32, %v3368_v46  ;;  %4435 = vtanh.f32 %v3344_v26  ;;  %vm3375_vm2 = vweird.f32 %v4432_v32  ;;  %vm3357_vm5 = vmor %vm3355_vm3, %vm3356_vm1  ;;  %vm3394_vm10 = vweird.f32 %v3388_v13  ;;  %3757 = vmatpush.msrb.mxu3 %v6799_v56  ;;  %v6803_v46 = vld [vmem:[#allocation9 + $0x160] sm:$0xff]  ;;  %v6823_v26 = vld [vmem:[#allocation9 + $0x158] sm:$0xff] }
 0x8fa   :  { %v3352_v23 = vsub.f32 1.0, %v3351_v63  ;;  %vm3376_vm6 = vmor %vm3374_vm4, %vm3375_vm2  ;;  %v3398_v38 = vand.u32 2147483647, %v3388_v13  ;;  %v3401_v61 = vor.u32 1.1754944e-38, %v3400_v47  ;;  %3698 = vmatpush.msrb.mxu0 %v6803_v46  ;;  %v6829_v63 = vld [vmem:[#allocation9 + $0x128] sm:$0xff] }
 0x8fb   :  { %v3371_v33 = vsub.f32 1.0, %v3370_v8  ;;  %3758 = vmatpush.msrb.mxu3 %v6811_v37  ;;  %v6831_v8 = vld [vmem:[#allocation9 + $0x130] sm:$0xff] }
 0x8fc   :  { %v3353_v50 = vmul.f32 %v4430_v29, %v3352_v23  ;;  %vm3399_vm12 = vcmp.eq.f32.partialorder %v3398_v38, 8.507059e+37  ;;  %3699 = vmatpush.msrb.mxu0 %v6815_v6  ;;  %v6835_v23 = vld [vmem:[#allocation9 + $0x138] sm:$0xff] }
 0x8fd   :  { %v3372_v45 = vmul.f32 %v4432_v32, %v3371_v33  ;;  %3759 = vmatpush.msrb.mxu3 %v6823_v26  ;;  %v6839_v33 = vld [vmem:[#allocation9 + $0x100] sm:$0xff] }
 0x8fe   :  { %v4434_v58 = vpop.eup %4433  ;;  %v3354_v4 = vadd.f32 %v4430_v29, %v3353_v50  ;;  %v6847_v50 = vld [vmem:[#allocation9 + $0x118] sm:$0xff] }
 0x8ff   :  { %v3373_v19 = vadd.f32 %v4432_v32, %v3372_v45  ;;  %v3390_v25 = vmul.f32 %v4434_v58, %v3388_v13  ;;  %v4436_v27 = vpop.eup %4435  ;;  %vm3395_vm9 = vweird.f32 %v4434_v58  ;;  %v6817_v13 = vld [vmem:[#allocation9 + $0x148] sm:$0xff]  ;;  %3760 = vmatpush.msrb.mxu3 %v6835_v23 }
 0x900   :  { %v3358_v31 = vsel %vm3357_vm5, %v4430_v29, %v3354_v4  ;;  %vm3396_vm11 = vmor %vm3394_vm10, %vm3395_vm9  ;;  %v6819_v29 = vld [vmem:[#allocation9 + $0x150] sm:$0xff]  ;;  %3719 = vmatpush.msrb.mxu1 %v6817_v13  ;;  %v6853_v45 = vld [vmem:[#allocation9 + $0xe8] sm:$0xff] }
 0x901   :  { %v3363_v59 = vsel %vm3360_vm7, %v3362_v35, %v3358_v31  ;;  %v3377_v55 = vsel %vm3376_vm6, %v4432_v32, %v3373_v19  ;;  %v3391_v14 = vsub.f32 1.0, %v3390_v25  ;;  %v6827_v32 = vld [vmem:[#allocation9 + $0x120] sm:$0xff]  ;;  %3761 = vmatpush.msrb.mxu3 %v6847_v50  ;;  %v7546_v35 = vld [vmem:[#allocation14_spill] sm:$0xff]  ;;  %v6863_v25 = vld [vmem:[#allocation9 + $0xf8] sm:$0xff] }
 0x902   :  { %v3382_v24 = vsel %vm3379_vm8, %v3381_v9, %v3377_v55  ;;  %v3405_v20 = vmul.f32 %v4436_v27, %v3363_v59  ;;  %3700 = vmatpush.msrb.mxu0 %v6827_v32  ;;  %3720 = vmatpush.msrb.mxu1 %v6829_v63  ;;  %v2208_v19 = vadd.f32 %v7546_v35, %v7528_v30  ;;  %v6867_v27 = vld [vmem:[#allocation9 + $0xc0] sm:$0xff]  ;;  %v6869_v59 = vld [vmem:[#allocation9 + $0xc8] sm:$0xff]  ;;  %v6871_v55 = vld [vmem:[#allocation9 + $0xd0] sm:$0xff] }
 0x903   :  { %v3404_v2 = vmul.f32 %v3382_v24, %v6680_v53  ;;  %v3392_v39 = vmul.f32 %v4434_v58, %v3391_v14  ;;  %v6779_v53 = vld [vmem:[#allocation9 + $0x1f0] sm:$0xff]  ;;  %3762 = vmatpush.msrb.mxu3 %v6863_v25  ;;  %v6903_v35 = vld [vmem:[#allocation9 + $0x68] sm:$0xff] }
 0x904   :  { %3734 = vmatpush.msrb.mxu2 %v6779_v53  ;;  %3701 = vmatpush.msrb.mxu0 %v6839_v33  ;;  %7549 = vst [vmem:[#allocation23_spill] sm:$0xff] %v6903_v35  ;;  %v6927_v30 = vld [vmem:[#allocation9 + $0x28] sm:$0xff] }
 0x905   :  { %v6770_v0 = vadd.f32 %v3405_v20, %v3404_v2  ;;  %v3393_v43 = vadd.f32 %v4434_v58, %v3392_v39  ;;  %3721 = vmatpush.msrb.mxu1 %v6841_v51  ;;  %v6875_v20 = vld [vmem:[#allocation9 + $0xd8] sm:$0xff]  ;;  %v6879_v2 = vld [vmem:[#allocation9 + $0xa0] sm:$0xff]  ;;  %v6881_v39 = vld [vmem:[#allocation9 + $0xa8] sm:$0xff] }
 0x906   :  { %3735 = vmatpush.msrb.mxu2 %v6782_v11  ;;  %3702 = vmatpush.msrb.mxu0 %v6851_v15 }
 0x907   :  { %4437 = vtanh.f32 %v6770_v0  ;;  %v3397_v60 = vsel %vm3396_vm11, %v4434_v58, %v3393_v43  ;;  %v7545_v58 = vld [vmem:[#allocation28_spill] sm:$0xff]  ;;  %3722 = vmatpush.msrb.mxu1 %v6853_v45  ;;  %3763 = vmatpush.msrb.mxu3 %v6875_v20  ;;  %v6883_v43 = vld [vmem:[#allocation9 + $0xb0] sm:$0xff] }
 0x908   :  { %v3402_v54 = vsel %vm3399_vm12, %v3401_v61, %v3397_v60  ;;  %3736 = vmatpush.msrb.mxu2 %v6785_v12  ;;  %v2167_v4 = vadd.f32 %v7545_v58, %v7526_v5  ;;  %3703 = vmatpush.msrb.mxu0 %v6867_v27  ;;  %v6887_v60 = vld [vmem:[#allocation9 + $0xb8] sm:$0xff]  ;;  %v6891_v61 = vld [vmem:[#allocation9 + $0x80] sm:$0xff]  ;;  %v6931_v5 = vld [vmem:[#allocation9 + $0x30] sm:$0xff] }
 0x909   :  { %3723 = vmatpush.msrb.mxu1 %v6869_v59  ;;  %3764 = vmatpush.msrb.mxu3 %v6887_v60  ;;  %v6899_v58 = vld [vmem:[#allocation9 + $0x98] sm:$0xff] }
 0x90a   :  { %3737 = vmatpush.msrb.mxu2 %v6795_v48  ;;  %3704 = vmatpush.msrb.mxu0 %v6879_v2  ;;  %7547 = vst [vmem:[#allocation53_spill] sm:$0xff] %v6899_v58 }
 0x90b   :  { %3724 = vmatpush.msrb.mxu1 %v6881_v39  ;;  %3765 = vmatpush.msrb.mxu3 %v6899_v58 }
 0x90c   :  { %3738 = vmatpush.msrb.mxu2 %v6807_v7  ;;  %3705 = vmatpush.msrb.mxu0 %v6891_v61 }
 0x90d   :  { %v4438_v52 = vpop.eup %4437 }
 0x90e   :  { %v6773_v44 = vmul.f32 %v4438_v52, %v3402_v54  ;;  %3739 = vmatpush.msrb.mxu2 %v6819_v29  ;;  %v6893_v52 = vld [vmem:[#allocation9 + $0x88] sm:$0xff]  ;;  %v6895_v54 = vld [vmem:[#allocation9 + $0x90] sm:$0xff] }
 0x90f   :  { %3725 = vmatpush.msrb.mxu1 %v6893_v52 }
 0x910   :  { %7544 = vst [vmem:[#allocation20_spill] sm:$0xff] %v6773_v44  ;;  %3494 = vmatmul.f32.vlgmr.msra.gmra.mxu0 %v6773_v44  ;;  %3514 = vmatmul.f32.vlgmr.msra.gmra.mxu1 %v6773_v44 }
 0x911   :  { %3534 = vmatmul.f32.vlgmr.msra.gmra.mxu2 %v6773_v44  ;;  %3554 = vmatmul.f32.vlgmr.msra.gmra.mxu3 %v6773_v44  ;;  %v6917_v44 = vld [vmem:[#allocation9 + $0x48] sm:$0xff] }
 0x912   :  { %3740 = vmatpush.msrb.mxu2 %v6831_v8  ;;  %3726 = vmatpush.msrb.mxu1 %v6903_v35  ;;  %7554 = vst [vmem:[#allocation19_spill] sm:$0xff] %v6917_v44  ;;  %v6933_v35 = vld [vmem:[#allocation9 + $0x38] sm:$0xff] }
 0x914   :  { %3741 = vmatpush.msrb.mxu2 %v6843_v10  ;;  %3727 = vmatpush.msrb.mxu1 %v6917_v44  ;;  %v6945_v44 = vld [vmem:[#allocation9 + $0x18] sm:$0xff] }
 0x916   :  { %3742 = vmatpush.msrb.mxu2 %v6855_v1  ;;  %3728 = vmatpush.msrb.mxu1 %v6927_v30 }
 0x918   :  { %3743 = vmatpush.msrb.mxu2 %v6871_v55 }
 0x91a   :  { %3744 = vmatpush.msrb.mxu2 %v6883_v43 }
 0x91c   :  { %3745 = vmatpush.msrb.mxu2 %v6895_v54 }
 0x98d   :  { %v3495_v9 = vpop.f32.mrf.mxu0  ;;  %v3515_v31 = vpop.f32.mrf.mxu1 }
 0x98e   :  { %v3558_v14 = vadd.f32 %v3495_v9, %v2167_v4  ;;  %v3559_v24 = vadd.f32 %v3515_v31, %v2208_v19  ;;  %v6901_v4 = vld [vmem:[#allocation9 + $0x60] sm:$0xff]  ;;  %v6909_v31 = vld [vmem:[#allocation9 + $0x70] sm:$0xff] }
 0x98f   :  { %7548 = vst [vmem:[#allocation16_spill] sm:$0xff] %v6901_v4  ;;  %v7550_v19 = vld [vmem:[#allocation24_spill] sm:$0xff]  ;;  %3706 = vmatpush.msrb.mxu0 %v6901_v4  ;;  %3746 = vmatpush.msrb.mxu2 %v6909_v31 }
 0x990   :  { %v4213_v47 = vmul.f32 -1.442695, %v3558_v14  ;;  %v4214_v38 = vmul.f32 -1.442695, %v3559_v24  ;;  %v2290_v9 = vadd.f32 %v7550_v19, %v7530_v28  ;;  %7551 = vst [vmem:[#allocation34_spill] sm:$0xff] %v6909_v31  ;;  %v6911_v14 = vld [vmem:[#allocation9 + $0x78] sm:$0xff] }
 0x991   :  { %7552 = vst [vmem:[#allocation26_spill] sm:$0xff] %v6911_v14  ;;  %v6913_v24 = vld [vmem:[#allocation9 + $0x40] sm:$0xff]  ;;  %3766 = vmatpush.msrb.mxu3 %v6911_v14  ;;  %3747 = vmatpush.msrb.mxu2 %v6919_v21 }
 0x992   :  { %4439 = vpow2.f32 %v4213_v47  ;;  %7553 = vst [vmem:[#allocation12_spill] sm:$0xff] %v6913_v24  ;;  %v6925_v28 = vld [vmem:[#allocation9 + $0x20] sm:$0xff]  ;;  %3707 = vmatpush.msrb.mxu0 %v6913_v24  ;;  %v6943_v24 = vld [vmem:[#allocation9 + $0x10] sm:$0xff] }
 0x993   :  { %4441 = vpow2.f32 %v4214_v38  ;;  %v6921_v38 = vld [vmem:[#allocation9 + $0x58] sm:$0xff]  ;;  %7555 = vst [vmem:[#allocation18_spill] sm:$0xff] %v6943_v24  ;;  %3748 = vmatpush.msrb.mxu2 %v6931_v5 }
 0x994   :  { %v3555_v47 = vpop.f32.mrf.mxu3  ;;  %3767 = vmatpush.msrb.mxu3 %v6921_v38  ;;  %3708 = vmatpush.msrb.mxu0 %v6925_v28 }
 0x995   :  { %v3561_v19 = vadd.f32 %v3555_v47, %v2290_v9  ;;  %v6937_v9 = vld [vmem:[#allocation9] sm:$0xff]  ;;  %v6939_v47 = vld [vmem:[#allocation9 + $0x8] sm:$0xff]  ;;  %3749 = vmatpush.msrb.mxu2 %v6943_v24 }
 0x996   :  { %3768 = vmatpush.msrb.mxu3 %v6933_v35  ;;  %3709 = vmatpush.msrb.mxu0 %v6937_v9 }
 0x997   :  { %v4215_v4 = vmul.f32 -1.442695, %v3561_v19  ;;  %3729 = vmatpush.msrb.mxu1 %v6939_v47  ;;  %3950 = vmatpush.msra.mxu2 %v6779_v53 }
 0x998   :  { %v4440_v14 = vpop.eup %4439  ;;  %3769 = vmatpush.msrb.mxu3 %v6945_v44  ;;  %3910 = vmatpush.msra.mxu0 %v6689_v41 }
 0x999   :  { %v4442_v31 = vpop.eup %4441  ;;  %v6947_v58 = vadd.f32 1.0, %v4440_v14  ;;  %4443 = vpow2.f32 %v4215_v4  ;;  %3930 = vmatpush.msra.mxu1 %v6691_v3  ;;  %v3535_v4 = vpop.f32.mrf.mxu2  ;;  %v7556_v14 = vld [vmem:[#allocation22_spill] sm:$0xff]  ;;  %3951 = vmatpush.msra.mxu2 %v6782_v11 }
 0x99a   :  { %v6951_v19 = vadd.f32 1.0, %v4442_v31  ;;  %3970 = vmatpush.msra.mxu3 %v6693_v17  ;;  %3911 = vmatpush.msra.mxu0 %v6698_v40  ;;  %v2249_v24 = vadd.f32 %v7556_v14, %v7542_v36  ;;  %v4075_v14 = vld [vmem:[%s7183_s7 + $0x48] sm:$0xff] }
 0x99b   :  { %4445 = vrcp.f32 %v6947_v58  ;;  %3931 = vmatpush.msra.mxu1 %v6700_v22  ;;  %3952 = vmatpush.msra.mxu2 %v6785_v12  ;;  %v3577_v53 = vand.u32 2147483648, %v6947_v58  ;;  %vm3571_vm15 = vweird.f32 %v6947_v58 }
 0x99c   :  { %4447 = vrcp.f32 %v6951_v19  ;;  %3971 = vmatpush.msra.mxu3 %v6702_v62  ;;  %3912 = vmatpush.msra.mxu0 %v6707_v34  ;;  %v3560_v17 = vadd.f32 %v3535_v4, %v2249_v24  ;;  %v3596_v11 = vand.u32 2147483648, %v6951_v19  ;;  %vm3590_vm0 = vweird.f32 %v6951_v19  ;;  %v7568_v24 = vld [vmem:[#allocation31_spill] sm:$0xff] }
 0x99d   :  { %3932 = vmatpush.msra.mxu1 %v6709_v49  ;;  %3953 = vmatpush.msra.mxu2 %v6795_v48 }
 0x99e   :  { %3972 = vmatpush.msra.mxu3 %v6787_v42  ;;  %3913 = vmatpush.msra.mxu0 %v6791_v16  ;;  %v3575_v42 = vand.u32 2147483647, %v6947_v58 }
 0x99f   :  { %v4444_v31 = vpop.eup %4443  ;;  %3933 = vmatpush.msra.mxu1 %v6793_v57  ;;  %3954 = vmatpush.msra.mxu2 %v6807_v7  ;;  %v3594_v57 = vand.u32 2147483647, %v6951_v19 }
 0x9a0   :  { %v6969_v41 = vadd.f32 1.0, %v4444_v31  ;;  %3973 = vmatpush.msra.mxu3 %v6799_v56  ;;  %3914 = vmatpush.msra.mxu0 %v6803_v46  ;;  %v3578_v46 = vor.u32 1.1754944e-38, %v3577_v53  ;;  %vm3576_vm3 = vcmp.eq.f32.partialorder %v3575_v42, 8.507059e+37 }
 0x9a1   :  { %v4446_v3 = vpop.eup %4445  ;;  %3934 = vmatpush.msra.mxu1 %v6805_v18  ;;  %3955 = vmatpush.msra.mxu2 %v6819_v29  ;;  %vm3595_vm4 = vcmp.eq.f32.partialorder %v3594_v57, 8.507059e+37 }
 0x9a2   :  { %v4448_v40 = vpop.eup %4447  ;;  %v3567_v22 = vmul.f32 %v4446_v3, %v6947_v58  ;;  %4449 = vrcp.f32 %v6969_v41  ;;  %3974 = vmatpush.msra.mxu3 %v6811_v37  ;;  %vm3572_vm13 = vweird.f32 %v4446_v3  ;;  %3915 = vmatpush.msra.mxu0 %v6815_v6  ;;  %v3597_v37 = vor.u32 1.1754944e-38, %v3596_v11 }
 0x9a3   :  { %v3586_v62 = vmul.f32 %v4448_v40, %v6951_v19  ;;  %4451 = vtanh.f32 %v3560_v17  ;;  %3935 = vmatpush.msra.mxu1 %v6817_v13  ;;  %vm3591_vm14 = vweird.f32 %v4448_v40  ;;  %vm3573_vm1 = vmor %vm3571_vm15, %vm3572_vm13  ;;  %3956 = vmatpush.msra.mxu2 %v6831_v8  ;;  %vm3610_vm6 = vweird.f32 %v6969_v41  ;;  %v4076_v19 = vld [vmem:[%s7183_s7 + $0x50] sm:$0xff]  ;;  %v4074_v17 = vld [vmem:[%s7183_s7 + $0x40] sm:$0xff] }
 0x9a4   :  { %v3568_v34 = vsub.f32 1.0, %v3567_v22  ;;  %3975 = vmatpush.msra.mxu3 %v6823_v26  ;;  %3916 = vmatpush.msra.mxu0 %v6827_v32  ;;  %vm3592_vm2 = vmor %vm3590_vm0, %vm3591_vm14  ;;  %v7569_v22 = vld [vmem:[#allocation32_spill] sm:$0xff] }
 0x9a5   :  { %v3587_v49 = vsub.f32 1.0, %v3586_v62  ;;  %3936 = vmatpush.msra.mxu1 %v6829_v63  ;;  %3957 = vmatpush.msra.mxu2 %v6843_v10  ;;  %v3616_v10 = vand.u32 2147483648, %v6969_v41  ;;  %v7570_v62 = vld [vmem:[#allocation35_spill] sm:$0xff] }
 0x9a6   :  { %v3569_v12 = vmul.f32 %v4446_v3, %v3568_v34  ;;  %3976 = vmatpush.msra.mxu3 %v6835_v23  ;;  %3917 = vmatpush.msra.mxu0 %v6839_v33  ;;  %v2293_v34 = vadd.f32 %v7570_v62, %v7569_v22  ;;  %v7573_v62 = vld [vmem:[#allocation36_spill] sm:$0xff] }
 0x9a7   :  { %v3588_v16 = vmul.f32 %v4448_v40, %v3587_v49  ;;  %3937 = vmatpush.msra.mxu1 %v6841_v51  ;;  %3958 = vmatpush.msra.mxu2 %v6855_v1  ;;  %v7558_v1 = vld [vmem:[#allocation16_spill] sm:$0xff]  ;;  %v4072_v49 = vld [vmem:[%s7183_s7 + $0x30] sm:$0xff] }
 0x9a8   :  { %v6994_v48 = vpop.eup %4449  ;;  %v3570_v56 = vadd.f32 %v4446_v3, %v3569_v12  ;;  %3977 = vmatpush.msra.mxu3 %v6847_v50  ;;  %3918 = vmatpush.msra.mxu0 %v6851_v15  ;;  %v3614_v50 = vand.u32 2147483647, %v6969_v41  ;;  %v7557_v15 = vld [vmem:[#allocation53_spill] sm:$0xff] }
 0x9a9   :  { %v3589_v18 = vadd.f32 %v4448_v40, %v3588_v16  ;;  %v3606_v7 = vmul.f32 %v6994_v48, %v6969_v41  ;;  %v4452_v13 = vpop.eup %4451  ;;  %3938 = vmatpush.msra.mxu1 %v6853_v45  ;;  %3959 = vmatpush.msra.mxu2 %v6871_v55  ;;  %vm3611_vm5 = vweird.f32 %v6994_v48  ;;  %v7561_v55 = vld [vmem:[#allocation26_spill] sm:$0xff]  ;;  %v4071_v12 = vld [vmem:[%s7183_s7 + $0x28] sm:$0xff]  ;;  %v4070_v16 = vld [vmem:[%s7183_s7 + $0x20] sm:$0xff] }
 0x9aa   :  { %v3574_v6 = vsel %vm3573_vm1, %v4446_v3, %v3570_v56  ;;  %3978 = vmatpush.msra.mxu3 %v6863_v25  ;;  %3919 = vmatpush.msra.mxu0 %v6867_v27  ;;  %vm3612_vm7 = vmor %vm3610_vm6, %vm3611_vm5  ;;  %v7559_v25 = vld [vmem:[#allocation23_spill] sm:$0xff]  ;;  %v3617_v27 = vor.u32 1.1754944e-38, %v3616_v10  ;;  %vm3615_vm8 = vcmp.eq.f32.partialorder %v3614_v50, 8.507059e+37  ;;  %vm4127_vm5 = vcmask 7168  }
 0x9ab   :  { %v3579_v29 = vsel %vm3576_vm3, %v3578_v46, %v3574_v6  ;;  %v3593_v26 = vsel %vm3592_vm2, %v4448_v40, %v3589_v18  ;;  %v3607_v32 = vsub.f32 1.0, %v3606_v7  ;;  %3939 = vmatpush.msra.mxu1 %v6869_v59  ;;  %3960 = vmatpush.msra.mxu2 %v6883_v43  ;;  %v7560_v59 = vld [vmem:[#allocation34_spill] sm:$0xff] }
 0x9ac   :  { %v3598_v63 = vsel %vm3595_vm4, %v3597_v37, %v3593_v26  ;;  %v3621_v8 = vmul.f32 %v4452_v13, %v3579_v29  ;;  %3979 = vmatpush.msra.mxu3 %v6875_v20  ;;  %3920 = vmatpush.msra.mxu0 %v6879_v2  ;;  %v7562_v20 = vld [vmem:[#allocation12_spill] sm:$0xff]  ;;  %v7563_v2 = vld [vmem:[#allocation19_spill] sm:$0xff]  ;;  %v4068_v7 = vld [vmem:[%s7183_s7 + $0x10] sm:$0xff] }
 0x9ad   :  { %v3620_v23 = vmul.f32 %v3598_v63, %v6770_v0  ;;  %v3608_v33 = vmul.f32 %v6994_v48, %v3607_v32  ;;  %3940 = vmatpush.msra.mxu1 %v6881_v39  ;;  %3961 = vmatpush.msra.mxu2 %v6895_v54  ;;  %v7566_v54 = vld [vmem:[#allocation33_spill] sm:$0xff]  ;;  %v4073_v40 = vld [vmem:[%s7183_s7 + $0x38] sm:$0xff]  ;;  %v4066_v32 = vld [vmem:[%s7183_s7] sm:$0xff] }
 0x9ae   :  { %3980 = vmatpush.msra.mxu3 %v6887_v60  ;;  %3921 = vmatpush.msra.mxu0 %v6891_v61  ;;  %v4078_v61 = vld [vmem:[%s7183_s7 + $0x60] sm:$0xff]  ;;  %v4069_v18 = vld [vmem:[%s7183_s7 + $0x18] sm:$0xff]  ;;  %v4067_v37 = vld [vmem:[%s7183_s7 + $0x8] sm:$0xff] }
 0x9af   :  { %v7018_v51 = vadd.f32 %v3621_v8, %v3620_v23  ;;  %v3609_v0 = vadd.f32 %v6994_v48, %v3608_v33  ;;  %3941 = vmatpush.msra.mxu1 %v6893_v52  ;;  %3962 = vmatpush.msra.mxu2 %v7560_v59  ;;  %v7565_v52 = vld [vmem:[#allocation49_spill] sm:$0xff]  ;;  %v7571_v29 = vld [vmem:[#allocation15_spill] sm:$0xff] }
 0x9b0   :  { %3981 = vmatpush.msra.mxu3 %v7557_v15  ;;  %3922 = vmatpush.msra.mxu0 %v7558_v1  ;;  %v2170_v58 = vadd.f32 %v7566_v54, %v7565_v52  ;;  %v2252_v26 = vadd.f32 %v7571_v29, %v7542_v36 }
 0x9b1   :  { %4453 = vtanh.f32 %v7018_v51  ;;  %v3613_v45 = vsel %vm3612_vm7, %v6994_v48, %v3609_v0  ;;  %3942 = vmatpush.msra.mxu1 %v7559_v25  ;;  %3963 = vmatpush.msra.mxu2 %v6919_v21  ;;  %v7564_v21 = vld [vmem:[#allocation18_spill] sm:$0xff] }
 0x9b2   :  { %3982 = vmatpush.msra.mxu3 %v7561_v55  ;;  %3923 = vmatpush.msra.mxu0 %v7562_v20  ;;  %v3618_v43 = vsel %vm3615_vm8, %v3617_v27, %v3613_v45 }
 0x9b3   :  { %3943 = vmatpush.msra.mxu1 %v7563_v2  ;;  %3964 = vmatpush.msra.mxu2 %v6931_v5  ;;  %v4081_v5 = vld [vmem:[%s7183_s7 + $0x78] sm:$0xff] }
 0x9b4   :  { %3983 = vmatpush.msra.mxu3 %v6921_v38  ;;  %3924 = vmatpush.msra.mxu0 %v6925_v28  ;;  %v4079_v28 = vld [vmem:[%s7183_s7 + $0x68] sm:$0xff] }
 0x9b5   :  { %3944 = vmatpush.msra.mxu1 %v6927_v30  ;;  %3965 = vmatpush.msra.mxu2 %v7564_v21  ;;  %v4080_v30 = vld [vmem:[%s7183_s7 + $0x70] sm:$0xff] }
 0x9b6   :  { %3984 = vmatpush.msra.mxu3 %v6933_v35  ;;  %3925 = vmatpush.msra.mxu0 %v6937_v9  ;;  %v7567_v35 = vld [vmem:[#allocation51_spill] sm:$0xff] }
 0x9b7   :  { %v4454_v39 = vpop.eup %4453  ;;  %3945 = vmatpush.msra.mxu1 %v6939_v47  ;;  %v2211_v38 = vadd.f32 %v7568_v24, %v7567_v35 }
 0x9b8   :  { %v7045_v60 = vmul.f32 %v4454_v39, %v3618_v43  ;;  %3985 = vmatpush.msra.mxu3 %v6945_v44  ;;  %v4077_v44 = vld [vmem:[%s7183_s7 + $0x58] sm:$0xff] }
 0x9ba   :  { %3710 = vmatmul.f32.vlgmr.msrb.gmra.mxu0 %v7045_v60  ;;  %3730 = vmatmul.f32.vlgmr.msrb.gmra.mxu1 %v7045_v60 }
 0x9bb   :  { %3750 = vmatmul.f32.vlgmr.msrb.gmra.mxu2 %v7045_v60  ;;  %3770 = vmatmul.f32.vlgmr.msrb.gmra.mxu3 %v7045_v60 }
 0x9bc   :  { %4086 = vmatpush.msrb.mxu0 %v4081_v5 }
 0x9be   :  { %4087 = vmatpush.msrb.mxu0 %v4080_v30 }
 0x9c0   :  { %4088 = vmatpush.msrb.mxu0 %v4079_v28 }
 0x9c2   :  { %4089 = vmatpush.msrb.mxu0 %v4078_v61 }
 0x9c4   :  { %4090 = vmatpush.msrb.mxu0 %v4077_v44 }
 0x9c6   :  { %4091 = vmatpush.msrb.mxu0 %v4076_v19 }
 0x9c8   :  { %4092 = vmatpush.msrb.mxu0 %v4075_v14 }
 0x9ca   :  { %4093 = vmatpush.msrb.mxu0 %v4074_v17 }
 0x9cc   :  { %4094 = vmatpush.msrb.mxu0 %v4073_v40 }
 0x9ce   :  { %4095 = vmatpush.msrb.mxu0 %v4072_v49  ;;  %v7575_v49 = vld [vmem:[#allocation21_spill] sm:$0xff] }
 0x9d0   :  { %4096 = vmatpush.msrb.mxu0 %v4071_v12 }
 0x9d2   :  { %4097 = vmatpush.msrb.mxu0 %v4070_v16 }
 0x9d4   :  { %4098 = vmatpush.msrb.mxu0 %v4069_v18 }
 0x9d6   :  { %4099 = vmatpush.msrb.mxu0 %v4068_v7 }
 0x9d8   :  { %4100 = vmatpush.msrb.mxu0 %v4067_v37  ;;  %v7129_v37 = vld [vmem:[#allocation4] ss:$0 sm:$0xff] }
 0x9da   :  { %4101 = vmatpush.msrb.mxu0 %v4066_v32 }
 0xa37   :  { %v3711_v9 = vpop.f32.mrf.mxu0  ;;  %v3731_v47 = vpop.f32.mrf.mxu1 }
 0xa38   :  { %v3774_v4 = vadd.f32 %v3711_v9, %v2170_v58  ;;  %v3775_v31 = vadd.f32 %v3731_v47, %v2211_v38 }
 0xa3a   :  { %v4216_v41 = vmul.f32 -1.442695, %v3774_v4  ;;  %v4217_v3 = vmul.f32 -1.442695, %v3775_v31 }
 0xa3c   :  { %4455 = vpow2.f32 %v4216_v41 }
 0xa3d   :  { %4457 = vpow2.f32 %v4217_v3 }
 0xa3e   :  { %v3771_v53 = vpop.f32.mrf.mxu3  ;;  %v3751_v6 = vpop.f32.mrf.mxu2 }
 0xa3f   :  { %v3777_v11 = vadd.f32 %v3771_v53, %v2293_v34  ;;  %v3776_v23 = vadd.f32 %v3751_v6, %v2252_v26  ;;  %v7574_v34 = vld [vmem:[#allocation13_spill] sm:$0xff]  ;;  %v7576_v53 = vld [vmem:[#allocation20_spill] sm:$0xff]  ;;  %v7579_v6 = vld [vmem:[#allocation27_spill] sm:$0xff] }
 0xa41   :  { %v4218_v42 = vmul.f32 -1.442695, %v3777_v11  ;;  %v7577_v11 = vld [vmem:[#allocation38_spill] sm:$0xff] }
 0xa42   :  { %v4456_v57 = vpop.eup %4455  ;;  %v2173_v12 = vadd.f32 %v7577_v11, %v7565_v52 }
 0xa43   :  { %v4458_v48 = vpop.eup %4457  ;;  %v3781_v56 = vadd.f32 1.0, %v4456_v57  ;;  %4459 = vpow2.f32 %v4218_v42  ;;  %v7578_v42 = vld [vmem:[#allocation48_spill] sm:$0xff] }
 0xa44   :  { %v3800_v46 = vadd.f32 1.0, %v4458_v48  ;;  %v2214_v16 = vadd.f32 %v7578_v42, %v7567_v35 }
 0xa45   :  { %4461 = vrcp.f32 %v3781_v56  ;;  %v3793_v45 = vand.u32 2147483648, %v3781_v56  ;;  %v3791_v27 = vand.u32 2147483647, %v3781_v56  ;;  %vm3787_vm11 = vweird.f32 %v3781_v56 }
 0xa46   :  { %4463 = vrcp.f32 %v3800_v46  ;;  %v3812_v1 = vand.u32 2147483648, %v3800_v46  ;;  %v3810_v55 = vand.u32 2147483647, %v3800_v46  ;;  %vm3806_vm12 = vweird.f32 %v3800_v46 }
 0xa47   :  { %v3794_v39 = vor.u32 1.1754944e-38, %v3793_v45  ;;  %vm3792_vm15 = vcmp.eq.f32.partialorder %v3791_v27, 8.507059e+37 }
 0xa48   :  { %v3813_v5 = vor.u32 1.1754944e-38, %v3812_v1  ;;  %vm3811_vm0 = vcmp.eq.f32.partialorder %v3810_v55, 8.507059e+37 }
 0xa49   :  { %v4460_v13 = vpop.eup %4459 }
 0xa4a   :  { %v3820_v63 = vadd.f32 1.0, %v4460_v13  ;;  %v2296_v13 = vadd.f32 %v7579_v6, %v7569_v22 }
 0xa4b   :  { %v4462_v8 = vpop.eup %4461 }
 0xa4c   :  { %v4464_v33 = vpop.eup %4463  ;;  %v3783_v0 = vmul.f32 %v4462_v8, %v3781_v56  ;;  %4465 = vrcp.f32 %v3820_v63  ;;  %vm3788_vm9 = vweird.f32 %v4462_v8  ;;  %v3832_v4 = vand.u32 2147483648, %v3820_v63 }
 0xa4d   :  { %v3802_v10 = vmul.f32 %v4464_v33, %v3800_v46  ;;  %4467 = vtanh.f32 %v3776_v23  ;;  %vm3807_vm10 = vweird.f32 %v4464_v33  ;;  %vm3789_vm13 = vmor %vm3787_vm11, %vm3788_vm9  ;;  %vm3826_vm2 = vweird.f32 %v3820_v63 }
 0xa4e   :  { %v3784_v50 = vsub.f32 1.0, %v3783_v0  ;;  %vm3808_vm14 = vmor %vm3806_vm12, %vm3807_vm10  ;;  %v3830_v31 = vand.u32 2147483647, %v3820_v63  ;;  %v3833_v41 = vor.u32 1.1754944e-38, %v3832_v4 }
 0xa4f   :  { %v3803_v15 = vsub.f32 1.0, %v3802_v10 }
 0xa50   :  { %v3785_v25 = vmul.f32 %v4462_v8, %v3784_v50  ;;  %vm3831_vm4 = vcmp.eq.f32.partialorder %v3830_v31, 8.507059e+37  ;;  %v7580_v50 = vld [vmem:[#allocation25_spill] sm:$0xff] }
 0xa51   :  { %v3804_v59 = vmul.f32 %v4464_v33, %v3803_v15  ;;  %v2255_v15 = vadd.f32 %v7580_v50, %v7542_v36 }
 0xa52   :  { %v4466_v20 = vpop.eup %4465  ;;  %v3786_v2 = vadd.f32 %v4462_v8, %v3785_v25 }
 0xa53   :  { %v3805_v43 = vadd.f32 %v4464_v33, %v3804_v59  ;;  %v3822_v21 = vmul.f32 %v4466_v20, %v3820_v63  ;;  %v4468_v28 = vpop.eup %4467  ;;  %vm3827_vm1 = vweird.f32 %v4466_v20 }
 0xa54   :  { %v3790_v30 = vsel %vm3789_vm13, %v4462_v8, %v3786_v2  ;;  %vm3828_vm3 = vmor %vm3826_vm2, %vm3827_vm1 }
 0xa55   :  { %v3795_v61 = vsel %vm3792_vm15, %v3794_v39, %v3790_v30  ;;  %v3809_v44 = vsel %vm3808_vm14, %v4464_v33, %v3805_v43  ;;  %v3823_v54 = vsub.f32 1.0, %v3822_v21 }
 0xa56   :  { %v3814_v58 = vsel %vm3811_vm0, %v3813_v5, %v3809_v44  ;;  %v3837_v24 = vmul.f32 %v4468_v28, %v3795_v61 }
 0xa57   :  { %v3836_v38 = vmul.f32 %v3814_v58, %v7018_v51  ;;  %v3824_v9 = vmul.f32 %v4466_v20, %v3823_v54  ;;  %v7572_v51 = vld [vmem:[#allocation43_spill] sm:$0xff] }
 0xa59   :  { %v7116_v47 = vadd.f32 %v3837_v24, %v3836_v38  ;;  %v3825_v19 = vadd.f32 %v4466_v20, %v3824_v9 }
 0xa5b   :  { %4469 = vtanh.f32 %v7116_v47  ;;  %v3829_v14 = vsel %vm3828_vm3, %v4466_v20, %v3825_v19 }
 0xa5c   :  { %v3834_v17 = vsel %vm3831_vm4, %v3833_v41, %v3829_v14 }
 0xa61   :  { %v4470_v3 = vpop.eup %4469 }
 0xa62   :  { %v3840_v40 = vmul.f32 %v4470_v3, %v3834_v17 }
 0xa64   :  { %3926 = vmatmul.f32.vlgmr.msra.gmra.mxu0 %v3840_v40  ;;  %3946 = vmatmul.f32.vlgmr.msra.gmra.mxu1 %v3840_v40 }
 0xa65   :  { %3966 = vmatmul.f32.vlgmr.msra.gmra.mxu2 %v3840_v40  ;;  %3986 = vmatmul.f32.vlgmr.msra.gmra.mxu3 %v3840_v40 }
 0xa6c   :  { %4102 = vmatmul.f32.vlgmr.msrb.gmra.mxu0 %v7572_v51 }
 0xa74   :  { %4105 = vmatmul.f32.gmra.mxu0 %v7573_v62 }
 0xa7c   :  { %4108 = vmatmul.f32.gmra.mxu0 %v7574_v34 }
 0xa84   :  { %4111 = vmatmul.f32.gmra.mxu0 %v7575_v49 }
 0xa8c   :  { %4114 = vmatmul.f32.gmra.mxu0 %v7576_v53 }
 0xa94   :  { %4117 = vmatmul.f32.gmra.mxu0 %v7045_v60 }
 0xa9c   :  { %4120 = vmatmul.f32.gmra.mxu0 %v3840_v40 }
 0xae1   :  { %v3927_v57 = vpop.f32.mrf.mxu0  ;;  %v3947_v48 = vpop.f32.mrf.mxu1 }
 0xae2   :  { %v3990_v56 = vadd.f32 %v3927_v57, %v2173_v12  ;;  %v3991_v46 = vadd.f32 %v3947_v48, %v2214_v16 }
 0xae4   :  { %v4219_v18 = vmul.f32 -1.442695, %v3990_v56  ;;  %v4220_v7 = vmul.f32 -1.442695, %v3991_v46 }
 0xae6   :  { %4471 = vpow2.f32 %v4219_v18 }
 0xae7   :  { %4473 = vpow2.f32 %v4220_v7 }
 0xae8   :  { %v3987_v60 = vpop.f32.mrf.mxu3  ;;  %v3967_v33 = vpop.f32.mrf.mxu2 }
 0xae9   :  { %v3993_v29 = vadd.f32 %v3987_v60, %v2296_v13  ;;  %v4103_v26 = vpop.f32.mrf.mxu0  ;;  %v3992_v25 = vadd.f32 %v3967_v33, %v2255_v15 }
 0xaea   :  { %v4104_v52 = vadd.f32 %v7129_v37, %v4103_v26 }
 0xaeb   :  { %v4221_v35 = vmul.f32 -1.442695, %v3993_v29 }
 0xaec   :  { %v4472_v32 = vpop.eup %4471  ;;  %4128 = vst.msk [vmem:[%s7185_s9] sm:$0xff] %vm4127_vm5, %v4104_v52 }
 0xaed   :  { %v4474_v63 = vpop.eup %4473  ;;  %v3997_v8 = vadd.f32 1.0, %v4472_v32  ;;  %4475 = vpow2.f32 %v4221_v35 }
 0xaee   :  { %v4016_v23 = vadd.f32 1.0, %v4474_v63 }
 0xaef   :  { %4477 = vrcp.f32 %v3997_v8  ;;  %v4007_v39 = vand.u32 2147483647, %v3997_v8  ;;  %v4009_v43 = vand.u32 2147483648, %v3997_v8  ;;  %vm4003_vm8 = vweird.f32 %v3997_v8 }
 0xaf0   :  { %4479 = vrcp.f32 %v4016_v23  ;;  %v4028_v5 = vand.u32 2147483648, %v4016_v23  ;;  %v4026_v61 = vand.u32 2147483647, %v4016_v23  ;;  %vm4022_vm9 = vweird.f32 %v4016_v23 }
 0xaf1   :  { %v4106_v22 = vpop.f32.mrf.mxu0  ;;  %v4010_v58 = vor.u32 1.1754944e-38, %v4009_v43  ;;  %vm4008_vm12 = vcmp.eq.f32.partialorder %v4007_v39, 8.507059e+37 }
 0xaf2   :  { %v4107_v0 = vadd.f32 %v7129_v37, %v4106_v22  ;;  %v4029_v9 = vor.u32 1.1754944e-38, %v4028_v5  ;;  %vm4027_vm13 = vcmp.eq.f32.partialorder %v4026_v61, 8.507059e+37 }
 0xaf3   :  { %v4476_v10 = vpop.eup %4475 }
 0xaf4   :  { %v4036_v45 = vadd.f32 1.0, %v4476_v10  ;;  %4129 = vst.msk [vmem:[%s7185_s9 + $0x8] sm:$0xff] %vm4127_vm5, %v4107_v0 }
 0xaf5   :  { %v4478_v1 = vpop.eup %4477 }
 0xaf6   :  { %v4480_v27 = vpop.eup %4479  ;;  %v3999_v59 = vmul.f32 %v4478_v1, %v3997_v8  ;;  %4481 = vrcp.f32 %v4036_v45  ;;  %vm4004_vm6 = vweird.f32 %v4478_v1  ;;  %v4048_v11 = vand.u32 2147483648, %v4036_v45 }
 0xaf7   :  { %v4018_v55 = vmul.f32 %v4480_v27, %v4016_v23  ;;  %4483 = vtanh.f32 %v3992_v25  ;;  %vm4023_vm7 = vweird.f32 %v4480_v27  ;;  %vm4005_vm10 = vmor %vm4003_vm8, %vm4004_vm6  ;;  %vm4042_vm15 = vweird.f32 %v4036_v45 }
 0xaf8   :  { %v4000_v20 = vsub.f32 1.0, %v3999_v59  ;;  %vm4024_vm11 = vmor %vm4022_vm9, %vm4023_vm7  ;;  %v4046_v12 = vand.u32 2147483647, %v4036_v45 }
 0xaf9   :  { %v4019_v2 = vsub.f32 1.0, %v4018_v55  ;;  %v4109_v21 = vpop.f32.mrf.mxu0 }
 0xafa   :  { %v4001_v36 = vmul.f32 %v4478_v1, %v4000_v20  ;;  %v4110_v30 = vadd.f32 %v7129_v37, %v4109_v21  ;;  %vm4047_vm1 = vcmp.eq.f32.partialorder %v4046_v12, 8.507059e+37 }
 0xafb   :  { %v4020_v28 = vmul.f32 %v4480_v27, %v4019_v2 }
 0xafc   :  { %v4482_v44 = vpop.eup %4481  ;;  %v4002_v54 = vadd.f32 %v4478_v1, %v4001_v36  ;;  %4130 = vst.msk [vmem:[%s7185_s9 + $0x10] sm:$0xff] %vm4127_vm5, %v4110_v30 }
 0xafd   :  { %v4021_v24 = vadd.f32 %v4480_v27, %v4020_v28  ;;  %v4038_v38 = vmul.f32 %v4482_v44, %v4036_v45  ;;  %v4484_v4 = vpop.eup %4483  ;;  %vm4043_vm14 = vweird.f32 %v4482_v44 }
 0xafe   :  { %v4006_v19 = vsel %vm4005_vm10, %v4478_v1, %v4002_v54  ;;  %vm4044_vm0 = vmor %vm4042_vm15, %vm4043_vm14 }
 0xaff   :  { %v4011_v31 = vsel %vm4008_vm12, %v4010_v58, %v4006_v19  ;;  %v4025_v14 = vsel %vm4024_vm11, %v4480_v27, %v4021_v24  ;;  %v4039_v41 = vsub.f32 1.0, %v4038_v38 }
 0xb00   :  { %v4030_v3 = vsel %vm4027_vm13, %v4029_v9, %v4025_v14  ;;  %v4053_v17 = vmul.f32 %v4484_v4, %v4011_v31 }
 0xb01   :  { %v4052_v40 = vmul.f32 %v4030_v3, %v7116_v47  ;;  %v4112_v51 = vpop.f32.mrf.mxu0  ;;  %v4040_v62 = vmul.f32 %v4482_v44, %v4039_v41  ;;  %v4049_v47 = vor.u32 1.1754944e-38, %v4048_v11 }
 0xb02   :  { %v4113_v34 = vadd.f32 %v7129_v37, %v4112_v51 }
 0xb03   :  { %v4054_v49 = vadd.f32 %v4053_v17, %v4052_v40  ;;  %v4041_v53 = vadd.f32 %v4482_v44, %v4040_v62 }
 0xb04   :  { %4131 = vst.msk [vmem:[%s7185_s9 + $0x18] sm:$0xff] %vm4127_vm5, %v4113_v34 }
 0xb05   :  { %4485 = vtanh.f32 %v4054_v49  ;;  %v4045_v42 = vsel %vm4044_vm0, %v4482_v44, %v4041_v53 }
 0xb06   :  { %v4050_v56 = vsel %vm4047_vm1, %v4049_v47, %v4045_v42 }
 0xb09   :  { %v4115_v16 = vpop.f32.mrf.mxu0 }
 0xb0a   :  { %v4116_v57 = vadd.f32 %v7129_v37, %v4115_v16 }
 0xb0b   :  { %v4486_v48 = vpop.eup %4485 }
 0xb0c   :  { %4132 = vst.msk [vmem:[%s7185_s9 + $0x20] sm:$0xff] %vm4127_vm5, %v4116_v57  ;;  %v4056_v46 = vmul.f32 %v4486_v48, %v4050_v56 }
 0xb0e   :  { %4123 = vmatmul.f32.gmra.mxu0 %v4056_v46 }
 0xb11   :  { %v4118_v18 = vpop.f32.mrf.mxu0 }
 0xb12   :  { %v4119_v7 = vadd.f32 %v7129_v37, %v4118_v18 }
 0xb14   :  { %4133 = vst.msk [vmem:[%s7185_s9 + $0x28] sm:$0xff] %vm4127_vm5, %v4119_v7 }
 0xb19   :  { %v4121_v6 = vpop.f32.mrf.mxu0 }
 0xb1a   :  { %v4122_v13 = vadd.f32 %v7129_v37, %v4121_v6 }
 0xb1c   :  { %4134 = vst.msk [vmem:[%s7185_s9 + $0x30] sm:$0xff] %vm4127_vm5, %v4122_v13 }
 0xb8b   :  { %v4124_v60 = vpop.f32.mrf.mxu0 }
 0xb8c   :  { %v4125_v29 = vadd.f32 %v7129_v37, %v4124_v60 }
 0xb8e   :  { %4135 = vst.msk [vmem:[%s7185_s9 + $0x38] sm:$0xff] %vm4127_vm5, %v4125_v29 }
 0xb8f   :  { %4140 = vsyncpa [#allocation6], 1 }
 0xb90   :  { %4141 = vsyncpa [#allocation8], 1 }

</bundles_post_ra>
